<compile_context>
chip_gen: v7x
topology: tpu7x:2x2x1
jax: 0.10.0
libtpu: 0.0.40
codegen_flags: <defaults>
</compile_context>

<pallas_src>
import math

import jax
import jax.numpy as jnp
from jax import lax
from jax.experimental import pallas as pl
from jax.experimental.pallas import tpu as pltpu

# ----------------------------- small config ---------------------------------
B = 2                # batch
T = 8                # sequence length
D_BERT = 64          # bert hidden size (bert-base is 768; scaled down)
N_HEADS = 2
D_HEAD = D_BERT // N_HEADS
D_FF = 128           # bert intermediate size
N_BERT_LAYERS = 2
H_LSTM = 32          # LSTM hidden size (module default 256; scaled down)
N_LSTM_LAYERS = 2
N_CLASSES = 2
VOCAB = 100
MAX_POS = 64

_VMEM = pl.BlockSpec(memory_space=pltpu.MemorySpace.VMEM)
_BF16 = jnp.bfloat16
_F32 = jnp.float32


def _ln(x, g, b, eps=1e-12):
    mu = jnp.mean(x, axis=-1, keepdims=True)
    var = jnp.mean(jnp.square(x - mu), axis=-1, keepdims=True)
    return (x - mu) * lax.rsqrt(var + eps) * g + b


def _erf(x):
    # Abramowitz–Stegun 7.1.26 (|err| < 1.5e-7); only mul/add/div/exp/where.
    p = 0.3275911
    a1, a2, a3, a4, a5 = (0.254829592, -0.284496736, 1.421413741,
                          -1.453152027, 1.061405429)
    sgn = jnp.where(x >= 0.0, 1.0, -1.0)
    ax = jnp.abs(x)
    t = 1.0 / (1.0 + p * ax)
    poly = ((((a5 * t + a4) * t + a3) * t + a2) * t + a1) * t
    return sgn * (1.0 - poly * jnp.exp(-ax * ax))


def _gelu_erf(x):
    # BERT's exact erf-GELU.
    return 0.5 * x * (1.0 + _erf(x * 0.7071067811865476))


# --------------------- single fused forward kernel ---------------------------
def _fused_forward_kernel(
    x_ref, mask_ref, embln_ref,
    wqkv_ref, bqkv_ref, wo_ref, w1_ref, b1_ref, w2_ref, vecs_ref,
    lwih_ref, lb_ref, lwhh_ref, clsw_ref, clsb_ref,
    o_ref,
    scores_s, ctx_s, tm_s, lstm0_s,
):
    D, H, HD = D_BERT, H_LSTM, D_HEAD

    # ---- small f32 parameter slabs, loaded once ------------------------------
    embln = embln_ref[...]                 # (2, D)        [gamma; beta]
    bqkv = bqkv_ref[...]                   # (L, 3D)
    b1v = b1_ref[...]                      # (L, D_FF)
    vecs = vecs_ref[...]                   # (L, 6, D)  [bo,ln1_g,ln1_b,b2,ln2_g,ln2_b]
    lb = lb_ref[...]                       # (L, 8H)
    mask = mask_ref[...]                   # (B, T) additive bias

    # additive mask slab for the batched softmax: rows grouped as (b, h, t)
    bias = jnp.concatenate(
        [jnp.broadcast_to(mask[b:b + 1, :], (N_HEADS * T, T)) for b in range(B)],
        axis=0)                            # (B*H*T, T)

    # ---- embedding LayerNorm --------------------------------------------------
    x = _ln(x_ref[...], embln[0:1, :], embln[1:2, :])        # (B*T, D) f32

    # ---- BERT encoder layers (static unroll; weights stay VMEM resident) -----
    for l in range(N_BERT_LAYERS):
        qkv = jnp.dot(x.astype(_BF16), wqkv_ref[l],
                      preferred_element_type=_F32) + bqkv[l:l + 1, :]   # (B*T, 3D)

        # scores for every (batch, head) -> one slab, one softmax
        for b in range(B):
            for h in range(N_HEADS):
                r0, c0 = b * T, h * HD
                q = qkv[r0:r0 + T, c0:c0 + HD].astype(_BF16)     # 1/sqrt(dh) folded in
                k = qkv[r0:r0 + T, D + c0:D + c0 + HD].astype(_BF16)
                s = lax.dot_general(q, k, (((1,), (1,)), ((), ())),
                                    preferred_element_type=_F32)  # (T, T)
                idx = b * N_HEADS + h
                scores_s[idx * T:(idx + 1) * T, :] = s

        s_all = scores_s[...] + bias
        s_all = s_all - jnp.max(s_all, axis=-1, keepdims=True)
        p_all = jnp.exp(s_all)
        p_all = p_all * pl.reciprocal(jnp.sum(p_all, axis=-1, keepdims=True),
                                      approx=True)
        p_all = p_all.astype(_BF16)

        # context written straight into its (B*T, D) slot (no concat trees)
        for b in range(B):
            for h in range(N_HEADS):
                r0, c0 = b * T, h * HD
                idx = b * N_HEADS + h
                v = qkv[r0:r0 + T, 2 * D + c0:2 * D + c0 + HD].astype(_BF16)
                ctx_s[r0:r0 + T, c0:c0 + HD] = jnp.dot(
                    p_all[idx * T:(idx + 1) * T, :], v,
                    preferred_element_type=_F32)

        attn = jnp.dot(ctx_s[...].astype(_BF16), wo_ref[l],
                       preferred_element_type=_F32) + vecs[l, 0:1, :]
        h1 = _ln(attn + x, vecs[l, 1:2, :], vecs[l, 2:3, :])

        ff = jnp.dot(h1.astype(_BF16), w1_ref[l],
                     preferred_element_type=_F32) + b1v[l:l + 1, :]
        ff = _gelu_erf(ff)
        ff = jnp.dot(ff.astype(_BF16), w2_ref[l],
                     preferred_element_type=_F32) + vecs[l, 3:4, :]
        x = _ln(ff + h1, vecs[l, 4:5, :], vecs[l, 5:6, :])

    # ---- batch-major (B*T, D) -> time-major (T*B, D), inside VMEM ------------
    for b in range(B):
        for t in range(T):
            tm_s[t * B + b:t * B + b + 1, :] = x[b * T + t:b * T + t + 1, :]

    # ---- bidirectional LSTM: fwd & bwd fused into one recurrence -------------
    def bilstm(xp, whh_b16, out_ref):
        # xp: (T*B, 8H) time-major input projection incl. both directions' bias.
        h_st = jnp.zeros((2 * B, H), _F32)        # rows 0:B fwd, B:2B bwd
        c_st = jnp.zeros((2 * B, H), _F32)
        hf_last = None
        hb_first = None
        for step in range(T):                     # T=8 -> fully unrolled
            tb = T - 1 - step
            rec = jnp.dot(h_st.astype(_BF16), whh_b16,
                          preferred_element_type=_F32)             # (2B, 8H)
            gf = xp[step * B:(step + 1) * B, 0:4 * H] + rec[0:B, 0:4 * H]
            gb = xp[tb * B:(tb + 1) * B, 4 * H:8 * H] + rec[B:2 * B, 4 * H:8 * H]
            gates = jnp.concatenate([gf, gb], axis=0)              # (2B, 4H)
            i_g = jax.nn.sigmoid(gates[:, 0:H])                    # torch order i,f,g,o
            f_g = jax.nn.sigmoid(gates[:, H:2 * H])
            g_g = jnp.tanh(gates[:, 2 * H:3 * H])
            o_g = jax.nn.sigmoid(gates[:, 3 * H:4 * H])
            c_st = f_g * c_st + i_g * g_g
            h_st = o_g * jnp.tanh(c_st)
            if out_ref is not None:                                # time-major stores
                out_ref[step * B:(step + 1) * B, 0:H] = h_st[0:B]
                out_ref[tb * B:(tb + 1) * B, H:2 * H] = h_st[B:2 * B]
            if step == T - 1:
                hf_last = h_st[0:B]          # forward hidden at output time T-1
            if step == 0:
                hb_first = h_st[B:2 * B]     # backward hidden at output time T-1
        return hf_last, hb_first

    xp0 = jnp.dot(tm_s[...].astype(_BF16), lwih_ref[0],
                  preferred_element_type=_F32) + lb[0:1, :]        # (T*B, 8H)
    bilstm(xp0, lwhh_ref[0], lstm0_s)

    xp1 = jnp.dot(lstm0_s[...].astype(_BF16), lwih_ref[1],
                  preferred_element_type=_F32) + lb[1:2, :]
    hf_last, hb_first = bilstm(xp1, lwhh_ref[1], None)

    # ---- classifier on lstm_out[:, -1, :] (dropouts = identity in eval) -----
    last_hidden = jnp.concatenate([hf_last, hb_first], axis=-1)    # (B, 2H)
    o_ref[...] = jnp.dot(last_hidden.astype(_BF16), clsw_ref[...],
                         preferred_element_type=_F32) + clsb_ref[...]


# ------------------------------ model glue -----------------------------------
def forward(params, input_ids, attention_mask):
    Bn, Tn = input_ids.shape
    pos_ids = jnp.arange(Tn)
    # embedding gather stays in XLA (data-dependent gather)
    emb = (jnp.take(params["word_emb"], input_ids, axis=0)
           + jnp.take(params["pos_emb"], pos_ids, axis=0)[None, :, :]
           + params["type_emb"][0][None, None, :])
    x2 = emb.reshape(Bn * Tn, D_BERT).astype(jnp.float32)
    mask_bias = (1.0 - attention_mask.astype(jnp.float32)) * -1e9     # (B, T)

    args = [x2, mask_bias, params["emb_ln"],
            params["wqkv"], params["bqkv"], params["wo"], params["w1"],
            params["b1"], params["w2"], params["vecs"],
            params["lstm_wih"], params["lstm_b"], params["lstm_whh"],
            params["cls_w_t"], params["cls_b"]]

    return pl.pallas_call(
        _fused_forward_kernel,
        out_shape=jax.ShapeDtypeStruct((B, N_CLASSES), jnp.float32),
        in_specs=[_VMEM] * len(args),
        out_specs=_VMEM,
        scratch_shapes=[
            pltpu.VMEM((B * N_HEADS * T, T), jnp.float32),    # attention scores slab
            pltpu.VMEM((B * T, D_BERT), jnp.float32),         # attention context
            pltpu.VMEM((T * B, D_BERT), jnp.float32),         # time-major BERT output
            pltpu.VMEM((T * B, 2 * H_LSTM), jnp.float32),     # LSTM layer-0 output
        ],
    )(*args)


# ---------------------------- parameter init ---------------------------------
def init_params(key):
    keys = iter(jax.random.split(key, 64))

    def nrm(shape, scale=0.02):
        return scale * jax.random.normal(next(keys), shape, jnp.float32)

    def uni(shape, bound):
        return jax.random.uniform(next(keys), shape, jnp.float32, -bound, bound)

    params = {
        "word_emb": nrm((VOCAB, D_BERT)),
        "pos_emb": nrm((MAX_POS, D_BERT)),
        "type_emb": nrm((2, D_BERT)),
        "emb_ln": jnp.stack([jnp.ones((D_BERT,), jnp.float32),
                             jnp.zeros((D_BERT,), jnp.float32)], axis=0),
    }

    attn_scale = 1.0 / math.sqrt(D_HEAD)
    wqkv_l, bqkv_l, wo_l, w1_l, b1_l, w2_l, vecs_l = [], [], [], [], [], [], []
    for _ in range(N_BERT_LAYERS):
        wq, wk, wv = nrm((D_BERT, D_BERT)), nrm((D_BERT, D_BERT)), nrm((D_BERT, D_BERT))
        bq, bk, bv = nrm((D_BERT,)), nrm((D_BERT,)), nrm((D_BERT,))
        # fold 1/sqrt(d_head) into the Q projection (weights AND bias)
        wqkv_l.append(jnp.concatenate([wq * attn_scale, wk, wv], axis=1))   # (D, 3D)
        bqkv_l.append(jnp.concatenate([bq * attn_scale, bk, bv]))           # (3D,)
        wo_l.append(nrm((D_BERT, D_BERT)))
        w1_l.append(nrm((D_BERT, D_FF)))
        b1_l.append(nrm((D_FF,)))
        w2_l.append(nrm((D_FF, D_BERT)))
        vecs_l.append(jnp.stack([
            nrm((D_BERT,)),                         # bo
            jnp.ones((D_BERT,), jnp.float32),       # ln1_g
            jnp.zeros((D_BERT,), jnp.float32),      # ln1_b
            nrm((D_BERT,)),                         # b2
            jnp.ones((D_BERT,), jnp.float32),       # ln2_g
            jnp.zeros((D_BERT,), jnp.float32),      # ln2_b
        ], axis=0))
    params["wqkv"] = jnp.stack(wqkv_l).astype(_BF16)     # (L, D, 3D)
    params["bqkv"] = jnp.stack(bqkv_l)                   # (L, 3D)
    params["wo"] = jnp.stack(wo_l).astype(_BF16)         # (L, D, D)
    params["w1"] = jnp.stack(w1_l).astype(_BF16)         # (L, D, D_FF)
    params["b1"] = jnp.stack(b1_l)                       # (L, D_FF)
    params["w2"] = jnp.stack(w2_l).astype(_BF16)         # (L, D_FF, D)
    params["vecs"] = jnp.stack(vecs_l)                   # (L, 6, D)

    wih_l, b_l, whh_l = [], [], []
    for layer in range(N_LSTM_LAYERS):
        din = D_BERT if layer == 0 else 2 * H_LSTM       # both are 64 -> stackable
        bound = 1.0 / math.sqrt(H_LSTM)
        # torch layout: w_ih (4H, Din), w_hh (4H, H); uniform(-1/sqrt(H), 1/sqrt(H))
        w_ih_f = uni((4 * H_LSTM, din), bound)
        w_hh_f = uni((4 * H_LSTM, H_LSTM), bound)
        b_f = uni((4 * H_LSTM,), bound) + uni((4 * H_LSTM,), bound)   # b_ih + b_hh
        w_ih_b = uni((4 * H_LSTM, din), bound)
        w_hh_b = uni((4 * H_LSTM, H_LSTM), bound)
        b_b = uni((4 * H_LSTM,), bound) + uni((4 * H_LSTM,), bound)
        wih_l.append(jnp.concatenate([w_ih_f.T, w_ih_b.T], axis=1))   # (Din, 8H)
        b_l.append(jnp.concatenate([b_f, b_b]))                       # (8H,)
        whh_l.append(jnp.concatenate([w_hh_f.T, w_hh_b.T], axis=1))   # (H, 8H)
    params["lstm_wih"] = jnp.stack(wih_l).astype(_BF16)  # (L, 64, 8H)
    params["lstm_b"] = jnp.stack(b_l)                    # (L, 8H)
    params["lstm_whh"] = jnp.stack(whh_l).astype(_BF16)  # (L, H, 8H)

    cls_w = nrm((N_CLASSES, 2 * H_LSTM))                 # torch Linear: (out, in)
    params["cls_w_t"] = cls_w.T.astype(_BF16)            # (2H, Ncls)
    params["cls_b"] = nrm((N_CLASSES,)).reshape(1, N_CLASSES)
    return params


# --------------------------------- main ---------------------------------------
if __name__ == "__main__":
    key = jax.random.PRNGKey(0)
    pkey, ikey = jax.random.split(key)
    params = init_params(pkey)

    input_ids = jax.random.randint(ikey, (B, T), 0, VOCAB, dtype=jnp.int32)
    attention_mask = jnp.ones((B, T), jnp.int32).at[1, -2:].set(0)

    logits = jax.jit(forward)(params, input_ids, attention_mask)
    logits = jax.block_until_ready(logits)
    assert logits.shape == (B, N_CLASSES) and logits.dtype == jnp.float32
    assert bool(jnp.all(jnp.isfinite(logits)))
    print("KERNEL_OK")
</pallas_src>

<mosaic_0001>
module attributes {stable_mosaic.version = 11 : i64} {
  func.func @_fused_forward_kernel(%arg0: memref<16x64xf32, #tpu.memory_space<vmem>>, %arg1: memref<2x8xf32, #tpu.memory_space<vmem>>, %arg2: memref<2x64xf32, #tpu.memory_space<vmem>>, %arg3: memref<2x64x192xbf16, #tpu.memory_space<vmem>>, %arg4: memref<2x192xf32, #tpu.memory_space<vmem>>, %arg5: memref<2x64x64xbf16, #tpu.memory_space<vmem>>, %arg6: memref<2x64x128xbf16, #tpu.memory_space<vmem>>, %arg7: memref<2x128xf32, #tpu.memory_space<vmem>>, %arg8: memref<2x128x64xbf16, #tpu.memory_space<vmem>>, %arg9: memref<2x6x64xf32, #tpu.memory_space<vmem>>, %arg10: memref<2x64x256xbf16, #tpu.memory_space<vmem>>, %arg11: memref<2x256xf32, #tpu.memory_space<vmem>>, %arg12: memref<2x32x256xbf16, #tpu.memory_space<vmem>>, %arg13: memref<64x2xbf16, #tpu.memory_space<vmem>>, %arg14: memref<1x2xf32, #tpu.memory_space<vmem>>, %arg15: memref<2x2xf32, #tpu.memory_space<vmem>>, %arg16: memref<32x8xf32, #tpu.memory_space<vmem>>, %arg17: memref<16x64xf32, #tpu.memory_space<vmem>>, %arg18: memref<16x64xf32, #tpu.memory_space<vmem>>, %arg19: memref<16x64xf32, #tpu.memory_space<vmem>>) attributes {dimension_semantics = [], scalar_prefetch = 0 : i64, scratch_operands = 4 : i64, tpu.core_type = #tpu.core_type<tc>} {
    %c0 = arith.constant 0 : index
    %c0_0 = arith.constant 0 : index
    %0 = vector.load %arg2[%c0, %c0_0] : memref<2x64xf32, #tpu.memory_space<vmem>>, vector<2x64xf32>
    %c0_1 = arith.constant 0 : index
    %c0_2 = arith.constant 0 : index
    %1 = vector.load %arg4[%c0_1, %c0_2] : memref<2x192xf32, #tpu.memory_space<vmem>>, vector<2x192xf32>
    %c0_3 = arith.constant 0 : index
    %c0_4 = arith.constant 0 : index
    %2 = vector.load %arg7[%c0_3, %c0_4] : memref<2x128xf32, #tpu.memory_space<vmem>>, vector<2x128xf32>
    %c0_5 = arith.constant 0 : index
    %c0_6 = arith.constant 0 : index
    %c0_7 = arith.constant 0 : index
    %3 = vector.load %arg9[%c0_5, %c0_6, %c0_7] : memref<2x6x64xf32, #tpu.memory_space<vmem>>, vector<2x6x64xf32>
    %c0_8 = arith.constant 0 : index
    %c0_9 = arith.constant 0 : index
    %4 = vector.load %arg11[%c0_8, %c0_9] : memref<2x256xf32, #tpu.memory_space<vmem>>, vector<2x256xf32>
    %c0_10 = arith.constant 0 : index
    %c0_11 = arith.constant 0 : index
    %5 = vector.load %arg1[%c0_10, %c0_11] : memref<2x8xf32, #tpu.memory_space<vmem>>, vector<2x8xf32>
    %6 = vector.extract_strided_slice %5 {offsets = [0, 0], sizes = [1, 8], strides = [1, 1]} : vector<2x8xf32> to vector<1x8xf32>
    %7 = vector.shape_cast %6 : vector<1x8xf32> to vector<1x8xf32>
    %8 = vector.broadcast %7 : vector<1x8xf32> to vector<16x8xf32>
    %9 = vector.extract_strided_slice %5 {offsets = [1, 0], sizes = [1, 8], strides = [1, 1]} : vector<2x8xf32> to vector<1x8xf32>
    %10 = vector.shape_cast %9 : vector<1x8xf32> to vector<1x8xf32>
    %11 = vector.broadcast %10 : vector<1x8xf32> to vector<16x8xf32>
    %12 = tpu.concatenate %8, %11 in 0 : vector<16x8xf32>, vector<16x8xf32> -> vector<32x8xf32>
    %c0_12 = arith.constant 0 : index
    %c0_13 = arith.constant 0 : index
    %13 = vector.load %arg0[%c0_12, %c0_13] : memref<16x64xf32, #tpu.memory_space<vmem>>, vector<16x64xf32>
    %14 = vector.extract_strided_slice %0 {offsets = [0, 0], sizes = [1, 64], strides = [1, 1]} : vector<2x64xf32> to vector<1x64xf32>
    %15 = vector.extract_strided_slice %0 {offsets = [1, 0], sizes = [1, 64], strides = [1, 1]} : vector<2x64xf32> to vector<1x64xf32>
    %cst = arith.constant dense<0.000000e+00> : vector<16xf32>
    %16 = vector.multi_reduction <add>, %13, %cst [1] : vector<16x64xf32> to vector<16xf32>
    %17 = vector.shape_cast %16 : vector<16xf32> to vector<16x1xf32>
    %cst_14 = arith.constant 6.400000e+01 : f32
    %18 = vector.broadcast %cst_14 : f32 to vector<16x1xf32>
    %19 = arith.divf %17, %18 : vector<16x1xf32>
    %20 = vector.broadcast %19 : vector<16x1xf32> to vector<16x64xf32>
    %21 = arith.subf %13, %20 : vector<16x64xf32>
    %22 = arith.mulf %21, %21 : vector<16x64xf32>
    %cst_15 = arith.constant dense<0.000000e+00> : vector<16xf32>
    %23 = vector.multi_reduction <add>, %22, %cst_15 [1] : vector<16x64xf32> to vector<16xf32>
    %24 = vector.shape_cast %23 : vector<16xf32> to vector<16x1xf32>
    %cst_16 = arith.constant 6.400000e+01 : f32
    %25 = vector.broadcast %cst_16 : f32 to vector<16x1xf32>
    %26 = arith.divf %24, %25 : vector<16x1xf32>
    %27 = vector.broadcast %19 : vector<16x1xf32> to vector<16x64xf32>
    %28 = arith.subf %13, %27 : vector<16x64xf32>
    %cst_17 = arith.constant 9.99999996E-13 : f32
    %29 = vector.broadcast %cst_17 : f32 to vector<16x1xf32>
    %30 = arith.addf %26, %29 : vector<16x1xf32>
    %31 = math.rsqrt %30 : vector<16x1xf32>
    %32 = vector.broadcast %31 : vector<16x1xf32> to vector<16x64xf32>
    %33 = arith.mulf %28, %32 : vector<16x64xf32>
    %34 = vector.broadcast %14 : vector<1x64xf32> to vector<16x64xf32>
    %35 = arith.mulf %33, %34 : vector<16x64xf32>
    %36 = vector.broadcast %15 : vector<1x64xf32> to vector<16x64xf32>
    %37 = arith.addf %35, %36 : vector<16x64xf32>
    %38 = arith.truncf %37 : vector<16x64xf32> to vector<16x64xbf16>
    %c0_18 = arith.constant 0 : index
    %c0_19 = arith.constant 0 : index
    %c0_20 = arith.constant 0 : index
    %39 = vector.load %arg3[%c0_18, %c0_19, %c0_20] : memref<2x64x192xbf16, #tpu.memory_space<vmem>>, vector<1x64x192xbf16>
    %40 = vector.shape_cast %39 : vector<1x64x192xbf16> to vector<64x192xbf16>
    %cst_21 = arith.constant dense<0.000000e+00> : vector<16x192xf32>
    %41 = tpu.matmul %38, %40, %cst_21 {dimension_numbers = #tpu.dot_dimension_numbers<[1], [0], [0], [1], [0, 0, 1, 1], [], []>} : vector<16x64xbf16>, vector<64x192xbf16>, vector<16x192xf32> -> vector<16x192xf32>
    %42 = vector.extract_strided_slice %1 {offsets = [0, 0], sizes = [1, 192], strides = [1, 1]} : vector<2x192xf32> to vector<1x192xf32>
    %43 = vector.broadcast %42 : vector<1x192xf32> to vector<16x192xf32>
    %44 = arith.addf %41, %43 : vector<16x192xf32>
    %45 = vector.extract_strided_slice %44 {offsets = [0, 0], sizes = [8, 32], strides = [1, 1]} : vector<16x192xf32> to vector<8x32xf32>
    %46 = arith.truncf %45 : vector<8x32xf32> to vector<8x32xbf16>
    %47 = vector.extract_strided_slice %44 {offsets = [0, 64], sizes = [8, 32], strides = [1, 1]} : vector<16x192xf32> to vector<8x32xf32>
    %48 = arith.truncf %47 : vector<8x32xf32> to vector<8x32xbf16>
    %cst_22 = arith.constant dense<0.000000e+00> : vector<8x8xf32>
    %49 = tpu.matmul %46, %48, %cst_22 {dimension_numbers = #tpu.dot_dimension_numbers<[1], [1], [0], [0], [0, 0, 1, 0], [], []>} : vector<8x32xbf16>, vector<8x32xbf16>, vector<8x8xf32> -> vector<8x8xf32>
    %c0_23 = arith.constant 0 : index
    %c0_24 = arith.constant 0 : index
    %50 = vector.load %arg16[%c0_23, %c0_24] : memref<32x8xf32, #tpu.memory_space<vmem>>, vector<8x8xf32>
    tpu.vector_store %arg16[%c0_23, %c0_24], %49 {strides = array<i32>} : memref<32x8xf32, #tpu.memory_space<vmem>>, vector<8x8xf32>,
    %51 = vector.extract_strided_slice %44 {offsets = [0, 32], sizes = [8, 32], strides = [1, 1]} : vector<16x192xf32> to vector<8x32xf32>
    %52 = arith.truncf %51 : vector<8x32xf32> to vector<8x32xbf16>
    %53 = vector.extract_strided_slice %44 {offsets = [0, 96], sizes = [8, 32], strides = [1, 1]} : vector<16x192xf32> to vector<8x32xf32>
    %54 = arith.truncf %53 : vector<8x32xf32> to vector<8x32xbf16>
    %cst_25 = arith.constant dense<0.000000e+00> : vector<8x8xf32>
    %55 = tpu.matmul %52, %54, %cst_25 {dimension_numbers = #tpu.dot_dimension_numbers<[1], [1], [0], [0], [0, 0, 1, 0], [], []>} : vector<8x32xbf16>, vector<8x32xbf16>, vector<8x8xf32> -> vector<8x8xf32>
    %c8 = arith.constant 8 : index
    %c0_26 = arith.constant 0 : index
    %56 = vector.load %arg16[%c8, %c0_26] : memref<32x8xf32, #tpu.memory_space<vmem>>, vector<8x8xf32>
    tpu.vector_store %arg16[%c8, %c0_26], %55 {strides = array<i32>} : memref<32x8xf32, #tpu.memory_space<vmem>>, vector<8x8xf32>,
    %57 = vector.extract_strided_slice %44 {offsets = [8, 0], sizes = [8, 32], strides = [1, 1]} : vector<16x192xf32> to vector<8x32xf32>
    %58 = arith.truncf %57 : vector<8x32xf32> to vector<8x32xbf16>
    %59 = vector.extract_strided_slice %44 {offsets = [8, 64], sizes = [8, 32], strides = [1, 1]} : vector<16x192xf32> to vector<8x32xf32>
    %60 = arith.truncf %59 : vector<8x32xf32> to vector<8x32xbf16>
    %cst_27 = arith.constant dense<0.000000e+00> : vector<8x8xf32>
    %61 = tpu.matmul %58, %60, %cst_27 {dimension_numbers = #tpu.dot_dimension_numbers<[1], [1], [0], [0], [0, 0, 1, 0], [], []>} : vector<8x32xbf16>, vector<8x32xbf16>, vector<8x8xf32> -> vector<8x8xf32>
    %c16 = arith.constant 16 : index
    %c0_28 = arith.constant 0 : index
    %62 = vector.load %arg16[%c16, %c0_28] : memref<32x8xf32, #tpu.memory_space<vmem>>, vector<8x8xf32>
    tpu.vector_store %arg16[%c16, %c0_28], %61 {strides = array<i32>} : memref<32x8xf32, #tpu.memory_space<vmem>>, vector<8x8xf32>,
    %63 = vector.extract_strided_slice %44 {offsets = [8, 32], sizes = [8, 32], strides = [1, 1]} : vector<16x192xf32> to vector<8x32xf32>
    %64 = arith.truncf %63 : vector<8x32xf32> to vector<8x32xbf16>
    %65 = vector.extract_strided_slice %44 {offsets = [8, 96], sizes = [8, 32], strides = [1, 1]} : vector<16x192xf32> to vector<8x32xf32>
    %66 = arith.truncf %65 : vector<8x32xf32> to vector<8x32xbf16>
    %cst_29 = arith.constant dense<0.000000e+00> : vector<8x8xf32>
    %67 = tpu.matmul %64, %66, %cst_29 {dimension_numbers = #tpu.dot_dimension_numbers<[1], [1], [0], [0], [0, 0, 1, 0], [], []>} : vector<8x32xbf16>, vector<8x32xbf16>, vector<8x8xf32> -> vector<8x8xf32>
    %c24 = arith.constant 24 : index
    %c0_30 = arith.constant 0 : index
    %68 = vector.load %arg16[%c24, %c0_30] : memref<32x8xf32, #tpu.memory_space<vmem>>, vector<8x8xf32>
    tpu.vector_store %arg16[%c24, %c0_30], %67 {strides = array<i32>} : memref<32x8xf32, #tpu.memory_space<vmem>>, vector<8x8xf32>,
    %c0_31 = arith.constant 0 : index
    %c0_32 = arith.constant 0 : index
    %69 = vector.load %arg16[%c0_31, %c0_32] : memref<32x8xf32, #tpu.memory_space<vmem>>, vector<32x8xf32>
    %70 = arith.addf %69, %12 : vector<32x8xf32>
    %cst_33 = arith.constant dense<0xFF800000> : vector<32xf32>
    %71 = vector.multi_reduction <maximumf>, %70, %cst_33 [1] : vector<32x8xf32> to vector<32xf32>
    %72 = vector.shape_cast %71 : vector<32xf32> to vector<32x1xf32>
    %73 = vector.broadcast %72 : vector<32x1xf32> to vector<32x8xf32>
    %74 = arith.subf %70, %73 : vector<32x8xf32>
    %75 = math.exp %74 : vector<32x8xf32>
    %cst_34 = arith.constant dense<0.000000e+00> : vector<32xf32>
    %76 = vector.multi_reduction <add>, %75, %cst_34 [1] : vector<32x8xf32> to vector<32xf32>
    %77 = vector.shape_cast %76 : vector<32xf32> to vector<32x1xf32>
    %78 = tpu.reciprocal %77 {approx = true} : vector<32x1xf32> -> vector<32x1xf32>
    %79 = vector.broadcast %78 : vector<32x1xf32> to vector<32x8xf32>
    %80 = arith.mulf %75, %79 : vector<32x8xf32>
    %81 = arith.truncf %80 : vector<32x8xf32> to vector<32x8xbf16>
    %82 = vector.extract_strided_slice %44 {offsets = [0, 128], sizes = [8, 32], strides = [1, 1]} : vector<16x192xf32> to vector<8x32xf32>
    %83 = arith.truncf %82 : vector<8x32xf32> to vector<8x32xbf16>
    %84 = vector.extract_strided_slice %81 {offsets = [0, 0], sizes = [8, 8], strides = [1, 1]} : vector<32x8xbf16> to vector<8x8xbf16>
    %cst_35 = arith.constant dense<0.000000e+00> : vector<8x32xf32>
    %85 = tpu.matmul %84, %83, %cst_35 {dimension_numbers = #tpu.dot_dimension_numbers<[1], [0], [0], [1], [0, 0, 1, 1], [], []>} : vector<8x8xbf16>, vector<8x32xbf16>, vector<8x32xf32> -> vector<8x32xf32>
    %c0_36 = arith.constant 0 : index
    %c0_37 = arith.constant 0 : index
    %86 = vector.load %arg17[%c0_36, %c0_37] : memref<16x64xf32, #tpu.memory_space<vmem>>, vector<8x32xf32>
    tpu.vector_store %arg17[%c0_36, %c0_37], %85 {strides = array<i32>} : memref<16x64xf32, #tpu.memory_space<vmem>>, vector<8x32xf32>,
    %87 = vector.extract_strided_slice %44 {offsets = [0, 160], sizes = [8, 32], strides = [1, 1]} : vector<16x192xf32> to vector<8x32xf32>
    %88 = arith.truncf %87 : vector<8x32xf32> to vector<8x32xbf16>
    %89 = vector.extract_strided_slice %81 {offsets = [8, 0], sizes = [8, 8], strides = [1, 1]} : vector<32x8xbf16> to vector<8x8xbf16>
    %cst_38 = arith.constant dense<0.000000e+00> : vector<8x32xf32>
    %90 = tpu.matmul %89, %88, %cst_38 {dimension_numbers = #tpu.dot_dimension_numbers<[1], [0], [0], [1], [0, 0, 1, 1], [], []>} : vector<8x8xbf16>, vector<8x32xbf16>, vector<8x32xf32> -> vector<8x32xf32>
    %c0_39 = arith.constant 0 : index
    %c32 = arith.constant 32 : index
    %91 = vector.load %arg17[%c0_39, %c32] : memref<16x64xf32, #tpu.memory_space<vmem>>, vector<8x32xf32>
    tpu.vector_store %arg17[%c0_39, %c32], %90 {strides = array<i32>} : memref<16x64xf32, #tpu.memory_space<vmem>>, vector<8x32xf32>,
    %92 = vector.extract_strided_slice %44 {offsets = [8, 128], sizes = [8, 32], strides = [1, 1]} : vector<16x192xf32> to vector<8x32xf32>
    %93 = arith.truncf %92 : vector<8x32xf32> to vector<8x32xbf16>
    %94 = vector.extract_strided_slice %81 {offsets = [16, 0], sizes = [8, 8], strides = [1, 1]} : vector<32x8xbf16> to vector<8x8xbf16>
    %cst_40 = arith.constant dense<0.000000e+00> : vector<8x32xf32>
    %95 = tpu.matmul %94, %93, %cst_40 {dimension_numbers = #tpu.dot_dimension_numbers<[1], [0], [0], [1], [0, 0, 1, 1], [], []>} : vector<8x8xbf16>, vector<8x32xbf16>, vector<8x32xf32> -> vector<8x32xf32>
    %c8_41 = arith.constant 8 : index
    %c0_42 = arith.constant 0 : index
    %96 = vector.load %arg17[%c8_41, %c0_42] : memref<16x64xf32, #tpu.memory_space<vmem>>, vector<8x32xf32>
    tpu.vector_store %arg17[%c8_41, %c0_42], %95 {strides = array<i32>} : memref<16x64xf32, #tpu.memory_space<vmem>>, vector<8x32xf32>,
    %97 = vector.extract_strided_slice %44 {offsets = [8, 160], sizes = [8, 32], strides = [1, 1]} : vector<16x192xf32> to vector<8x32xf32>
    %98 = arith.truncf %97 : vector<8x32xf32> to vector<8x32xbf16>
    %99 = vector.extract_strided_slice %81 {offsets = [24, 0], sizes = [8, 8], strides = [1, 1]} : vector<32x8xbf16> to vector<8x8xbf16>
    %cst_43 = arith.constant dense<0.000000e+00> : vector<8x32xf32>
    %100 = tpu.matmul %99, %98, %cst_43 {dimension_numbers = #tpu.dot_dimension_numbers<[1], [0], [0], [1], [0, 0, 1, 1], [], []>} : vector<8x8xbf16>, vector<8x32xbf16>, vector<8x32xf32> -> vector<8x32xf32>
    %c8_44 = arith.constant 8 : index
    %c32_45 = arith.constant 32 : index
    %101 = vector.load %arg17[%c8_44, %c32_45] : memref<16x64xf32, #tpu.memory_space<vmem>>, vector<8x32xf32>
    tpu.vector_store %arg17[%c8_44, %c32_45], %100 {strides = array<i32>} : memref<16x64xf32, #tpu.memory_space<vmem>>, vector<8x32xf32>,
    %c0_46 = arith.constant 0 : index
    %c0_47 = arith.constant 0 : index
    %102 = vector.load %arg17[%c0_46, %c0_47] : memref<16x64xf32, #tpu.memory_space<vmem>>, vector<16x64xf32>
    %103 = arith.truncf %102 : vector<16x64xf32> to vector<16x64xbf16>
    %c0_48 = arith.constant 0 : index
    %c0_49 = arith.constant 0 : index
    %c0_50 = arith.constant 0 : index
    %104 = vector.load %arg5[%c0_48, %c0_49, %c0_50] : memref<2x64x64xbf16, #tpu.memory_space<vmem>>, vector<1x64x64xbf16>
    %105 = vector.shape_cast %104 : vector<1x64x64xbf16> to vector<64x64xbf16>
    %cst_51 = arith.constant dense<0.000000e+00> : vector<16x64xf32>
    %106 = tpu.matmul %103, %105, %cst_51 {dimension_numbers = #tpu.dot_dimension_numbers<[1], [0], [0], [1], [0, 0, 1, 1], [], []>} : vector<16x64xbf16>, vector<64x64xbf16>, vector<16x64xf32> -> vector<16x64xf32>
    %107 = vector.extract_strided_slice %3 {offsets = [0, 0, 0], sizes = [1, 1, 64], strides = [1, 1, 1]} : vector<2x6x64xf32> to vector<1x1x64xf32>
    %108 = vector.shape_cast %107 : vector<1x1x64xf32> to vector<1x64xf32>
    %109 = vector.broadcast %108 : vector<1x64xf32> to vector<16x64xf32>
    %110 = arith.addf %106, %109 : vector<16x64xf32>
    %111 = arith.addf %110, %37 : vector<16x64xf32>
    %112 = vector.extract_strided_slice %3 {offsets = [0, 1, 0], sizes = [1, 1, 64], strides = [1, 1, 1]} : vector<2x6x64xf32> to vector<1x1x64xf32>
    %113 = vector.shape_cast %112 : vector<1x1x64xf32> to vector<1x64xf32>
    %114 = vector.extract_strided_slice %3 {offsets = [0, 2, 0], sizes = [1, 1, 64], strides = [1, 1, 1]} : vector<2x6x64xf32> to vector<1x1x64xf32>
    %115 = vector.shape_cast %114 : vector<1x1x64xf32> to vector<1x64xf32>
    %cst_52 = arith.constant dense<0.000000e+00> : vector<16xf32>
    %116 = vector.multi_reduction <add>, %111, %cst_52 [1] : vector<16x64xf32> to vector<16xf32>
    %117 = vector.shape_cast %116 : vector<16xf32> to vector<16x1xf32>
    %cst_53 = arith.constant 6.400000e+01 : f32
    %118 = vector.broadcast %cst_53 : f32 to vector<16x1xf32>
    %119 = arith.divf %117, %118 : vector<16x1xf32>
    %120 = vector.broadcast %119 : vector<16x1xf32> to vector<16x64xf32>
    %121 = arith.subf %111, %120 : vector<16x64xf32>
    %122 = arith.mulf %121, %121 : vector<16x64xf32>
    %cst_54 = arith.constant dense<0.000000e+00> : vector<16xf32>
    %123 = vector.multi_reduction <add>, %122, %cst_54 [1] : vector<16x64xf32> to vector<16xf32>
    %124 = vector.shape_cast %123 : vector<16xf32> to vector<16x1xf32>
    %cst_55 = arith.constant 6.400000e+01 : f32
    %125 = vector.broadcast %cst_55 : f32 to vector<16x1xf32>
    %126 = arith.divf %124, %125 : vector<16x1xf32>
    %127 = vector.broadcast %119 : vector<16x1xf32> to vector<16x64xf32>
    %128 = arith.subf %111, %127 : vector<16x64xf32>
    %cst_56 = arith.constant 9.99999996E-13 : f32
    %129 = vector.broadcast %cst_56 : f32 to vector<16x1xf32>
    %130 = arith.addf %126, %129 : vector<16x1xf32>
    %131 = math.rsqrt %130 : vector<16x1xf32>
    %132 = vector.broadcast %131 : vector<16x1xf32> to vector<16x64xf32>
    %133 = arith.mulf %128, %132 : vector<16x64xf32>
    %134 = vector.broadcast %113 : vector<1x64xf32> to vector<16x64xf32>
    %135 = arith.mulf %133, %134 : vector<16x64xf32>
    %136 = vector.broadcast %115 : vector<1x64xf32> to vector<16x64xf32>
    %137 = arith.addf %135, %136 : vector<16x64xf32>
    %138 = arith.truncf %137 : vector<16x64xf32> to vector<16x64xbf16>
    %c0_57 = arith.constant 0 : index
    %c0_58 = arith.constant 0 : index
    %c0_59 = arith.constant 0 : index
    %139 = vector.load %arg6[%c0_57, %c0_58, %c0_59] : memref<2x64x128xbf16, #tpu.memory_space<vmem>>, vector<1x64x128xbf16>
    %140 = vector.shape_cast %139 : vector<1x64x128xbf16> to vector<64x128xbf16>
    %cst_60 = arith.constant dense<0.000000e+00> : vector<16x128xf32>
    %141 = tpu.matmul %138, %140, %cst_60 {dimension_numbers = #tpu.dot_dimension_numbers<[1], [0], [0], [1], [0, 0, 1, 1], [], []>} : vector<16x64xbf16>, vector<64x128xbf16>, vector<16x128xf32> -> vector<16x128xf32>
    %142 = vector.extract_strided_slice %2 {offsets = [0, 0], sizes = [1, 128], strides = [1, 1]} : vector<2x128xf32> to vector<1x128xf32>
    %143 = vector.broadcast %142 : vector<1x128xf32> to vector<16x128xf32>
    %144 = arith.addf %141, %143 : vector<16x128xf32>
    %cst_61 = arith.constant 5.000000e-01 : f32
    %145 = vector.broadcast %cst_61 : f32 to vector<16x128xf32>
    %146 = arith.mulf %145, %144 : vector<16x128xf32>
    %cst_62 = arith.constant 0.707106769 : f32
    %147 = vector.broadcast %cst_62 : f32 to vector<16x128xf32>
    %148 = arith.mulf %144, %147 : vector<16x128xf32>
    %cst_63 = arith.constant 0.000000e+00 : f32
    %149 = vector.broadcast %cst_63 : f32 to vector<16x128xf32>
    %150 = arith.cmpf oge, %148, %149 : vector<16x128xf32>
    %cst_64 = arith.constant 1.000000e+00 : f32
    %cst_65 = arith.constant -1.000000e+00 : f32
    %151 = vector.broadcast %cst_64 : f32 to vector<16x128xf32>
    %152 = vector.broadcast %cst_65 : f32 to vector<16x128xf32>
    %153 = arith.select %150, %151, %152 : vector<16x128xi1>, vector<16x128xf32>
    %154 = math.absf %148 : vector<16x128xf32>
    %cst_66 = arith.constant 0.327591091 : f32
    %155 = vector.broadcast %cst_66 : f32 to vector<16x128xf32>
    %156 = arith.mulf %155, %154 : vector<16x128xf32>
    %cst_67 = arith.constant 1.000000e+00 : f32
    %157 = vector.broadcast %cst_67 : f32 to vector<16x128xf32>
    %158 = arith.addf %157, %156 : vector<16x128xf32>
    %cst_68 = arith.constant 1.000000e+00 : f32
    %159 = vector.broadcast %cst_68 : f32 to vector<16x128xf32>
    %160 = arith.divf %159, %158 : vector<16x128xf32>
    %cst_69 = arith.constant 1.06140542 : f32
    %161 = vector.broadcast %cst_69 : f32 to vector<16x128xf32>
    %162 = arith.mulf %161, %160 : vector<16x128xf32>
    %cst_70 = arith.constant -1.45315206 : f32
    %163 = vector.broadcast %cst_70 : f32 to vector<16x128xf32>
    %164 = arith.addf %162, %163 : vector<16x128xf32>
    %165 = arith.mulf %164, %160 : vector<16x128xf32>
    %cst_71 = arith.constant 1.42141378 : f32
    %166 = vector.broadcast %cst_71 : f32 to vector<16x128xf32>
    %167 = arith.addf %165, %166 : vector<16x128xf32>
    %168 = arith.mulf %167, %160 : vector<16x128xf32>
    %cst_72 = arith.constant -0.284496725 : f32
    %169 = vector.broadcast %cst_72 : f32 to vector<16x128xf32>
    %170 = arith.addf %168, %169 : vector<16x128xf32>
    %171 = arith.mulf %170, %160 : vector<16x128xf32>
    %cst_73 = arith.constant 0.254829586 : f32
    %172 = vector.broadcast %cst_73 : f32 to vector<16x128xf32>
    %173 = arith.addf %171, %172 : vector<16x128xf32>
    %174 = arith.mulf %173, %160 : vector<16x128xf32>
    %cst_74 = arith.constant 0.000000e+00 : f32
    %175 = vector.broadcast %cst_74 : f32 to vector<16x128xf32>
    %176 = arith.subf %175, %154 : vector<16x128xf32>
    %177 = arith.mulf %176, %154 : vector<16x128xf32>
    %178 = math.exp %177 : vector<16x128xf32>
    %179 = arith.mulf %174, %178 : vector<16x128xf32>
    %cst_75 = arith.constant 1.000000e+00 : f32
    %180 = vector.broadcast %cst_75 : f32 to vector<16x128xf32>
    %181 = arith.subf %180, %179 : vector<16x128xf32>
    %182 = arith.mulf %153, %181 : vector<16x128xf32>
    %cst_76 = arith.constant 1.000000e+00 : f32
    %183 = vector.broadcast %cst_76 : f32 to vector<16x128xf32>
    %184 = arith.addf %183, %182 : vector<16x128xf32>
    %185 = arith.mulf %146, %184 : vector<16x128xf32>
    %186 = arith.truncf %185 : vector<16x128xf32> to vector<16x128xbf16>
    %c0_77 = arith.constant 0 : index
    %c0_78 = arith.constant 0 : index
    %c0_79 = arith.constant 0 : index
    %187 = vector.load %arg8[%c0_77, %c0_78, %c0_79] : memref<2x128x64xbf16, #tpu.memory_space<vmem>>, vector<1x128x64xbf16>
    %188 = vector.shape_cast %187 : vector<1x128x64xbf16> to vector<128x64xbf16>
    %cst_80 = arith.constant dense<0.000000e+00> : vector<16x64xf32>
    %189 = tpu.matmul %186, %188, %cst_80 {dimension_numbers = #tpu.dot_dimension_numbers<[1], [0], [0], [1], [0, 0, 1, 1], [], []>} : vector<16x128xbf16>, vector<128x64xbf16>, vector<16x64xf32> -> vector<16x64xf32>
    %190 = vector.extract_strided_slice %3 {offsets = [0, 3, 0], sizes = [1, 1, 64], strides = [1, 1, 1]} : vector<2x6x64xf32> to vector<1x1x64xf32>
    %191 = vector.shape_cast %190 : vector<1x1x64xf32> to vector<1x64xf32>
    %192 = vector.broadcast %191 : vector<1x64xf32> to vector<16x64xf32>
    %193 = arith.addf %189, %192 : vector<16x64xf32>
    %194 = arith.addf %193, %137 : vector<16x64xf32>
    %195 = vector.extract_strided_slice %3 {offsets = [0, 4, 0], sizes = [1, 1, 64], strides = [1, 1, 1]} : vector<2x6x64xf32> to vector<1x1x64xf32>
    %196 = vector.shape_cast %195 : vector<1x1x64xf32> to vector<1x64xf32>
    %197 = vector.extract_strided_slice %3 {offsets = [0, 5, 0], sizes = [1, 1, 64], strides = [1, 1, 1]} : vector<2x6x64xf32> to vector<1x1x64xf32>
    %198 = vector.shape_cast %197 : vector<1x1x64xf32> to vector<1x64xf32>
    %cst_81 = arith.constant dense<0.000000e+00> : vector<16xf32>
    %199 = vector.multi_reduction <add>, %194, %cst_81 [1] : vector<16x64xf32> to vector<16xf32>
    %200 = vector.shape_cast %199 : vector<16xf32> to vector<16x1xf32>
    %cst_82 = arith.constant 6.400000e+01 : f32
    %201 = vector.broadcast %cst_82 : f32 to vector<16x1xf32>
    %202 = arith.divf %200, %201 : vector<16x1xf32>
    %203 = vector.broadcast %202 : vector<16x1xf32> to vector<16x64xf32>
    %204 = arith.subf %194, %203 : vector<16x64xf32>
    %205 = arith.mulf %204, %204 : vector<16x64xf32>
    %cst_83 = arith.constant dense<0.000000e+00> : vector<16xf32>
    %206 = vector.multi_reduction <add>, %205, %cst_83 [1] : vector<16x64xf32> to vector<16xf32>
    %207 = vector.shape_cast %206 : vector<16xf32> to vector<16x1xf32>
    %cst_84 = arith.constant 6.400000e+01 : f32
    %208 = vector.broadcast %cst_84 : f32 to vector<16x1xf32>
    %209 = arith.divf %207, %208 : vector<16x1xf32>
    %210 = vector.broadcast %202 : vector<16x1xf32> to vector<16x64xf32>
    %211 = arith.subf %194, %210 : vector<16x64xf32>
    %cst_85 = arith.constant 9.99999996E-13 : f32
    %212 = vector.broadcast %cst_85 : f32 to vector<16x1xf32>
    %213 = arith.addf %209, %212 : vector<16x1xf32>
    %214 = math.rsqrt %213 : vector<16x1xf32>
    %215 = vector.broadcast %214 : vector<16x1xf32> to vector<16x64xf32>
    %216 = arith.mulf %211, %215 : vector<16x64xf32>
    %217 = vector.broadcast %196 : vector<1x64xf32> to vector<16x64xf32>
    %218 = arith.mulf %216, %217 : vector<16x64xf32>
    %219 = vector.broadcast %198 : vector<1x64xf32> to vector<16x64xf32>
    %220 = arith.addf %218, %219 : vector<16x64xf32>
    %221 = arith.truncf %220 : vector<16x64xf32> to vector<16x64xbf16>
    %c1 = arith.constant 1 : index
    %c0_86 = arith.constant 0 : index
    %c0_87 = arith.constant 0 : index
    %222 = vector.load %arg3[%c1, %c0_86, %c0_87] : memref<2x64x192xbf16, #tpu.memory_space<vmem>>, vector<1x64x192xbf16>
    %223 = vector.shape_cast %222 : vector<1x64x192xbf16> to vector<64x192xbf16>
    %cst_88 = arith.constant dense<0.000000e+00> : vector<16x192xf32>
    %224 = tpu.matmul %221, %223, %cst_88 {dimension_numbers = #tpu.dot_dimension_numbers<[1], [0], [0], [1], [0, 0, 1, 1], [], []>} : vector<16x64xbf16>, vector<64x192xbf16>, vector<16x192xf32> -> vector<16x192xf32>
    %225 = vector.extract_strided_slice %1 {offsets = [1, 0], sizes = [1, 192], strides = [1, 1]} : vector<2x192xf32> to vector<1x192xf32>
    %226 = vector.broadcast %225 : vector<1x192xf32> to vector<16x192xf32>
    %227 = arith.addf %224, %226 : vector<16x192xf32>
    %228 = vector.extract_strided_slice %227 {offsets = [0, 0], sizes = [8, 32], strides = [1, 1]} : vector<16x192xf32> to vector<8x32xf32>
    %229 = arith.truncf %228 : vector<8x32xf32> to vector<8x32xbf16>
    %230 = vector.extract_strided_slice %227 {offsets = [0, 64], sizes = [8, 32], strides = [1, 1]} : vector<16x192xf32> to vector<8x32xf32>
    %231 = arith.truncf %230 : vector<8x32xf32> to vector<8x32xbf16>
    %cst_89 = arith.constant dense<0.000000e+00> : vector<8x8xf32>
    %232 = tpu.matmul %229, %231, %cst_89 {dimension_numbers = #tpu.dot_dimension_numbers<[1], [1], [0], [0], [0, 0, 1, 0], [], []>} : vector<8x32xbf16>, vector<8x32xbf16>, vector<8x8xf32> -> vector<8x8xf32>
    %c0_90 = arith.constant 0 : index
    %c0_91 = arith.constant 0 : index
    %233 = vector.load %arg16[%c0_90, %c0_91] : memref<32x8xf32, #tpu.memory_space<vmem>>, vector<8x8xf32>
    tpu.vector_store %arg16[%c0_90, %c0_91], %232 {strides = array<i32>} : memref<32x8xf32, #tpu.memory_space<vmem>>, vector<8x8xf32>,
    %234 = vector.extract_strided_slice %227 {offsets = [0, 32], sizes = [8, 32], strides = [1, 1]} : vector<16x192xf32> to vector<8x32xf32>
    %235 = arith.truncf %234 : vector<8x32xf32> to vector<8x32xbf16>
    %236 = vector.extract_strided_slice %227 {offsets = [0, 96], sizes = [8, 32], strides = [1, 1]} : vector<16x192xf32> to vector<8x32xf32>
    %237 = arith.truncf %236 : vector<8x32xf32> to vector<8x32xbf16>
    %cst_92 = arith.constant dense<0.000000e+00> : vector<8x8xf32>
    %238 = tpu.matmul %235, %237, %cst_92 {dimension_numbers = #tpu.dot_dimension_numbers<[1], [1], [0], [0], [0, 0, 1, 0], [], []>} : vector<8x32xbf16>, vector<8x32xbf16>, vector<8x8xf32> -> vector<8x8xf32>
    %c8_93 = arith.constant 8 : index
    %c0_94 = arith.constant 0 : index
    %239 = vector.load %arg16[%c8_93, %c0_94] : memref<32x8xf32, #tpu.memory_space<vmem>>, vector<8x8xf32>
    tpu.vector_store %arg16[%c8_93, %c0_94], %238 {strides = array<i32>} : memref<32x8xf32, #tpu.memory_space<vmem>>, vector<8x8xf32>,
    %240 = vector.extract_strided_slice %227 {offsets = [8, 0], sizes = [8, 32], strides = [1, 1]} : vector<16x192xf32> to vector<8x32xf32>
    %241 = arith.truncf %240 : vector<8x32xf32> to vector<8x32xbf16>
    %242 = vector.extract_strided_slice %227 {offsets = [8, 64], sizes = [8, 32], strides = [1, 1]} : vector<16x192xf32> to vector<8x32xf32>
    %243 = arith.truncf %242 : vector<8x32xf32> to vector<8x32xbf16>
    %cst_95 = arith.constant dense<0.000000e+00> : vector<8x8xf32>
    %244 = tpu.matmul %241, %243, %cst_95 {dimension_numbers = #tpu.dot_dimension_numbers<[1], [1], [0], [0], [0, 0, 1, 0], [], []>} : vector<8x32xbf16>, vector<8x32xbf16>, vector<8x8xf32> -> vector<8x8xf32>
    %c16_96 = arith.constant 16 : index
    %c0_97 = arith.constant 0 : index
    %245 = vector.load %arg16[%c16_96, %c0_97] : memref<32x8xf32, #tpu.memory_space<vmem>>, vector<8x8xf32>
    tpu.vector_store %arg16[%c16_96, %c0_97], %244 {strides = array<i32>} : memref<32x8xf32, #tpu.memory_space<vmem>>, vector<8x8xf32>,
    %246 = vector.extract_strided_slice %227 {offsets = [8, 32], sizes = [8, 32], strides = [1, 1]} : vector<16x192xf32> to vector<8x32xf32>
    %247 = arith.truncf %246 : vector<8x32xf32> to vector<8x32xbf16>
    %248 = vector.extract_strided_slice %227 {offsets = [8, 96], sizes = [8, 32], strides = [1, 1]} : vector<16x192xf32> to vector<8x32xf32>
    %249 = arith.truncf %248 : vector<8x32xf32> to vector<8x32xbf16>
    %cst_98 = arith.constant dense<0.000000e+00> : vector<8x8xf32>
    %250 = tpu.matmul %247, %249, %cst_98 {dimension_numbers = #tpu.dot_dimension_numbers<[1], [1], [0], [0], [0, 0, 1, 0], [], []>} : vector<8x32xbf16>, vector<8x32xbf16>, vector<8x8xf32> -> vector<8x8xf32>
    %c24_99 = arith.constant 24 : index
    %c0_100 = arith.constant 0 : index
    %251 = vector.load %arg16[%c24_99, %c0_100] : memref<32x8xf32, #tpu.memory_space<vmem>>, vector<8x8xf32>
    tpu.vector_store %arg16[%c24_99, %c0_100], %250 {strides = array<i32>} : memref<32x8xf32, #tpu.memory_space<vmem>>, vector<8x8xf32>,
    %c0_101 = arith.constant 0 : index
    %c0_102 = arith.constant 0 : index
    %252 = vector.load %arg16[%c0_101, %c0_102] : memref<32x8xf32, #tpu.memory_space<vmem>>, vector<32x8xf32>
    %253 = arith.addf %252, %12 : vector<32x8xf32>
    %cst_103 = arith.constant dense<0xFF800000> : vector<32xf32>
    %254 = vector.multi_reduction <maximumf>, %253, %cst_103 [1] : vector<32x8xf32> to vector<32xf32>
    %255 = vector.shape_cast %254 : vector<32xf32> to vector<32x1xf32>
    %256 = vector.broadcast %255 : vector<32x1xf32> to vector<32x8xf32>
    %257 = arith.subf %253, %256 : vector<32x8xf32>
    %258 = math.exp %257 : vector<32x8xf32>
    %cst_104 = arith.constant dense<0.000000e+00> : vector<32xf32>
    %259 = vector.multi_reduction <add>, %258, %cst_104 [1] : vector<32x8xf32> to vector<32xf32>
    %260 = vector.shape_cast %259 : vector<32xf32> to vector<32x1xf32>
    %261 = tpu.reciprocal %260 {approx = true} : vector<32x1xf32> -> vector<32x1xf32>
    %262 = vector.broadcast %261 : vector<32x1xf32> to vector<32x8xf32>
    %263 = arith.mulf %258, %262 : vector<32x8xf32>
    %264 = arith.truncf %263 : vector<32x8xf32> to vector<32x8xbf16>
    %265 = vector.extract_strided_slice %227 {offsets = [0, 128], sizes = [8, 32], strides = [1, 1]} : vector<16x192xf32> to vector<8x32xf32>
    %266 = arith.truncf %265 : vector<8x32xf32> to vector<8x32xbf16>
    %267 = vector.extract_strided_slice %264 {offsets = [0, 0], sizes = [8, 8], strides = [1, 1]} : vector<32x8xbf16> to vector<8x8xbf16>
    %cst_105 = arith.constant dense<0.000000e+00> : vector<8x32xf32>
    %268 = tpu.matmul %267, %266, %cst_105 {dimension_numbers = #tpu.dot_dimension_numbers<[1], [0], [0], [1], [0, 0, 1, 1], [], []>} : vector<8x8xbf16>, vector<8x32xbf16>, vector<8x32xf32> -> vector<8x32xf32>
    %c0_106 = arith.constant 0 : index
    %c0_107 = arith.constant 0 : index
    %269 = vector.load %arg17[%c0_106, %c0_107] : memref<16x64xf32, #tpu.memory_space<vmem>>, vector<8x32xf32>
    tpu.vector_store %arg17[%c0_106, %c0_107], %268 {strides = array<i32>} : memref<16x64xf32, #tpu.memory_space<vmem>>, vector<8x32xf32>,
    %270 = vector.extract_strided_slice %227 {offsets = [0, 160], sizes = [8, 32], strides = [1, 1]} : vector<16x192xf32> to vector<8x32xf32>
    %271 = arith.truncf %270 : vector<8x32xf32> to vector<8x32xbf16>
    %272 = vector.extract_strided_slice %264 {offsets = [8, 0], sizes = [8, 8], strides = [1, 1]} : vector<32x8xbf16> to vector<8x8xbf16>
    %cst_108 = arith.constant dense<0.000000e+00> : vector<8x32xf32>
    %273 = tpu.matmul %272, %271, %cst_108 {dimension_numbers = #tpu.dot_dimension_numbers<[1], [0], [0], [1], [0, 0, 1, 1], [], []>} : vector<8x8xbf16>, vector<8x32xbf16>, vector<8x32xf32> -> vector<8x32xf32>
    %c0_109 = arith.constant 0 : index
    %c32_110 = arith.constant 32 : index
    %274 = vector.load %arg17[%c0_109, %c32_110] : memref<16x64xf32, #tpu.memory_space<vmem>>, vector<8x32xf32>
    tpu.vector_store %arg17[%c0_109, %c32_110], %273 {strides = array<i32>} : memref<16x64xf32, #tpu.memory_space<vmem>>, vector<8x32xf32>,
    %275 = vector.extract_strided_slice %227 {offsets = [8, 128], sizes = [8, 32], strides = [1, 1]} : vector<16x192xf32> to vector<8x32xf32>
    %276 = arith.truncf %275 : vector<8x32xf32> to vector<8x32xbf16>
    %277 = vector.extract_strided_slice %264 {offsets = [16, 0], sizes = [8, 8], strides = [1, 1]} : vector<32x8xbf16> to vector<8x8xbf16>
    %cst_111 = arith.constant dense<0.000000e+00> : vector<8x32xf32>
    %278 = tpu.matmul %277, %276, %cst_111 {dimension_numbers = #tpu.dot_dimension_numbers<[1], [0], [0], [1], [0, 0, 1, 1], [], []>} : vector<8x8xbf16>, vector<8x32xbf16>, vector<8x32xf32> -> vector<8x32xf32>
    %c8_112 = arith.constant 8 : index
    %c0_113 = arith.constant 0 : index
    %279 = vector.load %arg17[%c8_112, %c0_113] : memref<16x64xf32, #tpu.memory_space<vmem>>, vector<8x32xf32>
    tpu.vector_store %arg17[%c8_112, %c0_113], %278 {strides = array<i32>} : memref<16x64xf32, #tpu.memory_space<vmem>>, vector<8x32xf32>,
    %280 = vector.extract_strided_slice %227 {offsets = [8, 160], sizes = [8, 32], strides = [1, 1]} : vector<16x192xf32> to vector<8x32xf32>
    %281 = arith.truncf %280 : vector<8x32xf32> to vector<8x32xbf16>
    %282 = vector.extract_strided_slice %264 {offsets = [24, 0], sizes = [8, 8], strides = [1, 1]} : vector<32x8xbf16> to vector<8x8xbf16>
    %cst_114 = arith.constant dense<0.000000e+00> : vector<8x32xf32>
    %283 = tpu.matmul %282, %281, %cst_114 {dimension_numbers = #tpu.dot_dimension_numbers<[1], [0], [0], [1], [0, 0, 1, 1], [], []>} : vector<8x8xbf16>, vector<8x32xbf16>, vector<8x32xf32> -> vector<8x32xf32>
    %c8_115 = arith.constant 8 : index
    %c32_116 = arith.constant 32 : index
    %284 = vector.load %arg17[%c8_115, %c32_116] : memref<16x64xf32, #tpu.memory_space<vmem>>, vector<8x32xf32>
    tpu.vector_store %arg17[%c8_115, %c32_116], %283 {strides = array<i32>} : memref<16x64xf32, #tpu.memory_space<vmem>>, vector<8x32xf32>,
    %c0_117 = arith.constant 0 : index
    %c0_118 = arith.constant 0 : index
    %285 = vector.load %arg17[%c0_117, %c0_118] : memref<16x64xf32, #tpu.memory_space<vmem>>, vector<16x64xf32>
    %286 = arith.truncf %285 : vector<16x64xf32> to vector<16x64xbf16>
    %c1_119 = arith.constant 1 : index
    %c0_120 = arith.constant 0 : index
    %c0_121 = arith.constant 0 : index
    %287 = vector.load %arg5[%c1_119, %c0_120, %c0_121] : memref<2x64x64xbf16, #tpu.memory_space<vmem>>, vector<1x64x64xbf16>
    %288 = vector.shape_cast %287 : vector<1x64x64xbf16> to vector<64x64xbf16>
    %cst_122 = arith.constant dense<0.000000e+00> : vector<16x64xf32>
    %289 = tpu.matmul %286, %288, %cst_122 {dimension_numbers = #tpu.dot_dimension_numbers<[1], [0], [0], [1], [0, 0, 1, 1], [], []>} : vector<16x64xbf16>, vector<64x64xbf16>, vector<16x64xf32> -> vector<16x64xf32>
    %290 = vector.extract_strided_slice %3 {offsets = [1, 0, 0], sizes = [1, 1, 64], strides = [1, 1, 1]} : vector<2x6x64xf32> to vector<1x1x64xf32>
    %291 = vector.shape_cast %290 : vector<1x1x64xf32> to vector<1x64xf32>
    %292 = vector.broadcast %291 : vector<1x64xf32> to vector<16x64xf32>
    %293 = arith.addf %289, %292 : vector<16x64xf32>
    %294 = arith.addf %293, %220 : vector<16x64xf32>
    %295 = vector.extract_strided_slice %3 {offsets = [1, 1, 0], sizes = [1, 1, 64], strides = [1, 1, 1]} : vector<2x6x64xf32> to vector<1x1x64xf32>
    %296 = vector.shape_cast %295 : vector<1x1x64xf32> to vector<1x64xf32>
    %297 = vector.extract_strided_slice %3 {offsets = [1, 2, 0], sizes = [1, 1, 64], strides = [1, 1, 1]} : vector<2x6x64xf32> to vector<1x1x64xf32>
    %298 = vector.shape_cast %297 : vector<1x1x64xf32> to vector<1x64xf32>
    %cst_123 = arith.constant dense<0.000000e+00> : vector<16xf32>
    %299 = vector.multi_reduction <add>, %294, %cst_123 [1] : vector<16x64xf32> to vector<16xf32>
    %300 = vector.shape_cast %299 : vector<16xf32> to vector<16x1xf32>
    %cst_124 = arith.constant 6.400000e+01 : f32
    %301 = vector.broadcast %cst_124 : f32 to vector<16x1xf32>
    %302 = arith.divf %300, %301 : vector<16x1xf32>
    %303 = vector.broadcast %302 : vector<16x1xf32> to vector<16x64xf32>
    %304 = arith.subf %294, %303 : vector<16x64xf32>
    %305 = arith.mulf %304, %304 : vector<16x64xf32>
    %cst_125 = arith.constant dense<0.000000e+00> : vector<16xf32>
    %306 = vector.multi_reduction <add>, %305, %cst_125 [1] : vector<16x64xf32> to vector<16xf32>
    %307 = vector.shape_cast %306 : vector<16xf32> to vector<16x1xf32>
    %cst_126 = arith.constant 6.400000e+01 : f32
    %308 = vector.broadcast %cst_126 : f32 to vector<16x1xf32>
    %309 = arith.divf %307, %308 : vector<16x1xf32>
    %310 = vector.broadcast %302 : vector<16x1xf32> to vector<16x64xf32>
    %311 = arith.subf %294, %310 : vector<16x64xf32>
    %cst_127 = arith.constant 9.99999996E-13 : f32
    %312 = vector.broadcast %cst_127 : f32 to vector<16x1xf32>
    %313 = arith.addf %309, %312 : vector<16x1xf32>
    %314 = math.rsqrt %313 : vector<16x1xf32>
    %315 = vector.broadcast %314 : vector<16x1xf32> to vector<16x64xf32>
    %316 = arith.mulf %311, %315 : vector<16x64xf32>
    %317 = vector.broadcast %296 : vector<1x64xf32> to vector<16x64xf32>
    %318 = arith.mulf %316, %317 : vector<16x64xf32>
    %319 = vector.broadcast %298 : vector<1x64xf32> to vector<16x64xf32>
    %320 = arith.addf %318, %319 : vector<16x64xf32>
    %321 = arith.truncf %320 : vector<16x64xf32> to vector<16x64xbf16>
    %c1_128 = arith.constant 1 : index
    %c0_129 = arith.constant 0 : index
    %c0_130 = arith.constant 0 : index
    %322 = vector.load %arg6[%c1_128, %c0_129, %c0_130] : memref<2x64x128xbf16, #tpu.memory_space<vmem>>, vector<1x64x128xbf16>
    %323 = vector.shape_cast %322 : vector<1x64x128xbf16> to vector<64x128xbf16>
    %cst_131 = arith.constant dense<0.000000e+00> : vector<16x128xf32>
    %324 = tpu.matmul %321, %323, %cst_131 {dimension_numbers = #tpu.dot_dimension_numbers<[1], [0], [0], [1], [0, 0, 1, 1], [], []>} : vector<16x64xbf16>, vector<64x128xbf16>, vector<16x128xf32> -> vector<16x128xf32>
    %325 = vector.extract_strided_slice %2 {offsets = [1, 0], sizes = [1, 128], strides = [1, 1]} : vector<2x128xf32> to vector<1x128xf32>
    %326 = vector.broadcast %325 : vector<1x128xf32> to vector<16x128xf32>
    %327 = arith.addf %324, %326 : vector<16x128xf32>
    %cst_132 = arith.constant 5.000000e-01 : f32
    %328 = vector.broadcast %cst_132 : f32 to vector<16x128xf32>
    %329 = arith.mulf %328, %327 : vector<16x128xf32>
    %cst_133 = arith.constant 0.707106769 : f32
    %330 = vector.broadcast %cst_133 : f32 to vector<16x128xf32>
    %331 = arith.mulf %327, %330 : vector<16x128xf32>
    %cst_134 = arith.constant 0.000000e+00 : f32
    %332 = vector.broadcast %cst_134 : f32 to vector<16x128xf32>
    %333 = arith.cmpf oge, %331, %332 : vector<16x128xf32>
    %cst_135 = arith.constant 1.000000e+00 : f32
    %cst_136 = arith.constant -1.000000e+00 : f32
    %334 = vector.broadcast %cst_135 : f32 to vector<16x128xf32>
    %335 = vector.broadcast %cst_136 : f32 to vector<16x128xf32>
    %336 = arith.select %333, %334, %335 : vector<16x128xi1>, vector<16x128xf32>
    %337 = math.absf %331 : vector<16x128xf32>
    %cst_137 = arith.constant 0.327591091 : f32
    %338 = vector.broadcast %cst_137 : f32 to vector<16x128xf32>
    %339 = arith.mulf %338, %337 : vector<16x128xf32>
    %cst_138 = arith.constant 1.000000e+00 : f32
    %340 = vector.broadcast %cst_138 : f32 to vector<16x128xf32>
    %341 = arith.addf %340, %339 : vector<16x128xf32>
    %cst_139 = arith.constant 1.000000e+00 : f32
    %342 = vector.broadcast %cst_139 : f32 to vector<16x128xf32>
    %343 = arith.divf %342, %341 : vector<16x128xf32>
    %cst_140 = arith.constant 1.06140542 : f32
    %344 = vector.broadcast %cst_140 : f32 to vector<16x128xf32>
    %345 = arith.mulf %344, %343 : vector<16x128xf32>
    %cst_141 = arith.constant -1.45315206 : f32
    %346 = vector.broadcast %cst_141 : f32 to vector<16x128xf32>
    %347 = arith.addf %345, %346 : vector<16x128xf32>
    %348 = arith.mulf %347, %343 : vector<16x128xf32>
    %cst_142 = arith.constant 1.42141378 : f32
    %349 = vector.broadcast %cst_142 : f32 to vector<16x128xf32>
    %350 = arith.addf %348, %349 : vector<16x128xf32>
    %351 = arith.mulf %350, %343 : vector<16x128xf32>
    %cst_143 = arith.constant -0.284496725 : f32
    %352 = vector.broadcast %cst_143 : f32 to vector<16x128xf32>
    %353 = arith.addf %351, %352 : vector<16x128xf32>
    %354 = arith.mulf %353, %343 : vector<16x128xf32>
    %cst_144 = arith.constant 0.254829586 : f32
    %355 = vector.broadcast %cst_144 : f32 to vector<16x128xf32>
    %356 = arith.addf %354, %355 : vector<16x128xf32>
    %357 = arith.mulf %356, %343 : vector<16x128xf32>
    %cst_145 = arith.constant 0.000000e+00 : f32
    %358 = vector.broadcast %cst_145 : f32 to vector<16x128xf32>
    %359 = arith.subf %358, %337 : vector<16x128xf32>
    %360 = arith.mulf %359, %337 : vector<16x128xf32>
    %361 = math.exp %360 : vector<16x128xf32>
    %362 = arith.mulf %357, %361 : vector<16x128xf32>
    %cst_146 = arith.constant 1.000000e+00 : f32
    %363 = vector.broadcast %cst_146 : f32 to vector<16x128xf32>
    %364 = arith.subf %363, %362 : vector<16x128xf32>
    %365 = arith.mulf %336, %364 : vector<16x128xf32>
    %cst_147 = arith.constant 1.000000e+00 : f32
    %366 = vector.broadcast %cst_147 : f32 to vector<16x128xf32>
    %367 = arith.addf %366, %365 : vector<16x128xf32>
    %368 = arith.mulf %329, %367 : vector<16x128xf32>
    %369 = arith.truncf %368 : vector<16x128xf32> to vector<16x128xbf16>
    %c1_148 = arith.constant 1 : index
    %c0_149 = arith.constant 0 : index
    %c0_150 = arith.constant 0 : index
    %370 = vector.load %arg8[%c1_148, %c0_149, %c0_150] : memref<2x128x64xbf16, #tpu.memory_space<vmem>>, vector<1x128x64xbf16>
    %371 = vector.shape_cast %370 : vector<1x128x64xbf16> to vector<128x64xbf16>
    %cst_151 = arith.constant dense<0.000000e+00> : vector<16x64xf32>
    %372 = tpu.matmul %369, %371, %cst_151 {dimension_numbers = #tpu.dot_dimension_numbers<[1], [0], [0], [1], [0, 0, 1, 1], [], []>} : vector<16x128xbf16>, vector<128x64xbf16>, vector<16x64xf32> -> vector<16x64xf32>
    %373 = vector.extract_strided_slice %3 {offsets = [1, 3, 0], sizes = [1, 1, 64], strides = [1, 1, 1]} : vector<2x6x64xf32> to vector<1x1x64xf32>
    %374 = vector.shape_cast %373 : vector<1x1x64xf32> to vector<1x64xf32>
    %375 = vector.broadcast %374 : vector<1x64xf32> to vector<16x64xf32>
    %376 = arith.addf %372, %375 : vector<16x64xf32>
    %377 = arith.addf %376, %320 : vector<16x64xf32>
    %378 = vector.extract_strided_slice %3 {offsets = [1, 4, 0], sizes = [1, 1, 64], strides = [1, 1, 1]} : vector<2x6x64xf32> to vector<1x1x64xf32>
    %379 = vector.shape_cast %378 : vector<1x1x64xf32> to vector<1x64xf32>
    %380 = vector.extract_strided_slice %3 {offsets = [1, 5, 0], sizes = [1, 1, 64], strides = [1, 1, 1]} : vector<2x6x64xf32> to vector<1x1x64xf32>
    %381 = vector.shape_cast %380 : vector<1x1x64xf32> to vector<1x64xf32>
    %cst_152 = arith.constant dense<0.000000e+00> : vector<16xf32>
    %382 = vector.multi_reduction <add>, %377, %cst_152 [1] : vector<16x64xf32> to vector<16xf32>
    %383 = vector.shape_cast %382 : vector<16xf32> to vector<16x1xf32>
    %cst_153 = arith.constant 6.400000e+01 : f32
    %384 = vector.broadcast %cst_153 : f32 to vector<16x1xf32>
    %385 = arith.divf %383, %384 : vector<16x1xf32>
    %386 = vector.broadcast %385 : vector<16x1xf32> to vector<16x64xf32>
    %387 = arith.subf %377, %386 : vector<16x64xf32>
    %388 = arith.mulf %387, %387 : vector<16x64xf32>
    %cst_154 = arith.constant dense<0.000000e+00> : vector<16xf32>
    %389 = vector.multi_reduction <add>, %388, %cst_154 [1] : vector<16x64xf32> to vector<16xf32>
    %390 = vector.shape_cast %389 : vector<16xf32> to vector<16x1xf32>
    %cst_155 = arith.constant 6.400000e+01 : f32
    %391 = vector.broadcast %cst_155 : f32 to vector<16x1xf32>
    %392 = arith.divf %390, %391 : vector<16x1xf32>
    %393 = vector.broadcast %385 : vector<16x1xf32> to vector<16x64xf32>
    %394 = arith.subf %377, %393 : vector<16x64xf32>
    %cst_156 = arith.constant 9.99999996E-13 : f32
    %395 = vector.broadcast %cst_156 : f32 to vector<16x1xf32>
    %396 = arith.addf %392, %395 : vector<16x1xf32>
    %397 = math.rsqrt %396 : vector<16x1xf32>
    %398 = vector.broadcast %397 : vector<16x1xf32> to vector<16x64xf32>
    %399 = arith.mulf %394, %398 : vector<16x64xf32>
    %400 = vector.broadcast %379 : vector<1x64xf32> to vector<16x64xf32>
    %401 = arith.mulf %399, %400 : vector<16x64xf32>
    %402 = vector.broadcast %381 : vector<1x64xf32> to vector<16x64xf32>
    %403 = arith.addf %401, %402 : vector<16x64xf32>
    %404 = vector.extract_strided_slice %403 {offsets = [0, 0], sizes = [1, 64], strides = [1, 1]} : vector<16x64xf32> to vector<1x64xf32>
    %c0_157 = arith.constant 0 : index
    %c0_158 = arith.constant 0 : index
    %405 = vector.load %arg18[%c0_157, %c0_158] : memref<16x64xf32, #tpu.memory_space<vmem>>, vector<1x64xf32>
    tpu.vector_store %arg18[%c0_157, %c0_158], %404 {strides = array<i32>} : memref<16x64xf32, #tpu.memory_space<vmem>>, vector<1x64xf32>,
    %406 = vector.extract_strided_slice %403 {offsets = [1, 0], sizes = [1, 64], strides = [1, 1]} : vector<16x64xf32> to vector<1x64xf32>
    %c2 = arith.constant 2 : index
    %c0_159 = arith.constant 0 : index
    %407 = vector.load %arg18[%c2, %c0_159] : memref<16x64xf32, #tpu.memory_space<vmem>>, vector<1x64xf32>
    tpu.vector_store %arg18[%c2, %c0_159], %406 {strides = array<i32>} : memref<16x64xf32, #tpu.memory_space<vmem>>, vector<1x64xf32>,
    %408 = vector.extract_strided_slice %403 {offsets = [2, 0], sizes = [1, 64], strides = [1, 1]} : vector<16x64xf32> to vector<1x64xf32>
    %c4 = arith.constant 4 : index
    %c0_160 = arith.constant 0 : index
    %409 = vector.load %arg18[%c4, %c0_160] : memref<16x64xf32, #tpu.memory_space<vmem>>, vector<1x64xf32>
    tpu.vector_store %arg18[%c4, %c0_160], %408 {strides = array<i32>} : memref<16x64xf32, #tpu.memory_space<vmem>>, vector<1x64xf32>,
    %410 = vector.extract_strided_slice %403 {offsets = [3, 0], sizes = [1, 64], strides = [1, 1]} : vector<16x64xf32> to vector<1x64xf32>
    %c6 = arith.constant 6 : index
    %c0_161 = arith.constant 0 : index
    %411 = vector.load %arg18[%c6, %c0_161] : memref<16x64xf32, #tpu.memory_space<vmem>>, vector<1x64xf32>
    tpu.vector_store %arg18[%c6, %c0_161], %410 {strides = array<i32>} : memref<16x64xf32, #tpu.memory_space<vmem>>, vector<1x64xf32>,
    %412 = vector.extract_strided_slice %403 {offsets = [4, 0], sizes = [1, 64], strides = [1, 1]} : vector<16x64xf32> to vector<1x64xf32>
    %c8_162 = arith.constant 8 : index
    %c0_163 = arith.constant 0 : index
    %413 = vector.load %arg18[%c8_162, %c0_163] : memref<16x64xf32, #tpu.memory_space<vmem>>, vector<1x64xf32>
    tpu.vector_store %arg18[%c8_162, %c0_163], %412 {strides = array<i32>} : memref<16x64xf32, #tpu.memory_space<vmem>>, vector<1x64xf32>,
    %414 = vector.extract_strided_slice %403 {offsets = [5, 0], sizes = [1, 64], strides = [1, 1]} : vector<16x64xf32> to vector<1x64xf32>
    %c10 = arith.constant 10 : index
    %c0_164 = arith.constant 0 : index
    %415 = vector.load %arg18[%c10, %c0_164] : memref<16x64xf32, #tpu.memory_space<vmem>>, vector<1x64xf32>
    tpu.vector_store %arg18[%c10, %c0_164], %414 {strides = array<i32>} : memref<16x64xf32, #tpu.memory_space<vmem>>, vector<1x64xf32>,
    %416 = vector.extract_strided_slice %403 {offsets = [6, 0], sizes = [1, 64], strides = [1, 1]} : vector<16x64xf32> to vector<1x64xf32>
    %c12 = arith.constant 12 : index
    %c0_165 = arith.constant 0 : index
    %417 = vector.load %arg18[%c12, %c0_165] : memref<16x64xf32, #tpu.memory_space<vmem>>, vector<1x64xf32>
    tpu.vector_store %arg18[%c12, %c0_165], %416 {strides = array<i32>} : memref<16x64xf32, #tpu.memory_space<vmem>>, vector<1x64xf32>,
    %418 = vector.extract_strided_slice %403 {offsets = [7, 0], sizes = [1, 64], strides = [1, 1]} : vector<16x64xf32> to vector<1x64xf32>
    %c14 = arith.constant 14 : index
    %c0_166 = arith.constant 0 : index
    %419 = vector.load %arg18[%c14, %c0_166] : memref<16x64xf32, #tpu.memory_space<vmem>>, vector<1x64xf32>
    tpu.vector_store %arg18[%c14, %c0_166], %418 {strides = array<i32>} : memref<16x64xf32, #tpu.memory_space<vmem>>, vector<1x64xf32>,
    %420 = vector.extract_strided_slice %403 {offsets = [8, 0], sizes = [1, 64], strides = [1, 1]} : vector<16x64xf32> to vector<1x64xf32>
    %c1_167 = arith.constant 1 : index
    %c0_168 = arith.constant 0 : index
    %421 = vector.load %arg18[%c1_167, %c0_168] : memref<16x64xf32, #tpu.memory_space<vmem>>, vector<1x64xf32>
    tpu.vector_store %arg18[%c1_167, %c0_168], %420 {strides = array<i32>} : memref<16x64xf32, #tpu.memory_space<vmem>>, vector<1x64xf32>,
    %422 = vector.extract_strided_slice %403 {offsets = [9, 0], sizes = [1, 64], strides = [1, 1]} : vector<16x64xf32> to vector<1x64xf32>
    %c3 = arith.constant 3 : index
    %c0_169 = arith.constant 0 : index
    %423 = vector.load %arg18[%c3, %c0_169] : memref<16x64xf32, #tpu.memory_space<vmem>>, vector<1x64xf32>
    tpu.vector_store %arg18[%c3, %c0_169], %422 {strides = array<i32>} : memref<16x64xf32, #tpu.memory_space<vmem>>, vector<1x64xf32>,
    %424 = vector.extract_strided_slice %403 {offsets = [10, 0], sizes = [1, 64], strides = [1, 1]} : vector<16x64xf32> to vector<1x64xf32>
    %c5 = arith.constant 5 : index
    %c0_170 = arith.constant 0 : index
    %425 = vector.load %arg18[%c5, %c0_170] : memref<16x64xf32, #tpu.memory_space<vmem>>, vector<1x64xf32>
    tpu.vector_store %arg18[%c5, %c0_170], %424 {strides = array<i32>} : memref<16x64xf32, #tpu.memory_space<vmem>>, vector<1x64xf32>,
    %426 = vector.extract_strided_slice %403 {offsets = [11, 0], sizes = [1, 64], strides = [1, 1]} : vector<16x64xf32> to vector<1x64xf32>
    %c7 = arith.constant 7 : index
    %c0_171 = arith.constant 0 : index
    %427 = vector.load %arg18[%c7, %c0_171] : memref<16x64xf32, #tpu.memory_space<vmem>>, vector<1x64xf32>
    tpu.vector_store %arg18[%c7, %c0_171], %426 {strides = array<i32>} : memref<16x64xf32, #tpu.memory_space<vmem>>, vector<1x64xf32>,
    %428 = vector.extract_strided_slice %403 {offsets = [12, 0], sizes = [1, 64], strides = [1, 1]} : vector<16x64xf32> to vector<1x64xf32>
    %c9 = arith.constant 9 : index
    %c0_172 = arith.constant 0 : index
    %429 = vector.load %arg18[%c9, %c0_172] : memref<16x64xf32, #tpu.memory_space<vmem>>, vector<1x64xf32>
    tpu.vector_store %arg18[%c9, %c0_172], %428 {strides = array<i32>} : memref<16x64xf32, #tpu.memory_space<vmem>>, vector<1x64xf32>,
    %430 = vector.extract_strided_slice %403 {offsets = [13, 0], sizes = [1, 64], strides = [1, 1]} : vector<16x64xf32> to vector<1x64xf32>
    %c11 = arith.constant 11 : index
    %c0_173 = arith.constant 0 : index
    %431 = vector.load %arg18[%c11, %c0_173] : memref<16x64xf32, #tpu.memory_space<vmem>>, vector<1x64xf32>
    tpu.vector_store %arg18[%c11, %c0_173], %430 {strides = array<i32>} : memref<16x64xf32, #tpu.memory_space<vmem>>, vector<1x64xf32>,
    %432 = vector.extract_strided_slice %403 {offsets = [14, 0], sizes = [1, 64], strides = [1, 1]} : vector<16x64xf32> to vector<1x64xf32>
    %c13 = arith.constant 13 : index
    %c0_174 = arith.constant 0 : index
    %433 = vector.load %arg18[%c13, %c0_174] : memref<16x64xf32, #tpu.memory_space<vmem>>, vector<1x64xf32>
    tpu.vector_store %arg18[%c13, %c0_174], %432 {strides = array<i32>} : memref<16x64xf32, #tpu.memory_space<vmem>>, vector<1x64xf32>,
    %434 = vector.extract_strided_slice %403 {offsets = [15, 0], sizes = [1, 64], strides = [1, 1]} : vector<16x64xf32> to vector<1x64xf32>
    %c15 = arith.constant 15 : index
    %c0_175 = arith.constant 0 : index
    %435 = vector.load %arg18[%c15, %c0_175] : memref<16x64xf32, #tpu.memory_space<vmem>>, vector<1x64xf32>
    tpu.vector_store %arg18[%c15, %c0_175], %434 {strides = array<i32>} : memref<16x64xf32, #tpu.memory_space<vmem>>, vector<1x64xf32>,
    %c0_176 = arith.constant 0 : index
    %c0_177 = arith.constant 0 : index
    %436 = vector.load %arg18[%c0_176, %c0_177] : memref<16x64xf32, #tpu.memory_space<vmem>>, vector<16x64xf32>
    %437 = arith.truncf %436 : vector<16x64xf32> to vector<16x64xbf16>
    %c0_178 = arith.constant 0 : index
    %c0_179 = arith.constant 0 : index
    %c0_180 = arith.constant 0 : index
    %438 = vector.load %arg10[%c0_178, %c0_179, %c0_180] : memref<2x64x256xbf16, #tpu.memory_space<vmem>>, vector<1x64x256xbf16>
    %439 = vector.shape_cast %438 : vector<1x64x256xbf16> to vector<64x256xbf16>
    %cst_181 = arith.constant dense<0.000000e+00> : vector<16x256xf32>
    %440 = tpu.matmul %437, %439, %cst_181 {dimension_numbers = #tpu.dot_dimension_numbers<[1], [0], [0], [1], [0, 0, 1, 1], [], []>} : vector<16x64xbf16>, vector<64x256xbf16>, vector<16x256xf32> -> vector<16x256xf32>
    %441 = vector.extract_strided_slice %4 {offsets = [0, 0], sizes = [1, 256], strides = [1, 1]} : vector<2x256xf32> to vector<1x256xf32>
    %442 = vector.broadcast %441 : vector<1x256xf32> to vector<16x256xf32>
    %443 = arith.addf %440, %442 : vector<16x256xf32>
    %c0_182 = arith.constant 0 : index
    %c0_183 = arith.constant 0 : index
    %c0_184 = arith.constant 0 : index
    %444 = vector.load %arg12[%c0_182, %c0_183, %c0_184] : memref<2x32x256xbf16, #tpu.memory_space<vmem>>, vector<1x32x256xbf16>
    %445 = vector.shape_cast %444 : vector<1x32x256xbf16> to vector<32x256xbf16>
    %cst_185 = arith.constant 0.000000e+00 : f32
    %446 = vector.broadcast %cst_185 : f32 to vector<4x32xf32>
    %cst_186 = arith.constant 0.000000e+00 : f32
    %447 = vector.broadcast %cst_186 : f32 to vector<4x32xf32>
    %448 = arith.truncf %446 : vector<4x32xf32> to vector<4x32xbf16>
    %cst_187 = arith.constant dense<0.000000e+00> : vector<4x256xf32>
    %449 = tpu.matmul %448, %445, %cst_187 {dimension_numbers = #tpu.dot_dimension_numbers<[1], [0], [0], [1], [0, 0, 1, 1], [], []>} : vector<4x32xbf16>, vector<32x256xbf16>, vector<4x256xf32> -> vector<4x256xf32>
    %450 = vector.extract_strided_slice %443 {offsets = [0, 0], sizes = [2, 128], strides = [1, 1]} : vector<16x256xf32> to vector<2x128xf32>
    %451 = vector.extract_strided_slice %449 {offsets = [0, 0], sizes = [2, 128], strides = [1, 1]} : vector<4x256xf32> to vector<2x128xf32>
    %452 = arith.addf %450, %451 : vector<2x128xf32>
    %453 = vector.extract_strided_slice %443 {offsets = [14, 128], sizes = [2, 128], strides = [1, 1]} : vector<16x256xf32> to vector<2x128xf32>
    %454 = vector.extract_strided_slice %449 {offsets = [2, 128], sizes = [2, 128], strides = [1, 1]} : vector<4x256xf32> to vector<2x128xf32>
    %455 = arith.addf %453, %454 : vector<2x128xf32>
    %456 = tpu.concatenate %452, %455 in 0 : vector<2x128xf32>, vector<2x128xf32> -> vector<4x128xf32>
    %457 = vector.extract_strided_slice %456 {offsets = [0, 0], sizes = [4, 32], strides = [1, 1]} : vector<4x128xf32> to vector<4x32xf32>
    %458 = arith.negf %457 : vector<4x32xf32>
    %459 = math.exp %458 : vector<4x32xf32>
    %cst_188 = arith.constant 1.000000e+00 : f32
    %460 = vector.broadcast %cst_188 : f32 to vector<4x32xf32>
    %461 = arith.addf %460, %459 : vector<4x32xf32>
    %462 = arith.divf %460, %461 : vector<4x32xf32>
    %463 = vector.extract_strided_slice %456 {offsets = [0, 32], sizes = [4, 32], strides = [1, 1]} : vector<4x128xf32> to vector<4x32xf32>
    %464 = arith.negf %463 : vector<4x32xf32>
    %465 = math.exp %464 : vector<4x32xf32>
    %cst_189 = arith.constant 1.000000e+00 : f32
    %466 = vector.broadcast %cst_189 : f32 to vector<4x32xf32>
    %467 = arith.addf %466, %465 : vector<4x32xf32>
    %468 = arith.divf %466, %467 : vector<4x32xf32>
    %469 = vector.extract_strided_slice %456 {offsets = [0, 64], sizes = [4, 32], strides = [1, 1]} : vector<4x128xf32> to vector<4x32xf32>
    %470 = math.tanh %469 : vector<4x32xf32>
    %471 = vector.extract_strided_slice %456 {offsets = [0, 96], sizes = [4, 32], strides = [1, 1]} : vector<4x128xf32> to vector<4x32xf32>
    %472 = arith.negf %471 : vector<4x32xf32>
    %473 = math.exp %472 : vector<4x32xf32>
    %cst_190 = arith.constant 1.000000e+00 : f32
    %474 = vector.broadcast %cst_190 : f32 to vector<4x32xf32>
    %475 = arith.addf %474, %473 : vector<4x32xf32>
    %476 = arith.divf %474, %475 : vector<4x32xf32>
    %477 = arith.mulf %468, %447 : vector<4x32xf32>
    %478 = arith.mulf %462, %470 : vector<4x32xf32>
    %479 = arith.addf %477, %478 : vector<4x32xf32>
    %480 = math.tanh %479 : vector<4x32xf32>
    %481 = arith.mulf %476, %480 : vector<4x32xf32>
    %482 = vector.extract_strided_slice %481 {offsets = [0, 0], sizes = [2, 32], strides = [1, 1]} : vector<4x32xf32> to vector<2x32xf32>
    %c0_191 = arith.constant 0 : index
    %c0_192 = arith.constant 0 : index
    %483 = vector.load %arg19[%c0_191, %c0_192] : memref<16x64xf32, #tpu.memory_space<vmem>>, vector<2x32xf32>
    tpu.vector_store %arg19[%c0_191, %c0_192], %482 {strides = array<i32>} : memref<16x64xf32, #tpu.memory_space<vmem>>, vector<2x32xf32>,
    %484 = vector.extract_strided_slice %481 {offsets = [2, 0], sizes = [2, 32], strides = [1, 1]} : vector<4x32xf32> to vector<2x32xf32>
    %c14_193 = arith.constant 14 : index
    %c32_194 = arith.constant 32 : index
    %485 = vector.load %arg19[%c14_193, %c32_194] : memref<16x64xf32, #tpu.memory_space<vmem>>, vector<2x32xf32>
    tpu.vector_store %arg19[%c14_193, %c32_194], %484 {strides = array<i32>} : memref<16x64xf32, #tpu.memory_space<vmem>>, vector<2x32xf32>,
    %486 = arith.truncf %481 : vector<4x32xf32> to vector<4x32xbf16>
    %cst_195 = arith.constant dense<0.000000e+00> : vector<4x256xf32>
    %487 = tpu.matmul %486, %445, %cst_195 {dimension_numbers = #tpu.dot_dimension_numbers<[1], [0], [0], [1], [0, 0, 1, 1], [], []>} : vector<4x32xbf16>, vector<32x256xbf16>, vector<4x256xf32> -> vector<4x256xf32>
    %488 = vector.extract_strided_slice %443 {offsets = [2, 0], sizes = [2, 128], strides = [1, 1]} : vector<16x256xf32> to vector<2x128xf32>
    %489 = vector.extract_strided_slice %487 {offsets = [0, 0], sizes = [2, 128], strides = [1, 1]} : vector<4x256xf32> to vector<2x128xf32>
    %490 = arith.addf %488, %489 : vector<2x128xf32>
    %491 = vector.extract_strided_slice %443 {offsets = [12, 128], sizes = [2, 128], strides = [1, 1]} : vector<16x256xf32> to vector<2x128xf32>
    %492 = vector.extract_strided_slice %487 {offsets = [2, 128], sizes = [2, 128], strides = [1, 1]} : vector<4x256xf32> to vector<2x128xf32>
    %493 = arith.addf %491, %492 : vector<2x128xf32>
    %494 = tpu.concatenate %490, %493 in 0 : vector<2x128xf32>, vector<2x128xf32> -> vector<4x128xf32>
    %495 = vector.extract_strided_slice %494 {offsets = [0, 0], sizes = [4, 32], strides = [1, 1]} : vector<4x128xf32> to vector<4x32xf32>
    %496 = arith.negf %495 : vector<4x32xf32>
    %497 = math.exp %496 : vector<4x32xf32>
    %cst_196 = arith.constant 1.000000e+00 : f32
    %498 = vector.broadcast %cst_196 : f32 to vector<4x32xf32>
    %499 = arith.addf %498, %497 : vector<4x32xf32>
    %500 = arith.divf %498, %499 : vector<4x32xf32>
    %501 = vector.extract_strided_slice %494 {offsets = [0, 32], sizes = [4, 32], strides = [1, 1]} : vector<4x128xf32> to vector<4x32xf32>
    %502 = arith.negf %501 : vector<4x32xf32>
    %503 = math.exp %502 : vector<4x32xf32>
    %cst_197 = arith.constant 1.000000e+00 : f32
    %504 = vector.broadcast %cst_197 : f32 to vector<4x32xf32>
    %505 = arith.addf %504, %503 : vector<4x32xf32>
    %506 = arith.divf %504, %505 : vector<4x32xf32>
    %507 = vector.extract_strided_slice %494 {offsets = [0, 64], sizes = [4, 32], strides = [1, 1]} : vector<4x128xf32> to vector<4x32xf32>
    %508 = math.tanh %507 : vector<4x32xf32>
    %509 = vector.extract_strided_slice %494 {offsets = [0, 96], sizes = [4, 32], strides = [1, 1]} : vector<4x128xf32> to vector<4x32xf32>
    %510 = arith.negf %509 : vector<4x32xf32>
    %511 = math.exp %510 : vector<4x32xf32>
    %cst_198 = arith.constant 1.000000e+00 : f32
    %512 = vector.broadcast %cst_198 : f32 to vector<4x32xf32>
    %513 = arith.addf %512, %511 : vector<4x32xf32>
    %514 = arith.divf %512, %513 : vector<4x32xf32>
    %515 = arith.mulf %506, %479 : vector<4x32xf32>
    %516 = arith.mulf %500, %508 : vector<4x32xf32>
    %517 = arith.addf %515, %516 : vector<4x32xf32>
    %518 = math.tanh %517 : vector<4x32xf32>
    %519 = arith.mulf %514, %518 : vector<4x32xf32>
    %520 = vector.extract_strided_slice %519 {offsets = [0, 0], sizes = [2, 32], strides = [1, 1]} : vector<4x32xf32> to vector<2x32xf32>
    %c2_199 = arith.constant 2 : index
    %c0_200 = arith.constant 0 : index
    %521 = vector.load %arg19[%c2_199, %c0_200] : memref<16x64xf32, #tpu.memory_space<vmem>>, vector<2x32xf32>
    tpu.vector_store %arg19[%c2_199, %c0_200], %520 {strides = array<i32>} : memref<16x64xf32, #tpu.memory_space<vmem>>, vector<2x32xf32>,
    %522 = vector.extract_strided_slice %519 {offsets = [2, 0], sizes = [2, 32], strides = [1, 1]} : vector<4x32xf32> to vector<2x32xf32>
    %c12_201 = arith.constant 12 : index
    %c32_202 = arith.constant 32 : index
    %523 = vector.load %arg19[%c12_201, %c32_202] : memref<16x64xf32, #tpu.memory_space<vmem>>, vector<2x32xf32>
    tpu.vector_store %arg19[%c12_201, %c32_202], %522 {strides = array<i32>} : memref<16x64xf32, #tpu.memory_space<vmem>>, vector<2x32xf32>,
    %524 = arith.truncf %519 : vector<4x32xf32> to vector<4x32xbf16>
    %cst_203 = arith.constant dense<0.000000e+00> : vector<4x256xf32>
    %525 = tpu.matmul %524, %445, %cst_203 {dimension_numbers = #tpu.dot_dimension_numbers<[1], [0], [0], [1], [0, 0, 1, 1], [], []>} : vector<4x32xbf16>, vector<32x256xbf16>, vector<4x256xf32> -> vector<4x256xf32>
    %526 = vector.extract_strided_slice %443 {offsets = [4, 0], sizes = [2, 128], strides = [1, 1]} : vector<16x256xf32> to vector<2x128xf32>
    %527 = vector.extract_strided_slice %525 {offsets = [0, 0], sizes = [2, 128], strides = [1, 1]} : vector<4x256xf32> to vector<2x128xf32>
    %528 = arith.addf %526, %527 : vector<2x128xf32>
    %529 = vector.extract_strided_slice %443 {offsets = [10, 128], sizes = [2, 128], strides = [1, 1]} : vector<16x256xf32> to vector<2x128xf32>
    %530 = vector.extract_strided_slice %525 {offsets = [2, 128], sizes = [2, 128], strides = [1, 1]} : vector<4x256xf32> to vector<2x128xf32>
    %531 = arith.addf %529, %530 : vector<2x128xf32>
    %532 = tpu.concatenate %528, %531 in 0 : vector<2x128xf32>, vector<2x128xf32> -> vector<4x128xf32>
    %533 = vector.extract_strided_slice %532 {offsets = [0, 0], sizes = [4, 32], strides = [1, 1]} : vector<4x128xf32> to vector<4x32xf32>
    %534 = arith.negf %533 : vector<4x32xf32>
    %535 = math.exp %534 : vector<4x32xf32>
    %cst_204 = arith.constant 1.000000e+00 : f32
    %536 = vector.broadcast %cst_204 : f32 to vector<4x32xf32>
    %537 = arith.addf %536, %535 : vector<4x32xf32>
    %538 = arith.divf %536, %537 : vector<4x32xf32>
    %539 = vector.extract_strided_slice %532 {offsets = [0, 32], sizes = [4, 32], strides = [1, 1]} : vector<4x128xf32> to vector<4x32xf32>
    %540 = arith.negf %539 : vector<4x32xf32>
    %541 = math.exp %540 : vector<4x32xf32>
    %cst_205 = arith.constant 1.000000e+00 : f32
    %542 = vector.broadcast %cst_205 : f32 to vector<4x32xf32>
    %543 = arith.addf %542, %541 : vector<4x32xf32>
    %544 = arith.divf %542, %543 : vector<4x32xf32>
    %545 = vector.extract_strided_slice %532 {offsets = [0, 64], sizes = [4, 32], strides = [1, 1]} : vector<4x128xf32> to vector<4x32xf32>
    %546 = math.tanh %545 : vector<4x32xf32>
    %547 = vector.extract_strided_slice %532 {offsets = [0, 96], sizes = [4, 32], strides = [1, 1]} : vector<4x128xf32> to vector<4x32xf32>
    %548 = arith.negf %547 : vector<4x32xf32>
    %549 = math.exp %548 : vector<4x32xf32>
    %cst_206 = arith.constant 1.000000e+00 : f32
    %550 = vector.broadcast %cst_206 : f32 to vector<4x32xf32>
    %551 = arith.addf %550, %549 : vector<4x32xf32>
    %552 = arith.divf %550, %551 : vector<4x32xf32>
    %553 = arith.mulf %544, %517 : vector<4x32xf32>
    %554 = arith.mulf %538, %546 : vector<4x32xf32>
    %555 = arith.addf %553, %554 : vector<4x32xf32>
    %556 = math.tanh %555 : vector<4x32xf32>
    %557 = arith.mulf %552, %556 : vector<4x32xf32>
    %558 = vector.extract_strided_slice %557 {offsets = [0, 0], sizes = [2, 32], strides = [1, 1]} : vector<4x32xf32> to vector<2x32xf32>
    %c4_207 = arith.constant 4 : index
    %c0_208 = arith.constant 0 : index
    %559 = vector.load %arg19[%c4_207, %c0_208] : memref<16x64xf32, #tpu.memory_space<vmem>>, vector<2x32xf32>
    tpu.vector_store %arg19[%c4_207, %c0_208], %558 {strides = array<i32>} : memref<16x64xf32, #tpu.memory_space<vmem>>, vector<2x32xf32>,
    %560 = vector.extract_strided_slice %557 {offsets = [2, 0], sizes = [2, 32], strides = [1, 1]} : vector<4x32xf32> to vector<2x32xf32>
    %c10_209 = arith.constant 10 : index
    %c32_210 = arith.constant 32 : index
    %561 = vector.load %arg19[%c10_209, %c32_210] : memref<16x64xf32, #tpu.memory_space<vmem>>, vector<2x32xf32>
    tpu.vector_store %arg19[%c10_209, %c32_210], %560 {strides = array<i32>} : memref<16x64xf32, #tpu.memory_space<vmem>>, vector<2x32xf32>,
    %562 = arith.truncf %557 : vector<4x32xf32> to vector<4x32xbf16>
    %cst_211 = arith.constant dense<0.000000e+00> : vector<4x256xf32>
    %563 = tpu.matmul %562, %445, %cst_211 {dimension_numbers = #tpu.dot_dimension_numbers<[1], [0], [0], [1], [0, 0, 1, 1], [], []>} : vector<4x32xbf16>, vector<32x256xbf16>, vector<4x256xf32> -> vector<4x256xf32>
    %564 = vector.extract_strided_slice %443 {offsets = [6, 0], sizes = [2, 128], strides = [1, 1]} : vector<16x256xf32> to vector<2x128xf32>
    %565 = vector.extract_strided_slice %563 {offsets = [0, 0], sizes = [2, 128], strides = [1, 1]} : vector<4x256xf32> to vector<2x128xf32>
    %566 = arith.addf %564, %565 : vector<2x128xf32>
    %567 = vector.extract_strided_slice %443 {offsets = [8, 128], sizes = [2, 128], strides = [1, 1]} : vector<16x256xf32> to vector<2x128xf32>
    %568 = vector.extract_strided_slice %563 {offsets = [2, 128], sizes = [2, 128], strides = [1, 1]} : vector<4x256xf32> to vector<2x128xf32>
    %569 = arith.addf %567, %568 : vector<2x128xf32>
    %570 = tpu.concatenate %566, %569 in 0 : vector<2x128xf32>, vector<2x128xf32> -> vector<4x128xf32>
    %571 = vector.extract_strided_slice %570 {offsets = [0, 0], sizes = [4, 32], strides = [1, 1]} : vector<4x128xf32> to vector<4x32xf32>
    %572 = arith.negf %571 : vector<4x32xf32>
    %573 = math.exp %572 : vector<4x32xf32>
    %cst_212 = arith.constant 1.000000e+00 : f32
    %574 = vector.broadcast %cst_212 : f32 to vector<4x32xf32>
    %575 = arith.addf %574, %573 : vector<4x32xf32>
    %576 = arith.divf %574, %575 : vector<4x32xf32>
    %577 = vector.extract_strided_slice %570 {offsets = [0, 32], sizes = [4, 32], strides = [1, 1]} : vector<4x128xf32> to vector<4x32xf32>
    %578 = arith.negf %577 : vector<4x32xf32>
    %579 = math.exp %578 : vector<4x32xf32>
    %cst_213 = arith.constant 1.000000e+00 : f32
    %580 = vector.broadcast %cst_213 : f32 to vector<4x32xf32>
    %581 = arith.addf %580, %579 : vector<4x32xf32>
    %582 = arith.divf %580, %581 : vector<4x32xf32>
    %583 = vector.extract_strided_slice %570 {offsets = [0, 64], sizes = [4, 32], strides = [1, 1]} : vector<4x128xf32> to vector<4x32xf32>
    %584 = math.tanh %583 : vector<4x32xf32>
    %585 = vector.extract_strided_slice %570 {offsets = [0, 96], sizes = [4, 32], strides = [1, 1]} : vector<4x128xf32> to vector<4x32xf32>
    %586 = arith.negf %585 : vector<4x32xf32>
    %587 = math.exp %586 : vector<4x32xf32>
    %cst_214 = arith.constant 1.000000e+00 : f32
    %588 = vector.broadcast %cst_214 : f32 to vector<4x32xf32>
    %589 = arith.addf %588, %587 : vector<4x32xf32>
    %590 = arith.divf %588, %589 : vector<4x32xf32>
    %591 = arith.mulf %582, %555 : vector<4x32xf32>
    %592 = arith.mulf %576, %584 : vector<4x32xf32>
    %593 = arith.addf %591, %592 : vector<4x32xf32>
    %594 = math.tanh %593 : vector<4x32xf32>
    %595 = arith.mulf %590, %594 : vector<4x32xf32>
    %596 = vector.extract_strided_slice %595 {offsets = [0, 0], sizes = [2, 32], strides = [1, 1]} : vector<4x32xf32> to vector<2x32xf32>
    %c6_215 = arith.constant 6 : index
    %c0_216 = arith.constant 0 : index
    %597 = vector.load %arg19[%c6_215, %c0_216] : memref<16x64xf32, #tpu.memory_space<vmem>>, vector<2x32xf32>
    tpu.vector_store %arg19[%c6_215, %c0_216], %596 {strides = array<i32>} : memref<16x64xf32, #tpu.memory_space<vmem>>, vector<2x32xf32>,
    %598 = vector.extract_strided_slice %595 {offsets = [2, 0], sizes = [2, 32], strides = [1, 1]} : vector<4x32xf32> to vector<2x32xf32>
    %c8_217 = arith.constant 8 : index
    %c32_218 = arith.constant 32 : index
    %599 = vector.load %arg19[%c8_217, %c32_218] : memref<16x64xf32, #tpu.memory_space<vmem>>, vector<2x32xf32>
    tpu.vector_store %arg19[%c8_217, %c32_218], %598 {strides = array<i32>} : memref<16x64xf32, #tpu.memory_space<vmem>>, vector<2x32xf32>,
    %600 = arith.truncf %595 : vector<4x32xf32> to vector<4x32xbf16>
    %cst_219 = arith.constant dense<0.000000e+00> : vector<4x256xf32>
    %601 = tpu.matmul %600, %445, %cst_219 {dimension_numbers = #tpu.dot_dimension_numbers<[1], [0], [0], [1], [0, 0, 1, 1], [], []>} : vector<4x32xbf16>, vector<32x256xbf16>, vector<4x256xf32> -> vector<4x256xf32>
    %602 = vector.extract_strided_slice %443 {offsets = [8, 0], sizes = [2, 128], strides = [1, 1]} : vector<16x256xf32> to vector<2x128xf32>
    %603 = vector.extract_strided_slice %601 {offsets = [0, 0], sizes = [2, 128], strides = [1, 1]} : vector<4x256xf32> to vector<2x128xf32>
    %604 = arith.addf %602, %603 : vector<2x128xf32>
    %605 = vector.extract_strided_slice %443 {offsets = [6, 128], sizes = [2, 128], strides = [1, 1]} : vector<16x256xf32> to vector<2x128xf32>
    %606 = vector.extract_strided_slice %601 {offsets = [2, 128], sizes = [2, 128], strides = [1, 1]} : vector<4x256xf32> to vector<2x128xf32>
    %607 = arith.addf %605, %606 : vector<2x128xf32>
    %608 = tpu.concatenate %604, %607 in 0 : vector<2x128xf32>, vector<2x128xf32> -> vector<4x128xf32>
    %609 = vector.extract_strided_slice %608 {offsets = [0, 0], sizes = [4, 32], strides = [1, 1]} : vector<4x128xf32> to vector<4x32xf32>
    %610 = arith.negf %609 : vector<4x32xf32>
    %611 = math.exp %610 : vector<4x32xf32>
    %cst_220 = arith.constant 1.000000e+00 : f32
    %612 = vector.broadcast %cst_220 : f32 to vector<4x32xf32>
    %613 = arith.addf %612, %611 : vector<4x32xf32>
    %614 = arith.divf %612, %613 : vector<4x32xf32>
    %615 = vector.extract_strided_slice %608 {offsets = [0, 32], sizes = [4, 32], strides = [1, 1]} : vector<4x128xf32> to vector<4x32xf32>
    %616 = arith.negf %615 : vector<4x32xf32>
    %617 = math.exp %616 : vector<4x32xf32>
    %cst_221 = arith.constant 1.000000e+00 : f32
    %618 = vector.broadcast %cst_221 : f32 to vector<4x32xf32>
    %619 = arith.addf %618, %617 : vector<4x32xf32>
    %620 = arith.divf %618, %619 : vector<4x32xf32>
    %621 = vector.extract_strided_slice %608 {offsets = [0, 64], sizes = [4, 32], strides = [1, 1]} : vector<4x128xf32> to vector<4x32xf32>
    %622 = math.tanh %621 : vector<4x32xf32>
    %623 = vector.extract_strided_slice %608 {offsets = [0, 96], sizes = [4, 32], strides = [1, 1]} : vector<4x128xf32> to vector<4x32xf32>
    %624 = arith.negf %623 : vector<4x32xf32>
    %625 = math.exp %624 : vector<4x32xf32>
    %cst_222 = arith.constant 1.000000e+00 : f32
    %626 = vector.broadcast %cst_222 : f32 to vector<4x32xf32>
    %627 = arith.addf %626, %625 : vector<4x32xf32>
    %628 = arith.divf %626, %627 : vector<4x32xf32>
    %629 = arith.mulf %620, %593 : vector<4x32xf32>
    %630 = arith.mulf %614, %622 : vector<4x32xf32>
    %631 = arith.addf %629, %630 : vector<4x32xf32>
    %632 = math.tanh %631 : vector<4x32xf32>
    %633 = arith.mulf %628, %632 : vector<4x32xf32>
    %634 = vector.extract_strided_slice %633 {offsets = [0, 0], sizes = [2, 32], strides = [1, 1]} : vector<4x32xf32> to vector<2x32xf32>
    %c8_223 = arith.constant 8 : index
    %c0_224 = arith.constant 0 : index
    %635 = vector.load %arg19[%c8_223, %c0_224] : memref<16x64xf32, #tpu.memory_space<vmem>>, vector<2x32xf32>
    tpu.vector_store %arg19[%c8_223, %c0_224], %634 {strides = array<i32>} : memref<16x64xf32, #tpu.memory_space<vmem>>, vector<2x32xf32>,
    %636 = vector.extract_strided_slice %633 {offsets = [2, 0], sizes = [2, 32], strides = [1, 1]} : vector<4x32xf32> to vector<2x32xf32>
    %c6_225 = arith.constant 6 : index
    %c32_226 = arith.constant 32 : index
    %637 = vector.load %arg19[%c6_225, %c32_226] : memref<16x64xf32, #tpu.memory_space<vmem>>, vector<2x32xf32>
    tpu.vector_store %arg19[%c6_225, %c32_226], %636 {strides = array<i32>} : memref<16x64xf32, #tpu.memory_space<vmem>>, vector<2x32xf32>,
    %638 = arith.truncf %633 : vector<4x32xf32> to vector<4x32xbf16>
    %cst_227 = arith.constant dense<0.000000e+00> : vector<4x256xf32>
    %639 = tpu.matmul %638, %445, %cst_227 {dimension_numbers = #tpu.dot_dimension_numbers<[1], [0], [0], [1], [0, 0, 1, 1], [], []>} : vector<4x32xbf16>, vector<32x256xbf16>, vector<4x256xf32> -> vector<4x256xf32>
    %640 = vector.extract_strided_slice %443 {offsets = [10, 0], sizes = [2, 128], strides = [1, 1]} : vector<16x256xf32> to vector<2x128xf32>
    %641 = vector.extract_strided_slice %639 {offsets = [0, 0], sizes = [2, 128], strides = [1, 1]} : vector<4x256xf32> to vector<2x128xf32>
    %642 = arith.addf %640, %641 : vector<2x128xf32>
    %643 = vector.extract_strided_slice %443 {offsets = [4, 128], sizes = [2, 128], strides = [1, 1]} : vector<16x256xf32> to vector<2x128xf32>
    %644 = vector.extract_strided_slice %639 {offsets = [2, 128], sizes = [2, 128], strides = [1, 1]} : vector<4x256xf32> to vector<2x128xf32>
    %645 = arith.addf %643, %644 : vector<2x128xf32>
    %646 = tpu.concatenate %642, %645 in 0 : vector<2x128xf32>, vector<2x128xf32> -> vector<4x128xf32>
    %647 = vector.extract_strided_slice %646 {offsets = [0, 0], sizes = [4, 32], strides = [1, 1]} : vector<4x128xf32> to vector<4x32xf32>
    %648 = arith.negf %647 : vector<4x32xf32>
    %649 = math.exp %648 : vector<4x32xf32>
    %cst_228 = arith.constant 1.000000e+00 : f32
    %650 = vector.broadcast %cst_228 : f32 to vector<4x32xf32>
    %651 = arith.addf %650, %649 : vector<4x32xf32>
    %652 = arith.divf %650, %651 : vector<4x32xf32>
    %653 = vector.extract_strided_slice %646 {offsets = [0, 32], sizes = [4, 32], strides = [1, 1]} : vector<4x128xf32> to vector<4x32xf32>
    %654 = arith.negf %653 : vector<4x32xf32>
    %655 = math.exp %654 : vector<4x32xf32>
    %cst_229 = arith.constant 1.000000e+00 : f32
    %656 = vector.broadcast %cst_229 : f32 to vector<4x32xf32>
    %657 = arith.addf %656, %655 : vector<4x32xf32>
    %658 = arith.divf %656, %657 : vector<4x32xf32>
    %659 = vector.extract_strided_slice %646 {offsets = [0, 64], sizes = [4, 32], strides = [1, 1]} : vector<4x128xf32> to vector<4x32xf32>
    %660 = math.tanh %659 : vector<4x32xf32>
    %661 = vector.extract_strided_slice %646 {offsets = [0, 96], sizes = [4, 32], strides = [1, 1]} : vector<4x128xf32> to vector<4x32xf32>
    %662 = arith.negf %661 : vector<4x32xf32>
    %663 = math.exp %662 : vector<4x32xf32>
    %cst_230 = arith.constant 1.000000e+00 : f32
    %664 = vector.broadcast %cst_230 : f32 to vector<4x32xf32>
    %665 = arith.addf %664, %663 : vector<4x32xf32>
    %666 = arith.divf %664, %665 : vector<4x32xf32>
    %667 = arith.mulf %658, %631 : vector<4x32xf32>
    %668 = arith.mulf %652, %660 : vector<4x32xf32>
    %669 = arith.addf %667, %668 : vector<4x32xf32>
    %670 = math.tanh %669 : vector<4x32xf32>
    %671 = arith.mulf %666, %670 : vector<4x32xf32>
    %672 = vector.extract_strided_slice %671 {offsets = [0, 0], sizes = [2, 32], strides = [1, 1]} : vector<4x32xf32> to vector<2x32xf32>
    %c10_231 = arith.constant 10 : index
    %c0_232 = arith.constant 0 : index
    %673 = vector.load %arg19[%c10_231, %c0_232] : memref<16x64xf32, #tpu.memory_space<vmem>>, vector<2x32xf32>
    tpu.vector_store %arg19[%c10_231, %c0_232], %672 {strides = array<i32>} : memref<16x64xf32, #tpu.memory_space<vmem>>, vector<2x32xf32>,
    %674 = vector.extract_strided_slice %671 {offsets = [2, 0], sizes = [2, 32], strides = [1, 1]} : vector<4x32xf32> to vector<2x32xf32>
    %c4_233 = arith.constant 4 : index
    %c32_234 = arith.constant 32 : index
    %675 = vector.load %arg19[%c4_233, %c32_234] : memref<16x64xf32, #tpu.memory_space<vmem>>, vector<2x32xf32>
    tpu.vector_store %arg19[%c4_233, %c32_234], %674 {strides = array<i32>} : memref<16x64xf32, #tpu.memory_space<vmem>>, vector<2x32xf32>,
    %676 = arith.truncf %671 : vector<4x32xf32> to vector<4x32xbf16>
    %cst_235 = arith.constant dense<0.000000e+00> : vector<4x256xf32>
    %677 = tpu.matmul %676, %445, %cst_235 {dimension_numbers = #tpu.dot_dimension_numbers<[1], [0], [0], [1], [0, 0, 1, 1], [], []>} : vector<4x32xbf16>, vector<32x256xbf16>, vector<4x256xf32> -> vector<4x256xf32>
    %678 = vector.extract_strided_slice %443 {offsets = [12, 0], sizes = [2, 128], strides = [1, 1]} : vector<16x256xf32> to vector<2x128xf32>
    %679 = vector.extract_strided_slice %677 {offsets = [0, 0], sizes = [2, 128], strides = [1, 1]} : vector<4x256xf32> to vector<2x128xf32>
    %680 = arith.addf %678, %679 : vector<2x128xf32>
    %681 = vector.extract_strided_slice %443 {offsets = [2, 128], sizes = [2, 128], strides = [1, 1]} : vector<16x256xf32> to vector<2x128xf32>
    %682 = vector.extract_strided_slice %677 {offsets = [2, 128], sizes = [2, 128], strides = [1, 1]} : vector<4x256xf32> to vector<2x128xf32>
    %683 = arith.addf %681, %682 : vector<2x128xf32>
    %684 = tpu.concatenate %680, %683 in 0 : vector<2x128xf32>, vector<2x128xf32> -> vector<4x128xf32>
    %685 = vector.extract_strided_slice %684 {offsets = [0, 0], sizes = [4, 32], strides = [1, 1]} : vector<4x128xf32> to vector<4x32xf32>
    %686 = arith.negf %685 : vector<4x32xf32>
    %687 = math.exp %686 : vector<4x32xf32>
    %cst_236 = arith.constant 1.000000e+00 : f32
    %688 = vector.broadcast %cst_236 : f32 to vector<4x32xf32>
    %689 = arith.addf %688, %687 : vector<4x32xf32>
    %690 = arith.divf %688, %689 : vector<4x32xf32>
    %691 = vector.extract_strided_slice %684 {offsets = [0, 32], sizes = [4, 32], strides = [1, 1]} : vector<4x128xf32> to vector<4x32xf32>
    %692 = arith.negf %691 : vector<4x32xf32>
    %693 = math.exp %692 : vector<4x32xf32>
    %cst_237 = arith.constant 1.000000e+00 : f32
    %694 = vector.broadcast %cst_237 : f32 to vector<4x32xf32>
    %695 = arith.addf %694, %693 : vector<4x32xf32>
    %696 = arith.divf %694, %695 : vector<4x32xf32>
    %697 = vector.extract_strided_slice %684 {offsets = [0, 64], sizes = [4, 32], strides = [1, 1]} : vector<4x128xf32> to vector<4x32xf32>
    %698 = math.tanh %697 : vector<4x32xf32>
    %699 = vector.extract_strided_slice %684 {offsets = [0, 96], sizes = [4, 32], strides = [1, 1]} : vector<4x128xf32> to vector<4x32xf32>
    %700 = arith.negf %699 : vector<4x32xf32>
    %701 = math.exp %700 : vector<4x32xf32>
    %cst_238 = arith.constant 1.000000e+00 : f32
    %702 = vector.broadcast %cst_238 : f32 to vector<4x32xf32>
    %703 = arith.addf %702, %701 : vector<4x32xf32>
    %704 = arith.divf %702, %703 : vector<4x32xf32>
    %705 = arith.mulf %696, %669 : vector<4x32xf32>
    %706 = arith.mulf %690, %698 : vector<4x32xf32>
    %707 = arith.addf %705, %706 : vector<4x32xf32>
    %708 = math.tanh %707 : vector<4x32xf32>
    %709 = arith.mulf %704, %708 : vector<4x32xf32>
    %710 = vector.extract_strided_slice %709 {offsets = [0, 0], sizes = [2, 32], strides = [1, 1]} : vector<4x32xf32> to vector<2x32xf32>
    %c12_239 = arith.constant 12 : index
    %c0_240 = arith.constant 0 : index
    %711 = vector.load %arg19[%c12_239, %c0_240] : memref<16x64xf32, #tpu.memory_space<vmem>>, vector<2x32xf32>
    tpu.vector_store %arg19[%c12_239, %c0_240], %710 {strides = array<i32>} : memref<16x64xf32, #tpu.memory_space<vmem>>, vector<2x32xf32>,
    %712 = vector.extract_strided_slice %709 {offsets = [2, 0], sizes = [2, 32], strides = [1, 1]} : vector<4x32xf32> to vector<2x32xf32>
    %c2_241 = arith.constant 2 : index
    %c32_242 = arith.constant 32 : index
    %713 = vector.load %arg19[%c2_241, %c32_242] : memref<16x64xf32, #tpu.memory_space<vmem>>, vector<2x32xf32>
    tpu.vector_store %arg19[%c2_241, %c32_242], %712 {strides = array<i32>} : memref<16x64xf32, #tpu.memory_space<vmem>>, vector<2x32xf32>,
    %714 = arith.truncf %709 : vector<4x32xf32> to vector<4x32xbf16>
    %cst_243 = arith.constant dense<0.000000e+00> : vector<4x256xf32>
    %715 = tpu.matmul %714, %445, %cst_243 {dimension_numbers = #tpu.dot_dimension_numbers<[1], [0], [0], [1], [0, 0, 1, 1], [], []>} : vector<4x32xbf16>, vector<32x256xbf16>, vector<4x256xf32> -> vector<4x256xf32>
    %716 = vector.extract_strided_slice %443 {offsets = [14, 0], sizes = [2, 128], strides = [1, 1]} : vector<16x256xf32> to vector<2x128xf32>
    %717 = vector.extract_strided_slice %715 {offsets = [0, 0], sizes = [2, 128], strides = [1, 1]} : vector<4x256xf32> to vector<2x128xf32>
    %718 = arith.addf %716, %717 : vector<2x128xf32>
    %719 = vector.extract_strided_slice %443 {offsets = [0, 128], sizes = [2, 128], strides = [1, 1]} : vector<16x256xf32> to vector<2x128xf32>
    %720 = vector.extract_strided_slice %715 {offsets = [2, 128], sizes = [2, 128], strides = [1, 1]} : vector<4x256xf32> to vector<2x128xf32>
    %721 = arith.addf %719, %720 : vector<2x128xf32>
    %722 = tpu.concatenate %718, %721 in 0 : vector<2x128xf32>, vector<2x128xf32> -> vector<4x128xf32>
    %723 = vector.extract_strided_slice %722 {offsets = [0, 0], sizes = [4, 32], strides = [1, 1]} : vector<4x128xf32> to vector<4x32xf32>
    %724 = arith.negf %723 : vector<4x32xf32>
    %725 = math.exp %724 : vector<4x32xf32>
    %cst_244 = arith.constant 1.000000e+00 : f32
    %726 = vector.broadcast %cst_244 : f32 to vector<4x32xf32>
    %727 = arith.addf %726, %725 : vector<4x32xf32>
    %728 = arith.divf %726, %727 : vector<4x32xf32>
    %729 = vector.extract_strided_slice %722 {offsets = [0, 32], sizes = [4, 32], strides = [1, 1]} : vector<4x128xf32> to vector<4x32xf32>
    %730 = arith.negf %729 : vector<4x32xf32>
    %731 = math.exp %730 : vector<4x32xf32>
    %cst_245 = arith.constant 1.000000e+00 : f32
    %732 = vector.broadcast %cst_245 : f32 to vector<4x32xf32>
    %733 = arith.addf %732, %731 : vector<4x32xf32>
    %734 = arith.divf %732, %733 : vector<4x32xf32>
    %735 = vector.extract_strided_slice %722 {offsets = [0, 64], sizes = [4, 32], strides = [1, 1]} : vector<4x128xf32> to vector<4x32xf32>
    %736 = math.tanh %735 : vector<4x32xf32>
    %737 = vector.extract_strided_slice %722 {offsets = [0, 96], sizes = [4, 32], strides = [1, 1]} : vector<4x128xf32> to vector<4x32xf32>
    %738 = arith.negf %737 : vector<4x32xf32>
    %739 = math.exp %738 : vector<4x32xf32>
    %cst_246 = arith.constant 1.000000e+00 : f32
    %740 = vector.broadcast %cst_246 : f32 to vector<4x32xf32>
    %741 = arith.addf %740, %739 : vector<4x32xf32>
    %742 = arith.divf %740, %741 : vector<4x32xf32>
    %743 = arith.mulf %734, %707 : vector<4x32xf32>
    %744 = arith.mulf %728, %736 : vector<4x32xf32>
    %745 = arith.addf %743, %744 : vector<4x32xf32>
    %746 = math.tanh %745 : vector<4x32xf32>
    %747 = arith.mulf %742, %746 : vector<4x32xf32>
    %748 = vector.extract_strided_slice %747 {offsets = [0, 0], sizes = [2, 32], strides = [1, 1]} : vector<4x32xf32> to vector<2x32xf32>
    %c14_247 = arith.constant 14 : index
    %c0_248 = arith.constant 0 : index
    %749 = vector.load %arg19[%c14_247, %c0_248] : memref<16x64xf32, #tpu.memory_space<vmem>>, vector<2x32xf32>
    tpu.vector_store %arg19[%c14_247, %c0_248], %748 {strides = array<i32>} : memref<16x64xf32, #tpu.memory_space<vmem>>, vector<2x32xf32>,
    %750 = vector.extract_strided_slice %747 {offsets = [2, 0], sizes = [2, 32], strides = [1, 1]} : vector<4x32xf32> to vector<2x32xf32>
    %c0_249 = arith.constant 0 : index
    %c32_250 = arith.constant 32 : index
    %751 = vector.load %arg19[%c0_249, %c32_250] : memref<16x64xf32, #tpu.memory_space<vmem>>, vector<2x32xf32>
    tpu.vector_store %arg19[%c0_249, %c32_250], %750 {strides = array<i32>} : memref<16x64xf32, #tpu.memory_space<vmem>>, vector<2x32xf32>,
    %c0_251 = arith.constant 0 : index
    %c0_252 = arith.constant 0 : index
    %752 = vector.load %arg19[%c0_251, %c0_252] : memref<16x64xf32, #tpu.memory_space<vmem>>, vector<16x64xf32>
    %753 = arith.truncf %752 : vector<16x64xf32> to vector<16x64xbf16>
    %c1_253 = arith.constant 1 : index
    %c0_254 = arith.constant 0 : index
    %c0_255 = arith.constant 0 : index
    %754 = vector.load %arg10[%c1_253, %c0_254, %c0_255] : memref<2x64x256xbf16, #tpu.memory_space<vmem>>, vector<1x64x256xbf16>
    %755 = vector.shape_cast %754 : vector<1x64x256xbf16> to vector<64x256xbf16>
    %cst_256 = arith.constant dense<0.000000e+00> : vector<16x256xf32>
    %756 = tpu.matmul %753, %755, %cst_256 {dimension_numbers = #tpu.dot_dimension_numbers<[1], [0], [0], [1], [0, 0, 1, 1], [], []>} : vector<16x64xbf16>, vector<64x256xbf16>, vector<16x256xf32> -> vector<16x256xf32>
    %757 = vector.extract_strided_slice %4 {offsets = [1, 0], sizes = [1, 256], strides = [1, 1]} : vector<2x256xf32> to vector<1x256xf32>
    %758 = vector.broadcast %757 : vector<1x256xf32> to vector<16x256xf32>
    %759 = arith.addf %756, %758 : vector<16x256xf32>
    %c1_257 = arith.constant 1 : index
    %c0_258 = arith.constant 0 : index
    %c0_259 = arith.constant 0 : index
    %760 = vector.load %arg12[%c1_257, %c0_258, %c0_259] : memref<2x32x256xbf16, #tpu.memory_space<vmem>>, vector<1x32x256xbf16>
    %761 = vector.shape_cast %760 : vector<1x32x256xbf16> to vector<32x256xbf16>
    %cst_260 = arith.constant 0.000000e+00 : f32
    %762 = vector.broadcast %cst_260 : f32 to vector<4x32xf32>
    %cst_261 = arith.constant 0.000000e+00 : f32
    %763 = vector.broadcast %cst_261 : f32 to vector<4x32xf32>
    %764 = arith.truncf %762 : vector<4x32xf32> to vector<4x32xbf16>
    %cst_262 = arith.constant dense<0.000000e+00> : vector<4x256xf32>
    %765 = tpu.matmul %764, %761, %cst_262 {dimension_numbers = #tpu.dot_dimension_numbers<[1], [0], [0], [1], [0, 0, 1, 1], [], []>} : vector<4x32xbf16>, vector<32x256xbf16>, vector<4x256xf32> -> vector<4x256xf32>
    %766 = vector.extract_strided_slice %759 {offsets = [0, 0], sizes = [2, 128], strides = [1, 1]} : vector<16x256xf32> to vector<2x128xf32>
    %767 = vector.extract_strided_slice %765 {offsets = [0, 0], sizes = [2, 128], strides = [1, 1]} : vector<4x256xf32> to vector<2x128xf32>
    %768 = arith.addf %766, %767 : vector<2x128xf32>
    %769 = vector.extract_strided_slice %759 {offsets = [14, 128], sizes = [2, 128], strides = [1, 1]} : vector<16x256xf32> to vector<2x128xf32>
    %770 = vector.extract_strided_slice %765 {offsets = [2, 128], sizes = [2, 128], strides = [1, 1]} : vector<4x256xf32> to vector<2x128xf32>
    %771 = arith.addf %769, %770 : vector<2x128xf32>
    %772 = tpu.concatenate %768, %771 in 0 : vector<2x128xf32>, vector<2x128xf32> -> vector<4x128xf32>
    %773 = vector.extract_strided_slice %772 {offsets = [0, 0], sizes = [4, 32], strides = [1, 1]} : vector<4x128xf32> to vector<4x32xf32>
    %774 = arith.negf %773 : vector<4x32xf32>
    %775 = math.exp %774 : vector<4x32xf32>
    %cst_263 = arith.constant 1.000000e+00 : f32
    %776 = vector.broadcast %cst_263 : f32 to vector<4x32xf32>
    %777 = arith.addf %776, %775 : vector<4x32xf32>
    %778 = arith.divf %776, %777 : vector<4x32xf32>
    %779 = vector.extract_strided_slice %772 {offsets = [0, 32], sizes = [4, 32], strides = [1, 1]} : vector<4x128xf32> to vector<4x32xf32>
    %780 = arith.negf %779 : vector<4x32xf32>
    %781 = math.exp %780 : vector<4x32xf32>
    %cst_264 = arith.constant 1.000000e+00 : f32
    %782 = vector.broadcast %cst_264 : f32 to vector<4x32xf32>
    %783 = arith.addf %782, %781 : vector<4x32xf32>
    %784 = arith.divf %782, %783 : vector<4x32xf32>
    %785 = vector.extract_strided_slice %772 {offsets = [0, 64], sizes = [4, 32], strides = [1, 1]} : vector<4x128xf32> to vector<4x32xf32>
    %786 = math.tanh %785 : vector<4x32xf32>
    %787 = vector.extract_strided_slice %772 {offsets = [0, 96], sizes = [4, 32], strides = [1, 1]} : vector<4x128xf32> to vector<4x32xf32>
    %788 = arith.negf %787 : vector<4x32xf32>
    %789 = math.exp %788 : vector<4x32xf32>
    %cst_265 = arith.constant 1.000000e+00 : f32
    %790 = vector.broadcast %cst_265 : f32 to vector<4x32xf32>
    %791 = arith.addf %790, %789 : vector<4x32xf32>
    %792 = arith.divf %790, %791 : vector<4x32xf32>
    %793 = arith.mulf %784, %763 : vector<4x32xf32>
    %794 = arith.mulf %778, %786 : vector<4x32xf32>
    %795 = arith.addf %793, %794 : vector<4x32xf32>
    %796 = math.tanh %795 : vector<4x32xf32>
    %797 = arith.mulf %792, %796 : vector<4x32xf32>
    %798 = vector.extract_strided_slice %797 {offsets = [2, 0], sizes = [2, 32], strides = [1, 1]} : vector<4x32xf32> to vector<2x32xf32>
    %799 = arith.truncf %797 : vector<4x32xf32> to vector<4x32xbf16>
    %cst_266 = arith.constant dense<0.000000e+00> : vector<4x256xf32>
    %800 = tpu.matmul %799, %761, %cst_266 {dimension_numbers = #tpu.dot_dimension_numbers<[1], [0], [0], [1], [0, 0, 1, 1], [], []>} : vector<4x32xbf16>, vector<32x256xbf16>, vector<4x256xf32> -> vector<4x256xf32>
    %801 = vector.extract_strided_slice %759 {offsets = [2, 0], sizes = [2, 128], strides = [1, 1]} : vector<16x256xf32> to vector<2x128xf32>
    %802 = vector.extract_strided_slice %800 {offsets = [0, 0], sizes = [2, 128], strides = [1, 1]} : vector<4x256xf32> to vector<2x128xf32>
    %803 = arith.addf %801, %802 : vector<2x128xf32>
    %804 = vector.extract_strided_slice %759 {offsets = [12, 128], sizes = [2, 128], strides = [1, 1]} : vector<16x256xf32> to vector<2x128xf32>
    %805 = vector.extract_strided_slice %800 {offsets = [2, 128], sizes = [2, 128], strides = [1, 1]} : vector<4x256xf32> to vector<2x128xf32>
    %806 = arith.addf %804, %805 : vector<2x128xf32>
    %807 = tpu.concatenate %803, %806 in 0 : vector<2x128xf32>, vector<2x128xf32> -> vector<4x128xf32>
    %808 = vector.extract_strided_slice %807 {offsets = [0, 0], sizes = [4, 32], strides = [1, 1]} : vector<4x128xf32> to vector<4x32xf32>
    %809 = arith.negf %808 : vector<4x32xf32>
    %810 = math.exp %809 : vector<4x32xf32>
    %cst_267 = arith.constant 1.000000e+00 : f32
    %811 = vector.broadcast %cst_267 : f32 to vector<4x32xf32>
    %812 = arith.addf %811, %810 : vector<4x32xf32>
    %813 = arith.divf %811, %812 : vector<4x32xf32>
    %814 = vector.extract_strided_slice %807 {offsets = [0, 32], sizes = [4, 32], strides = [1, 1]} : vector<4x128xf32> to vector<4x32xf32>
    %815 = arith.negf %814 : vector<4x32xf32>
    %816 = math.exp %815 : vector<4x32xf32>
    %cst_268 = arith.constant 1.000000e+00 : f32
    %817 = vector.broadcast %cst_268 : f32 to vector<4x32xf32>
    %818 = arith.addf %817, %816 : vector<4x32xf32>
    %819 = arith.divf %817, %818 : vector<4x32xf32>
    %820 = vector.extract_strided_slice %807 {offsets = [0, 64], sizes = [4, 32], strides = [1, 1]} : vector<4x128xf32> to vector<4x32xf32>
    %821 = math.tanh %820 : vector<4x32xf32>
    %822 = vector.extract_strided_slice %807 {offsets = [0, 96], sizes = [4, 32], strides = [1, 1]} : vector<4x128xf32> to vector<4x32xf32>
    %823 = arith.negf %822 : vector<4x32xf32>
    %824 = math.exp %823 : vector<4x32xf32>
    %cst_269 = arith.constant 1.000000e+00 : f32
    %825 = vector.broadcast %cst_269 : f32 to vector<4x32xf32>
    %826 = arith.addf %825, %824 : vector<4x32xf32>
    %827 = arith.divf %825, %826 : vector<4x32xf32>
    %828 = arith.mulf %819, %795 : vector<4x32xf32>
    %829 = arith.mulf %813, %821 : vector<4x32xf32>
    %830 = arith.addf %828, %829 : vector<4x32xf32>
    %831 = math.tanh %830 : vector<4x32xf32>
    %832 = arith.mulf %827, %831 : vector<4x32xf32>
    %833 = arith.truncf %832 : vector<4x32xf32> to vector<4x32xbf16>
    %cst_270 = arith.constant dense<0.000000e+00> : vector<4x256xf32>
    %834 = tpu.matmul %833, %761, %cst_270 {dimension_numbers = #tpu.dot_dimension_numbers<[1], [0], [0], [1], [0, 0, 1, 1], [], []>} : vector<4x32xbf16>, vector<32x256xbf16>, vector<4x256xf32> -> vector<4x256xf32>
    %835 = vector.extract_strided_slice %759 {offsets = [4, 0], sizes = [2, 128], strides = [1, 1]} : vector<16x256xf32> to vector<2x128xf32>
    %836 = vector.extract_strided_slice %834 {offsets = [0, 0], sizes = [2, 128], strides = [1, 1]} : vector<4x256xf32> to vector<2x128xf32>
    %837 = arith.addf %835, %836 : vector<2x128xf32>
    %838 = vector.extract_strided_slice %759 {offsets = [10, 128], sizes = [2, 128], strides = [1, 1]} : vector<16x256xf32> to vector<2x128xf32>
    %839 = vector.extract_strided_slice %834 {offsets = [2, 128], sizes = [2, 128], strides = [1, 1]} : vector<4x256xf32> to vector<2x128xf32>
    %840 = arith.addf %838, %839 : vector<2x128xf32>
    %841 = tpu.concatenate %837, %840 in 0 : vector<2x128xf32>, vector<2x128xf32> -> vector<4x128xf32>
    %842 = vector.extract_strided_slice %841 {offsets = [0, 0], sizes = [4, 32], strides = [1, 1]} : vector<4x128xf32> to vector<4x32xf32>
    %843 = arith.negf %842 : vector<4x32xf32>
    %844 = math.exp %843 : vector<4x32xf32>
    %cst_271 = arith.constant 1.000000e+00 : f32
    %845 = vector.broadcast %cst_271 : f32 to vector<4x32xf32>
    %846 = arith.addf %845, %844 : vector<4x32xf32>
    %847 = arith.divf %845, %846 : vector<4x32xf32>
    %848 = vector.extract_strided_slice %841 {offsets = [0, 32], sizes = [4, 32], strides = [1, 1]} : vector<4x128xf32> to vector<4x32xf32>
    %849 = arith.negf %848 : vector<4x32xf32>
    %850 = math.exp %849 : vector<4x32xf32>
    %cst_272 = arith.constant 1.000000e+00 : f32
    %851 = vector.broadcast %cst_272 : f32 to vector<4x32xf32>
    %852 = arith.addf %851, %850 : vector<4x32xf32>
    %853 = arith.divf %851, %852 : vector<4x32xf32>
    %854 = vector.extract_strided_slice %841 {offsets = [0, 64], sizes = [4, 32], strides = [1, 1]} : vector<4x128xf32> to vector<4x32xf32>
    %855 = math.tanh %854 : vector<4x32xf32>
    %856 = vector.extract_strided_slice %841 {offsets = [0, 96], sizes = [4, 32], strides = [1, 1]} : vector<4x128xf32> to vector<4x32xf32>
    %857 = arith.negf %856 : vector<4x32xf32>
    %858 = math.exp %857 : vector<4x32xf32>
    %cst_273 = arith.constant 1.000000e+00 : f32
    %859 = vector.broadcast %cst_273 : f32 to vector<4x32xf32>
    %860 = arith.addf %859, %858 : vector<4x32xf32>
    %861 = arith.divf %859, %860 : vector<4x32xf32>
    %862 = arith.mulf %853, %830 : vector<4x32xf32>
    %863 = arith.mulf %847, %855 : vector<4x32xf32>
    %864 = arith.addf %862, %863 : vector<4x32xf32>
    %865 = math.tanh %864 : vector<4x32xf32>
    %866 = arith.mulf %861, %865 : vector<4x32xf32>
    %867 = arith.truncf %866 : vector<4x32xf32> to vector<4x32xbf16>
    %cst_274 = arith.constant dense<0.000000e+00> : vector<4x256xf32>
    %868 = tpu.matmul %867, %761, %cst_274 {dimension_numbers = #tpu.dot_dimension_numbers<[1], [0], [0], [1], [0, 0, 1, 1], [], []>} : vector<4x32xbf16>, vector<32x256xbf16>, vector<4x256xf32> -> vector<4x256xf32>
    %869 = vector.extract_strided_slice %759 {offsets = [6, 0], sizes = [2, 128], strides = [1, 1]} : vector<16x256xf32> to vector<2x128xf32>
    %870 = vector.extract_strided_slice %868 {offsets = [0, 0], sizes = [2, 128], strides = [1, 1]} : vector<4x256xf32> to vector<2x128xf32>
    %871 = arith.addf %869, %870 : vector<2x128xf32>
    %872 = vector.extract_strided_slice %759 {offsets = [8, 128], sizes = [2, 128], strides = [1, 1]} : vector<16x256xf32> to vector<2x128xf32>
    %873 = vector.extract_strided_slice %868 {offsets = [2, 128], sizes = [2, 128], strides = [1, 1]} : vector<4x256xf32> to vector<2x128xf32>
    %874 = arith.addf %872, %873 : vector<2x128xf32>
    %875 = tpu.concatenate %871, %874 in 0 : vector<2x128xf32>, vector<2x128xf32> -> vector<4x128xf32>
    %876 = vector.extract_strided_slice %875 {offsets = [0, 0], sizes = [4, 32], strides = [1, 1]} : vector<4x128xf32> to vector<4x32xf32>
    %877 = arith.negf %876 : vector<4x32xf32>
    %878 = math.exp %877 : vector<4x32xf32>
    %cst_275 = arith.constant 1.000000e+00 : f32
    %879 = vector.broadcast %cst_275 : f32 to vector<4x32xf32>
    %880 = arith.addf %879, %878 : vector<4x32xf32>
    %881 = arith.divf %879, %880 : vector<4x32xf32>
    %882 = vector.extract_strided_slice %875 {offsets = [0, 32], sizes = [4, 32], strides = [1, 1]} : vector<4x128xf32> to vector<4x32xf32>
    %883 = arith.negf %882 : vector<4x32xf32>
    %884 = math.exp %883 : vector<4x32xf32>
    %cst_276 = arith.constant 1.000000e+00 : f32
    %885 = vector.broadcast %cst_276 : f32 to vector<4x32xf32>
    %886 = arith.addf %885, %884 : vector<4x32xf32>
    %887 = arith.divf %885, %886 : vector<4x32xf32>
    %888 = vector.extract_strided_slice %875 {offsets = [0, 64], sizes = [4, 32], strides = [1, 1]} : vector<4x128xf32> to vector<4x32xf32>
    %889 = math.tanh %888 : vector<4x32xf32>
    %890 = vector.extract_strided_slice %875 {offsets = [0, 96], sizes = [4, 32], strides = [1, 1]} : vector<4x128xf32> to vector<4x32xf32>
    %891 = arith.negf %890 : vector<4x32xf32>
    %892 = math.exp %891 : vector<4x32xf32>
    %cst_277 = arith.constant 1.000000e+00 : f32
    %893 = vector.broadcast %cst_277 : f32 to vector<4x32xf32>
    %894 = arith.addf %893, %892 : vector<4x32xf32>
    %895 = arith.divf %893, %894 : vector<4x32xf32>
    %896 = arith.mulf %887, %864 : vector<4x32xf32>
    %897 = arith.mulf %881, %889 : vector<4x32xf32>
    %898 = arith.addf %896, %897 : vector<4x32xf32>
    %899 = math.tanh %898 : vector<4x32xf32>
    %900 = arith.mulf %895, %899 : vector<4x32xf32>
    %901 = arith.truncf %900 : vector<4x32xf32> to vector<4x32xbf16>
    %cst_278 = arith.constant dense<0.000000e+00> : vector<4x256xf32>
    %902 = tpu.matmul %901, %761, %cst_278 {dimension_numbers = #tpu.dot_dimension_numbers<[1], [0], [0], [1], [0, 0, 1, 1], [], []>} : vector<4x32xbf16>, vector<32x256xbf16>, vector<4x256xf32> -> vector<4x256xf32>
    %903 = vector.extract_strided_slice %759 {offsets = [8, 0], sizes = [2, 128], strides = [1, 1]} : vector<16x256xf32> to vector<2x128xf32>
    %904 = vector.extract_strided_slice %902 {offsets = [0, 0], sizes = [2, 128], strides = [1, 1]} : vector<4x256xf32> to vector<2x128xf32>
    %905 = arith.addf %903, %904 : vector<2x128xf32>
    %906 = vector.extract_strided_slice %759 {offsets = [6, 128], sizes = [2, 128], strides = [1, 1]} : vector<16x256xf32> to vector<2x128xf32>
    %907 = vector.extract_strided_slice %902 {offsets = [2, 128], sizes = [2, 128], strides = [1, 1]} : vector<4x256xf32> to vector<2x128xf32>
    %908 = arith.addf %906, %907 : vector<2x128xf32>
    %909 = tpu.concatenate %905, %908 in 0 : vector<2x128xf32>, vector<2x128xf32> -> vector<4x128xf32>
    %910 = vector.extract_strided_slice %909 {offsets = [0, 0], sizes = [4, 32], strides = [1, 1]} : vector<4x128xf32> to vector<4x32xf32>
    %911 = arith.negf %910 : vector<4x32xf32>
    %912 = math.exp %911 : vector<4x32xf32>
    %cst_279 = arith.constant 1.000000e+00 : f32
    %913 = vector.broadcast %cst_279 : f32 to vector<4x32xf32>
    %914 = arith.addf %913, %912 : vector<4x32xf32>
    %915 = arith.divf %913, %914 : vector<4x32xf32>
    %916 = vector.extract_strided_slice %909 {offsets = [0, 32], sizes = [4, 32], strides = [1, 1]} : vector<4x128xf32> to vector<4x32xf32>
    %917 = arith.negf %916 : vector<4x32xf32>
    %918 = math.exp %917 : vector<4x32xf32>
    %cst_280 = arith.constant 1.000000e+00 : f32
    %919 = vector.broadcast %cst_280 : f32 to vector<4x32xf32>
    %920 = arith.addf %919, %918 : vector<4x32xf32>
    %921 = arith.divf %919, %920 : vector<4x32xf32>
    %922 = vector.extract_strided_slice %909 {offsets = [0, 64], sizes = [4, 32], strides = [1, 1]} : vector<4x128xf32> to vector<4x32xf32>
    %923 = math.tanh %922 : vector<4x32xf32>
    %924 = vector.extract_strided_slice %909 {offsets = [0, 96], sizes = [4, 32], strides = [1, 1]} : vector<4x128xf32> to vector<4x32xf32>
    %925 = arith.negf %924 : vector<4x32xf32>
    %926 = math.exp %925 : vector<4x32xf32>
    %cst_281 = arith.constant 1.000000e+00 : f32
    %927 = vector.broadcast %cst_281 : f32 to vector<4x32xf32>
    %928 = arith.addf %927, %926 : vector<4x32xf32>
    %929 = arith.divf %927, %928 : vector<4x32xf32>
    %930 = arith.mulf %921, %898 : vector<4x32xf32>
    %931 = arith.mulf %915, %923 : vector<4x32xf32>
    %932 = arith.addf %930, %931 : vector<4x32xf32>
    %933 = math.tanh %932 : vector<4x32xf32>
    %934 = arith.mulf %929, %933 : vector<4x32xf32>
    %935 = arith.truncf %934 : vector<4x32xf32> to vector<4x32xbf16>
    %cst_282 = arith.constant dense<0.000000e+00> : vector<4x256xf32>
    %936 = tpu.matmul %935, %761, %cst_282 {dimension_numbers = #tpu.dot_dimension_numbers<[1], [0], [0], [1], [0, 0, 1, 1], [], []>} : vector<4x32xbf16>, vector<32x256xbf16>, vector<4x256xf32> -> vector<4x256xf32>
    %937 = vector.extract_strided_slice %759 {offsets = [10, 0], sizes = [2, 128], strides = [1, 1]} : vector<16x256xf32> to vector<2x128xf32>
    %938 = vector.extract_strided_slice %936 {offsets = [0, 0], sizes = [2, 128], strides = [1, 1]} : vector<4x256xf32> to vector<2x128xf32>
    %939 = arith.addf %937, %938 : vector<2x128xf32>
    %940 = vector.extract_strided_slice %759 {offsets = [4, 128], sizes = [2, 128], strides = [1, 1]} : vector<16x256xf32> to vector<2x128xf32>
    %941 = vector.extract_strided_slice %936 {offsets = [2, 128], sizes = [2, 128], strides = [1, 1]} : vector<4x256xf32> to vector<2x128xf32>
    %942 = arith.addf %940, %941 : vector<2x128xf32>
    %943 = tpu.concatenate %939, %942 in 0 : vector<2x128xf32>, vector<2x128xf32> -> vector<4x128xf32>
    %944 = vector.extract_strided_slice %943 {offsets = [0, 0], sizes = [4, 32], strides = [1, 1]} : vector<4x128xf32> to vector<4x32xf32>
    %945 = arith.negf %944 : vector<4x32xf32>
    %946 = math.exp %945 : vector<4x32xf32>
    %cst_283 = arith.constant 1.000000e+00 : f32
    %947 = vector.broadcast %cst_283 : f32 to vector<4x32xf32>
    %948 = arith.addf %947, %946 : vector<4x32xf32>
    %949 = arith.divf %947, %948 : vector<4x32xf32>
    %950 = vector.extract_strided_slice %943 {offsets = [0, 32], sizes = [4, 32], strides = [1, 1]} : vector<4x128xf32> to vector<4x32xf32>
    %951 = arith.negf %950 : vector<4x32xf32>
    %952 = math.exp %951 : vector<4x32xf32>
    %cst_284 = arith.constant 1.000000e+00 : f32
    %953 = vector.broadcast %cst_284 : f32 to vector<4x32xf32>
    %954 = arith.addf %953, %952 : vector<4x32xf32>
    %955 = arith.divf %953, %954 : vector<4x32xf32>
    %956 = vector.extract_strided_slice %943 {offsets = [0, 64], sizes = [4, 32], strides = [1, 1]} : vector<4x128xf32> to vector<4x32xf32>
    %957 = math.tanh %956 : vector<4x32xf32>
    %958 = vector.extract_strided_slice %943 {offsets = [0, 96], sizes = [4, 32], strides = [1, 1]} : vector<4x128xf32> to vector<4x32xf32>
    %959 = arith.negf %958 : vector<4x32xf32>
    %960 = math.exp %959 : vector<4x32xf32>
    %cst_285 = arith.constant 1.000000e+00 : f32
    %961 = vector.broadcast %cst_285 : f32 to vector<4x32xf32>
    %962 = arith.addf %961, %960 : vector<4x32xf32>
    %963 = arith.divf %961, %962 : vector<4x32xf32>
    %964 = arith.mulf %955, %932 : vector<4x32xf32>
    %965 = arith.mulf %949, %957 : vector<4x32xf32>
    %966 = arith.addf %964, %965 : vector<4x32xf32>
    %967 = math.tanh %966 : vector<4x32xf32>
    %968 = arith.mulf %963, %967 : vector<4x32xf32>
    %969 = arith.truncf %968 : vector<4x32xf32> to vector<4x32xbf16>
    %cst_286 = arith.constant dense<0.000000e+00> : vector<4x256xf32>
    %970 = tpu.matmul %969, %761, %cst_286 {dimension_numbers = #tpu.dot_dimension_numbers<[1], [0], [0], [1], [0, 0, 1, 1], [], []>} : vector<4x32xbf16>, vector<32x256xbf16>, vector<4x256xf32> -> vector<4x256xf32>
    %971 = vector.extract_strided_slice %759 {offsets = [12, 0], sizes = [2, 128], strides = [1, 1]} : vector<16x256xf32> to vector<2x128xf32>
    %972 = vector.extract_strided_slice %970 {offsets = [0, 0], sizes = [2, 128], strides = [1, 1]} : vector<4x256xf32> to vector<2x128xf32>
    %973 = arith.addf %971, %972 : vector<2x128xf32>
    %974 = vector.extract_strided_slice %759 {offsets = [2, 128], sizes = [2, 128], strides = [1, 1]} : vector<16x256xf32> to vector<2x128xf32>
    %975 = vector.extract_strided_slice %970 {offsets = [2, 128], sizes = [2, 128], strides = [1, 1]} : vector<4x256xf32> to vector<2x128xf32>
    %976 = arith.addf %974, %975 : vector<2x128xf32>
    %977 = tpu.concatenate %973, %976 in 0 : vector<2x128xf32>, vector<2x128xf32> -> vector<4x128xf32>
    %978 = vector.extract_strided_slice %977 {offsets = [0, 0], sizes = [4, 32], strides = [1, 1]} : vector<4x128xf32> to vector<4x32xf32>
    %979 = arith.negf %978 : vector<4x32xf32>
    %980 = math.exp %979 : vector<4x32xf32>
    %cst_287 = arith.constant 1.000000e+00 : f32
    %981 = vector.broadcast %cst_287 : f32 to vector<4x32xf32>
    %982 = arith.addf %981, %980 : vector<4x32xf32>
    %983 = arith.divf %981, %982 : vector<4x32xf32>
    %984 = vector.extract_strided_slice %977 {offsets = [0, 32], sizes = [4, 32], strides = [1, 1]} : vector<4x128xf32> to vector<4x32xf32>
    %985 = arith.negf %984 : vector<4x32xf32>
    %986 = math.exp %985 : vector<4x32xf32>
    %cst_288 = arith.constant 1.000000e+00 : f32
    %987 = vector.broadcast %cst_288 : f32 to vector<4x32xf32>
    %988 = arith.addf %987, %986 : vector<4x32xf32>
    %989 = arith.divf %987, %988 : vector<4x32xf32>
    %990 = vector.extract_strided_slice %977 {offsets = [0, 64], sizes = [4, 32], strides = [1, 1]} : vector<4x128xf32> to vector<4x32xf32>
    %991 = math.tanh %990 : vector<4x32xf32>
    %992 = vector.extract_strided_slice %977 {offsets = [0, 96], sizes = [4, 32], strides = [1, 1]} : vector<4x128xf32> to vector<4x32xf32>
    %993 = arith.negf %992 : vector<4x32xf32>
    %994 = math.exp %993 : vector<4x32xf32>
    %cst_289 = arith.constant 1.000000e+00 : f32
    %995 = vector.broadcast %cst_289 : f32 to vector<4x32xf32>
    %996 = arith.addf %995, %994 : vector<4x32xf32>
    %997 = arith.divf %995, %996 : vector<4x32xf32>
    %998 = arith.mulf %989, %966 : vector<4x32xf32>
    %999 = arith.mulf %983, %991 : vector<4x32xf32>
    %1000 = arith.addf %998, %999 : vector<4x32xf32>
    %1001 = math.tanh %1000 : vector<4x32xf32>
    %1002 = arith.mulf %997, %1001 : vector<4x32xf32>
    %1003 = arith.truncf %1002 : vector<4x32xf32> to vector<4x32xbf16>
    %cst_290 = arith.constant dense<0.000000e+00> : vector<4x256xf32>
    %1004 = tpu.matmul %1003, %761, %cst_290 {dimension_numbers = #tpu.dot_dimension_numbers<[1], [0], [0], [1], [0, 0, 1, 1], [], []>} : vector<4x32xbf16>, vector<32x256xbf16>, vector<4x256xf32> -> vector<4x256xf32>
    %1005 = vector.extract_strided_slice %759 {offsets = [14, 0], sizes = [2, 128], strides = [1, 1]} : vector<16x256xf32> to vector<2x128xf32>
    %1006 = vector.extract_strided_slice %1004 {offsets = [0, 0], sizes = [2, 128], strides = [1, 1]} : vector<4x256xf32> to vector<2x128xf32>
    %1007 = arith.addf %1005, %1006 : vector<2x128xf32>
    %1008 = vector.extract_strided_slice %759 {offsets = [0, 128], sizes = [2, 128], strides = [1, 1]} : vector<16x256xf32> to vector<2x128xf32>
    %1009 = vector.extract_strided_slice %1004 {offsets = [2, 128], sizes = [2, 128], strides = [1, 1]} : vector<4x256xf32> to vector<2x128xf32>
    %1010 = arith.addf %1008, %1009 : vector<2x128xf32>
    %1011 = tpu.concatenate %1007, %1010 in 0 : vector<2x128xf32>, vector<2x128xf32> -> vector<4x128xf32>
    %1012 = vector.extract_strided_slice %1011 {offsets = [0, 0], sizes = [4, 32], strides = [1, 1]} : vector<4x128xf32> to vector<4x32xf32>
    %1013 = arith.negf %1012 : vector<4x32xf32>
    %1014 = math.exp %1013 : vector<4x32xf32>
    %cst_291 = arith.constant 1.000000e+00 : f32
    %1015 = vector.broadcast %cst_291 : f32 to vector<4x32xf32>
    %1016 = arith.addf %1015, %1014 : vector<4x32xf32>
    %1017 = arith.divf %1015, %1016 : vector<4x32xf32>
    %1018 = vector.extract_strided_slice %1011 {offsets = [0, 32], sizes = [4, 32], strides = [1, 1]} : vector<4x128xf32> to vector<4x32xf32>
    %1019 = arith.negf %1018 : vector<4x32xf32>
    %1020 = math.exp %1019 : vector<4x32xf32>
    %cst_292 = arith.constant 1.000000e+00 : f32
    %1021 = vector.broadcast %cst_292 : f32 to vector<4x32xf32>
    %1022 = arith.addf %1021, %1020 : vector<4x32xf32>
    %1023 = arith.divf %1021, %1022 : vector<4x32xf32>
    %1024 = vector.extract_strided_slice %1011 {offsets = [0, 64], sizes = [4, 32], strides = [1, 1]} : vector<4x128xf32> to vector<4x32xf32>
    %1025 = math.tanh %1024 : vector<4x32xf32>
    %1026 = vector.extract_strided_slice %1011 {offsets = [0, 96], sizes = [4, 32], strides = [1, 1]} : vector<4x128xf32> to vector<4x32xf32>
    %1027 = arith.negf %1026 : vector<4x32xf32>
    %1028 = math.exp %1027 : vector<4x32xf32>
    %cst_293 = arith.constant 1.000000e+00 : f32
    %1029 = vector.broadcast %cst_293 : f32 to vector<4x32xf32>
    %1030 = arith.addf %1029, %1028 : vector<4x32xf32>
    %1031 = arith.divf %1029, %1030 : vector<4x32xf32>
    %1032 = arith.mulf %1023, %1000 : vector<4x32xf32>
    %1033 = arith.mulf %1017, %1025 : vector<4x32xf32>
    %1034 = arith.addf %1032, %1033 : vector<4x32xf32>
    %1035 = math.tanh %1034 : vector<4x32xf32>
    %1036 = arith.mulf %1031, %1035 : vector<4x32xf32>
    %1037 = vector.extract_strided_slice %1036 {offsets = [0, 0], sizes = [2, 32], strides = [1, 1]} : vector<4x32xf32> to vector<2x32xf32>
    %1038 = tpu.concatenate %1037, %798 in 1 : vector<2x32xf32>, vector<2x32xf32> -> vector<2x64xf32>
    %1039 = arith.truncf %1038 : vector<2x64xf32> to vector<2x64xbf16>
    %c0_294 = arith.constant 0 : index
    %c0_295 = arith.constant 0 : index
    %1040 = vector.load %arg13[%c0_294, %c0_295] : memref<64x2xbf16, #tpu.memory_space<vmem>>, vector<64x2xbf16>
    %cst_296 = arith.constant dense<0.000000e+00> : vector<2x2xf32>
    %1041 = tpu.matmul %1039, %1040, %cst_296 {dimension_numbers = #tpu.dot_dimension_numbers<[1], [0], [0], [1], [0, 0, 1, 1], [], []>} : vector<2x64xbf16>, vector<64x2xbf16>, vector<2x2xf32> -> vector<2x2xf32>
    %c0_297 = arith.constant 0 : index
    %c0_298 = arith.constant 0 : index
    %1042 = vector.load %arg14[%c0_297, %c0_298] : memref<1x2xf32, #tpu.memory_space<vmem>>, vector<1x2xf32>
    %1043 = vector.broadcast %1042 : vector<1x2xf32> to vector<2x2xf32>
    %1044 = arith.addf %1041, %1043 : vector<2x2xf32>
    %c0_299 = arith.constant 0 : index
    %c0_300 = arith.constant 0 : index
    %1045 = vector.load %arg15[%c0_299, %c0_300] : memref<2x2xf32, #tpu.memory_space<vmem>>, vector<2x2xf32>
    tpu.vector_store %arg15[%c0_299, %c0_300], %1044 {strides = array<i32>} : memref<2x2xf32, #tpu.memory_space<vmem>>, vector<2x2xf32>,
    return
  }
}

</mosaic_0001>

<bundles_post_ra>
// kernel: forward.1
= control target key start
LH: loop header
LB: loop body
LE: loop exit
PB: predicated region body
PF: predicated region fallthrough
CT: control target
= control target key end

     0   :  { %vm69_vm0 = vcmask 523264   ;;  %s5757_s0 = inlined_call_operand.vmem [shape: f32[16,64], index: 0, kind: input, shape index: {}]   ;;  %s5758_s1 = inlined_call_operand.vmem [shape: f32[2,8], index: 1, kind: input, shape index: {}]   ;;  %s5759_s2 = inlined_call_operand.vmem [shape: f32[2,64], index: 2, kind: input, shape index: {}]   ;;  %s5760_s3 = inlined_call_operand.vmem [shape: bf16[2,64,192], index: 3, kind: input, shape index: {}]   ;;  %s5761_s4 = inlined_call_operand.vmem [shape: f32[2,192], index: 4, kind: input, shape index: {}]   ;;  %s5762_s5 = inlined_call_operand.vmem [shape: bf16[2,64,64], index: 5, kind: input, shape index: {}]   ;;  %s5763_s6 = inlined_call_operand.vmem [shape: bf16[2,64,128], index: 6, kind: input, shape index: {}]   ;;  %s5764_s7 = inlined_call_operand.vmem [shape: f32[2,128], index: 7, kind: input, shape index: {}]   ;;  %s5765_s8 = inlined_call_operand.vmem [shape: bf16[2,128,64], index: 8, kind: input, shape index: {}]   ;;  %s5766_s9 = inlined_call_operand.vmem [shape: f32[2,6,64], index: 9, kind: input, shape index: {}]   ;;  %s5767_s10 = inlined_call_operand.vmem [shape: bf16[2,64,256], index: 10, kind: input, shape index: {}]   ;;  %s5768_s11 = inlined_call_operand.vmem [shape: f32[2,256], index: 11, kind: input, shape index: {}]   ;;  %s5769_s12 = inlined_call_operand.vmem [shape: bf16[2,32,256], index: 12, kind: input, shape index: {}]   ;;  %s5770_s13 = inlined_call_operand.vmem [shape: bf16[64,2], index: 13, kind: input, shape index: {}]   ;;  %s5771_s14 = inlined_call_operand.vmem [shape: f32[1,2], index: 14, kind: input, shape index: {}]   ;;  %s5772_s15 = inlined_call_operand.hbm [shape: f32[2,2], index: 15, kind: output, shape index: {}]  }
   0x1   :  { %v67_v0 = vld [vmem:[%s5757_s0] sm:$0xff]  ;;  %v68_v1 = vld [vmem:[%s5757_s0 + $0x8] sm:$0xff] }
   0x2   :  { %v70_v2 = vsel %vm69_vm0, %v67_v0, 0.0  ;;  %v73_v3 = vsel %vm69_vm0, %v68_v1, 0.0 }
   0x3   :  { %71 = vadd.xlane.f32.xlu0 %v70_v2 }
   0x7   :  { %74 = vadd.xlane.f32.xlu0 %v73_v3 }
   0x8   :  { %20 = vsyncpa [#allocation7], 0  ;;  %v4377_v14 = vld [vmem:[%s5760_s3 + $0x4] ss:$8 sps:$4 sm:$0xff]   ;;  %v4379_v15 = vld [vmem:[%s5760_s3] ss:$8 sps:$4 sm:$0xff]   ;;  %v59_v27 = vlaneseq }
   0x9   :  { %v4380_v16 = vld [vmem:[%s5760_s3 + $0x14] ss:$8 sps:$4 sm:$0xff]   ;;  %180 = vmatprep.subr.bf16.mxu0 %v4377_v14  ;;  %v4382_v17 = vld [vmem:[%s5760_s3 + $0x10] ss:$8 sps:$4 sm:$0xff]   ;;  %v4693_v18 = vmov 0   ;;  %v4694_v45 = vmov 0.0  }
   0xa   :  { %181 = vmatpush1.bf16.msra.mxu0 %v4379_v15  ;;  %212 = vmatprep.mubr.bf16.mxu0 %v4693_v18  ;;  %v4383_v19 = vld [vmem:[%s5760_s3 + $0x24] ss:$8 sps:$4 sm:$0xff]   ;;  %v4385_v20 = vld [vmem:[%s5760_s3 + $0x20] ss:$8 sps:$4 sm:$0xff]   ;;  %v4386_v21 = vld [vmem:[%s5760_s3 + $0x34] ss:$8 sps:$4 sm:$0xff]  }
   0xb   :  { %182 = vmatprep.subr.bf16.mxu0 %v4380_v16  ;;  %v4388_v22 = vld [vmem:[%s5760_s3 + $0x30] ss:$8 sps:$4 sm:$0xff]   ;;  %v4816_v30 = vshrl.u32 %v59_v27, 7  ;;  %v52_v32 = vld [vmem:[%s5759_s2] sm:$0x3]  ;;  %4173 = vmatprep.subr.bf16.mxu1 %v4694_v45  ;;  %vm4695_vm1 = vmmov 0  }
   0xc   :  { %v4841_v46 = vld [vmem:[%s5761_s4] sm:$0xf]  ;;  %4175 = vmatprep.mubr.msk.bf16.mxu1 %vm4695_vm1, %v4694_v45  ;;  %vm487_vm2 = vcmask 1043456   ;;  %s4696_s4 = smov 32   ;;  %s4697_s24 = smov 64   ;;  %vm227_vm3 = vcmask 261120  }
   0xd   :  { %v4819_v31 = vsub.s32 0, %v4816_v30  ;;  %v4825_v34 = vsub.s32 1, %v4816_v30  ;;  %v4844_v47 = vsub.s32 2, %v4816_v30  ;;  %s4698_s25 = smov 96   ;;  %vm274_vm4 = vcmask 64512  }
   0xe   :  { %183 = vmatpush1.bf16.msra.mxu0 %v4382_v17  ;;  %vm587_vm5 = vcmask 523520   ;;  %vm2092_vm10 = vcmask 516096   ;;  %vm2094_vm11 = vcmask 517121   ;;  %vm2096_vm12 = vcmask 518146  }
   0xf   :  { %184 = vmatprep.subr.bf16.mxu0 %v4383_v19  ;;  %v100_v36 = vrot.slane %v52_v32, %v4819_v31  ;;  %v106_v40 = vrot.slane %v52_v32, %v4825_v34  ;;  %v122_v48 = vrot.slane %v4841_v46, %v4819_v31  ;;  %v126_v49 = vrot.slane %v4841_v46, %v4844_v47 }
  0x10   :  { %vm2098_vm13 = vcmask 519171   ;;  %vm2100_vm14 = vcmask 520196   ;;  %vm2102_vm15 = vcmask 521221  }
  0x11   :  { %v132_v50 = vrot.slane %v122_v48, %v4819_v31  ;;  %v136_v51 = vrot.slane %v126_v49, %v4819_v31 }
  0x12   :  { %185 = vmatpush1.bf16.msra.mxu0 %v4385_v20 }
  0x13   :  { %186 = vmatprep.subr.bf16.mxu0 %v4386_v21 }
  0x16   :  { %187 = vmatpush1.bf16.msra.mxu0 %v4388_v22 }
  0x17   :  { %4197 = vmatprep.subr.bf16.mxu0 %v4694_v45 }
  0x90   :  { %v72_v4 = vpop.xlane.xlu0 %71 }
  0x91   :  { %v77_v5 = vmul.f32 0.015625, %v72_v4 }
  0x93   :  { %v79_v6 = vsub.f32 %v67_v0, %v77_v5 }
  0x94   :  { %v75_v7 = vpop.xlane.xlu0 %74 }
  0x95   :  { %v78_v8 = vmul.f32 0.015625, %v75_v7  ;;  %v81_v9 = vmul.f32 %v79_v6, %v79_v6 }
  0x97   :  { %v80_v10 = vsub.f32 %v68_v1, %v78_v8  ;;  %v83_v11 = vsel %vm69_vm0, %v81_v9, 0.0 }
  0x98   :  { %84 = vadd.xlane.f32.xlu1 %v83_v11 }
  0x99   :  { %v82_v12 = vmul.f32 %v80_v10, %v80_v10 }
  0x9b   :  { %v86_v13 = vsel %vm69_vm0, %v82_v12, 0.0 }
  0x9c   :  { %87 = vadd.xlane.f32.xlu1 %v86_v13  ;;  %v58_v13 = vld [vmem:[%s5758_s1] sm:$0x3] }
  0x9d   :  { %v4894_v15 = vrot.slane %v58_v13, %v4819_v31 }
 0x125   :  { %v85_v23 = vpop.xlane.xlu1 %84 }
 0x126   :  { %v89_v24 = vmul.f32 0.015625, %v85_v23 }
 0x128   :  { %v91_v25 = vadd.f32 1e-12, %v89_v24 }
 0x129   :  { %v88_v26 = vpop.xlane.xlu1 %87 }
 0x12a   :  { %4473 = vrsqrt.f32 %v91_v25  ;;  %v90_v28 = vmul.f32 0.015625, %v88_v26 }
 0x12c   :  { %v92_v29 = vadd.f32 1e-12, %v90_v28 }
 0x12e   :  { %4475 = vrsqrt.f32 %v92_v29 }
 0x134   :  { %v4474_v33 = vpop.eup %4473 }
 0x135   :  { %v95_v35 = vmul.f32 %v4474_v33, %v79_v6  ;;  %v4903_v33 = vrot.slane %v58_v13, %v4825_v34 }
 0x137   :  { %v101_v39 = vmul.f32 %v100_v36, %v95_v35 }
 0x138   :  { %v4476_v37 = vpop.eup %4475 }
 0x139   :  { %v96_v38 = vmul.f32 %v4476_v37, %v80_v10  ;;  %v4829_v42 = vadd.f32 %v106_v40, %v101_v39 }
 0x13b   :  { %v102_v41 = vmul.f32 %v100_v36, %v96_v38 }
 0x13d   :  { %v4831_v43 = vadd.f32 %v106_v40, %v102_v41 }
 0x13f   :  { %v109_v44 = vpack.c.bf16 %v4831_v43, %v4829_v42 }
 0x141   :  { %3922 = vmatmul.mubr.msk.bf16.vlgmr.msra.gmra.mrb[0].mxu0 %vm69_vm0, %v109_v44 }
 0x142   :  { %4199 = vmatprep.mubr.msk.bf16.mxu0 %vm4695_vm1, %v4694_v45 }
 0x214   :  { %v214_v52 = vpop.f32.mrb[0].mxu0 }
 0x215   :  { %v215_v53 = vadd.f32 %v214_v52, %v132_v50  ;;  %v216_v54 = vpop.f32.mrb[1].mxu0 }
 0x216   :  { %v217_v55 = vadd.f32 %v216_v54, %v136_v51  ;;  %v218_v56 = vpop.f32.mrb[2].mxu0 }
 0x217   :  { %v223_v57 = vpack.c.bf16 %v215_v53, %v215_v53  ;;  %v219_v58 = vadd.f32 %v218_v56, %v132_v50  ;;  %v220_v59 = vpop.f32.mrb[3].mxu0 }
 0x218   :  { %v4856_v60 = vpack.c.bf16 %v217_v55, %v217_v55  ;;  %v4858_v61 = vadd.f32 %v220_v59, %v136_v51 }
 0x219   :  { %278 = vrot.lane.b32.xlu1 %v223_v57, %s4696_s4  ;;  %225 = vrot.lane.b32.xlu0 %v223_v57, %s4697_s24  ;;  %v327_v63 = vpack.c.bf16 %v219_v58, %v219_v58 }
 0x21a   :  { %v489_v62 = vsel %vm487_vm2, %v4856_v60, 0 }
 0x21b   :  { %4198 = vmatpush3.bf16.msra.mxu0 %v489_v62 }
 0x21c   :  { %4209 = vmatprep.subr.bf16.mxu0 %v4694_v45 }
 0x21d   :  { %276 = vrot.lane.b32.xlu1 %v223_v57, %s4698_s25  ;;  %380 = vrot.lane.b32.xlu0 %v327_v63, %s4696_s4 }
 0x221   :  { %329 = vrot.lane.b32.xlu1 %v327_v63, %s4697_s24 }
 0x225   :  { %378 = vrot.lane.b32.xlu1 %v327_v63, %s4698_s25 }
 0x28b   :  { %v226_v0 = vpop.permute.xlu0 %225  ;;  %v279_v2 = vpop.permute.xlu1 %278 }
 0x28c   :  { %v232_v1 = vsel %vm227_vm3, %v226_v0, 0  ;;  %v284_v4 = vsel %vm227_vm3, %v279_v2, 0 }
 0x28d   :  { %4174 = vmatpush3.bf16.xpose.msra.mxu1 %v232_v1 }
 0x28e   :  { %4179 = vmatprep.subr.bf16.mxu1 %v4694_v45 }
 0x28f   :  { %v277_v3 = vpop.permute.xlu1 %276  ;;  %v381_v7 = vpop.permute.xlu0 %380 }
 0x290   :  { %v386_v8 = vsel %vm227_vm3, %v381_v7, 0 }
 0x293   :  { %v330_v5 = vpop.permute.xlu1 %329 }
 0x294   :  { %4176 = vmatmul.mubr.msk.bf16.vlgmr.msra.gmra.mrb[0].mxu1 %vm227_vm3, %v223_v57  ;;  %v335_v6 = vsel %vm227_vm3, %v330_v5, 0 }
 0x295   :  { %4180 = vmatpush3.bf16.xpose.msra.mxu1 %v284_v4  ;;  %4181 = vmatprep.mubr.msk.bf16.mxu1 %vm4695_vm1, %v4694_v45 }
 0x296   :  { %4185 = vmatprep.subr.bf16.mxu1 %v4694_v45 }
 0x297   :  { %v379_v9 = vpop.permute.xlu1 %378 }
 0x29c   :  { %4182 = vmatmul.mubr.msk.bf16.vlgmr.msra.gmra.mrb[4].mxu1 %vm227_vm3, %v277_v3 }
 0x29d   :  { %4186 = vmatpush3.bf16.xpose.msra.mxu1 %v335_v6  ;;  %4187 = vmatprep.mubr.msk.bf16.mxu1 %vm4695_vm1, %v4694_v45 }
 0x29e   :  { %4191 = vmatprep.subr.bf16.mxu1 %v4694_v45 }
 0x2a4   :  { %4188 = vmatmul.mubr.msk.bf16.vlgmr.msra.gmra.mrb[8].mxu1 %vm227_vm3, %v327_v63 }
 0x2a5   :  { %4192 = vmatpush3.bf16.xpose.msra.mxu1 %v386_v8  ;;  %4193 = vmatprep.mubr.msk.bf16.mxu1 %vm4695_vm1, %v4694_v45  ;;  %v589_v8 = vpack.c.bf16 %v4858_v61, %v4858_v61 }
 0x2a6   :  { %4203 = vmatprep.subr.bf16.mxu1 %v4694_v45 }
 0x2ac   :  { %4194 = vmatmul.mubr.msk.bf16.vlgmr.msra.gmra.mrb[12].mxu1 %vm227_vm3, %v379_v9 }
 0x2ad   :  { %4205 = vmatprep.mubr.msk.bf16.mxu1 %vm4695_vm1, %v4694_v45 }
 0x367   :  { %v268_v10 = vpop.f32.mrb[0].mxu1 }
 0x368   :  { %275 = vst.msk [vmem:[#allocation2] sm:$0xff] %vm274_vm4, %v268_v10  ;;  %v4177_v11 = vpop.f32.mrb[1].mxu1 }
 0x369   :  { %v271_v12 = vpop.f32.mrb[2].mxu1 }
 0x36a   :  { %v4178_v14 = vpop.f32.mrb[3].mxu1 }
 0x36f   :  { %v320_v16 = vpop.f32.mrb[4].mxu1  ;;  %v429_v17 = vld [vmem:[#allocation2] sm:$0xff] }
 0x370   :  { %326 = vst.msk [vmem:[#allocation2 + $0x8] sm:$0xff] %vm274_vm4, %v320_v16  ;;  %v4183_v19 = vpop.f32.mrb[5].mxu1  ;;  %v433_v20 = vadd.f32 %v429_v17, %v4894_v15 }
 0x371   :  { %v323_v21 = vpop.f32.mrb[6].mxu1 }
 0x372   :  { %v4184_v22 = vpop.f32.mrb[7].mxu1  ;;  %v437_v23 = vsel %vm274_vm4, %v433_v20, -inf }
 0x373   :  { %438 = vmax.xlane.f32.xlu0 %v437_v23 }
 0x377   :  { %v371_v24 = vpop.f32.mrb[8].mxu1  ;;  %v430_v25 = vld [vmem:[#allocation2 + $0x8] sm:$0xff] }
 0x378   :  { %377 = vst.msk [vmem:[#allocation2 + $0x10] sm:$0xff] %vm274_vm4, %v371_v24  ;;  %v4189_v26 = vpop.f32.mrb[9].mxu1  ;;  %v434_v27 = vadd.f32 %v430_v25, %v4894_v15 }
 0x379   :  { %v374_v28 = vpop.f32.mrb[10].mxu1 }
 0x37a   :  { %v4190_v29 = vpop.f32.mrb[11].mxu1  ;;  %v440_v32 = vsel %vm274_vm4, %v434_v27, -inf }
 0x37b   :  { %441 = vmax.xlane.f32.xlu1 %v440_v32  ;;  %v4389_v32 = vld [vmem:[%s5762_s5] sm:$0xff]  }
 0x37f   :  { %v422_v35 = vpop.f32.mrb[12].mxu1  ;;  %v431_v36 = vld [vmem:[#allocation2 + $0x10] sm:$0xff] }
 0x380   :  { %428 = vst.msk [vmem:[#allocation2 + $0x18] sm:$0xff] %vm274_vm4, %v422_v35  ;;  %v4195_v37 = vpop.f32.mrb[13].mxu1  ;;  %v435_v38 = vadd.f32 %v431_v36, %v4903_v33  ;;  %v4390_v35 = vld [vmem:[%s5762_s5 + $0x8] sm:$0xff]  }
 0x381   :  { %v425_v39 = vpop.f32.mrb[14].mxu1 }
 0x382   :  { %v4196_v40 = vpop.f32.mrb[15].mxu1  ;;  %v443_v41 = vsel %vm274_vm4, %v435_v38, -inf }
 0x383   :  { %444 = vmax.xlane.f32.xlu0 %v443_v41 }
 0x387   :  { %v432_v44 = vld [vmem:[#allocation2 + $0x18] sm:$0xff] }
 0x388   :  { %v436_v48 = vadd.f32 %v432_v44, %v4903_v33 }
 0x38a   :  { %v446_v49 = vsel %vm274_vm4, %v436_v48, -inf }
 0x38b   :  { %447 = vmax.xlane.f32.xlu0 %v446_v49  ;;  %v4391_v49 = vld [vmem:[%s5762_s5 + $0x10] sm:$0xff]  }
 0x400   :  { %v439_v50 = vpop.xlane.xlu0 %438 }
 0x401   :  { %v449_v51 = vsub.f32 %v433_v20, %v439_v50  ;;  %v4392_v50 = vld [vmem:[%s5762_s5 + $0x18] sm:$0xff]  }
 0x403   :  { %v453_v52 = vmul.f32 1.442695, %v449_v51 }
 0x405   :  { %4477 = vpow2.f32 %v453_v52 }
 0x408   :  { %v442_v53 = vpop.xlane.xlu1 %441 }
 0x409   :  { %v450_v54 = vsub.f32 %v434_v27, %v442_v53 }
 0x40b   :  { %v455_v55 = vmul.f32 1.442695, %v450_v54 }
 0x40d   :  { %4479 = vpow2.f32 %v455_v55 }
 0x40f   :  { %v4478_v56 = vpop.eup %4477 }
 0x410   :  { %v445_v57 = vpop.xlane.xlu0 %444  ;;  %v461_v58 = vsel %vm274_vm4, %v4478_v56, 0.0 }
 0x411   :  { %v451_v59 = vsub.f32 %v435_v38, %v445_v57  ;;  %462 = vadd.xlane.f32.xlu0 %v461_v58 }
 0x413   :  { %v457_v62 = vmul.f32 1.442695, %v451_v59 }
 0x415   :  { %4481 = vpow2.f32 %v457_v62 }
 0x417   :  { %v4480_v63 = vpop.eup %4479 }
 0x418   :  { %v448_v0 = vpop.xlane.xlu0 %447  ;;  %v464_v1 = vsel %vm274_vm4, %v4480_v63, 0.0 }
 0x419   :  { %v452_v2 = vsub.f32 %v436_v48, %v448_v0  ;;  %465 = vadd.xlane.f32.xlu1 %v464_v1 }
 0x41b   :  { %v459_v3 = vmul.f32 1.442695, %v452_v2  ;;  %v4965_v2 = vld [vmem:[%s5766_s9] sm:$0x3f] }
 0x41d   :  { %4483 = vpow2.f32 %v459_v3  ;;  %v707_v3 = vrot.slane %v4965_v2, %v4819_v31 }
 0x41f   :  { %v4482_v4 = vpop.eup %4481 }
 0x420   :  { %v467_v5 = vsel %vm274_vm4, %v4482_v4, 0.0 }
 0x421   :  { %468 = vadd.xlane.f32.xlu0 %v467_v5 }
 0x427   :  { %v4484_v6 = vpop.eup %4483 }
 0x428   :  { %v470_v7 = vsel %vm274_vm4, %v4484_v6, 0.0 }
 0x429   :  { %471 = vadd.xlane.f32.xlu1 %v470_v7 }
 0x437   :  { %535 = vrot.lane.b32.xlu0 %v4856_v60, %s4698_s25  ;;  %v594_v60 = vsel %vm487_vm2, %v589_v8, 0 }
 0x43a   :  { %640 = vrot.lane.b32.xlu1 %v589_v8, %s4698_s25 }
 0x49e   :  { %v463_v9 = vpop.xlane.xlu0 %462 }
 0x49f   :  { %4485 = vrcp.f32 %v463_v9 }
 0x4a6   :  { %v466_v10 = vpop.xlane.xlu1 %465 }
 0x4a7   :  { %4487 = vrcp.f32 %v466_v10 }
 0x4a9   :  { %v4486_v12 = vpop.eup %4485 }
 0x4aa   :  { %v477_v14 = vmul.f32 %v4486_v12, %v4478_v56 }
 0x4ae   :  { %v469_v11 = vpop.xlane.xlu0 %468 }
 0x4af   :  { %4489 = vrcp.f32 %v469_v11 }
 0x4b1   :  { %v4488_v13 = vpop.eup %4487 }
 0x4b2   :  { %v478_v16 = vmul.f32 %v4488_v13, %v4480_v63  ;;  %v536_v17 = vpop.permute.xlu0 %535 }
 0x4b3   :  { %v541_v19 = vsel %vm487_vm2, %v536_v17, 0 }
 0x4b4   :  { %4204 = vmatpush3.bf16.msra.mxu1 %v541_v19  ;;  %v481_v20 = vpack.c.bf16 %v478_v16, %v477_v14 }
 0x4b5   :  { %4215 = vmatprep.subr.bf16.mxu1 %v4694_v45 }
 0x4b6   :  { %v472_v61 = vpop.xlane.xlu1 %471  ;;  %4200 = vmatmul.mubr.msk.bf16.vlgmr.msra.gmra.mrb[4].mxu0 %vm274_vm4, %v481_v20  ;;  %v533_v21 = vrot.slane %v481_v20, 4 }
 0x4b7   :  { %4491 = vrcp.f32 %v472_v61  ;;  %4210 = vmatpush3.bf16.msra.mxu0 %v594_v60  ;;  %4211 = vmatprep.mubr.msk.bf16.mxu0 %vm4695_vm1, %v4694_v45 }
 0x4b8   :  { %4206 = vmatmul.mubr.msk.bf16.vlgmr.msra.gmra.mrb[16].mxu1 %vm274_vm4, %v533_v21  ;;  %4221 = vmatprep.subr.bf16.mxu0 %v4694_v45 }
 0x4b9   :  { %4217 = vmatprep.mubr.msk.bf16.mxu1 %vm4695_vm1, %v4694_v45  ;;  %v4490_v24 = vpop.eup %4489 }
 0x4ba   :  { %v641_v22 = vpop.permute.xlu1 %640  ;;  %v479_v26 = vmul.f32 %v4490_v24, %v4482_v4  ;;  %v4395_v24 = vld [vmem:[%s5763_s6 + $0x10] sm:$0xff]  }
 0x4bb   :  { %v646_v23 = vsel %vm487_vm2, %v641_v22, 0 }
 0x4bc   :  { %4216 = vmatpush3.bf16.msra.mxu1 %v646_v23  ;;  %v4394_v23 = vld [vmem:[%s5763_s6 + $0x8] sm:$0xff]  }
 0x4bd   :  { %4233 = vmatprep.subr.bf16.mxu1 %v4694_v45 }
 0x4c1   :  { %v4492_v25 = vpop.eup %4491 }
 0x4c2   :  { %v480_v27 = vmul.f32 %v4492_v25, %v4484_v6  ;;  %v4396_v25 = vld [vmem:[%s5763_s6 + $0x18] sm:$0xff]  }
 0x4c4   :  { %v482_v28 = vpack.c.bf16 %v480_v27, %v479_v26 }
 0x4c6   :  { %4212 = vmatmul.mubr.msk.bf16.vlgmr.msra.gmra.mrb[8].mxu0 %vm274_vm4, %v482_v28  ;;  %v638_v29 = vrot.slane %v482_v28, 4 }
 0x4c7   :  { %4229 = vmatprep.mubr.msk.bf16.mxu0 %vm4695_vm1, %v4694_v45  ;;  %4222 = vmatpush3.bf16.msra.mxu0 %v4389_v32 }
 0x4c8   :  { %4218 = vmatmul.mubr.msk.bf16.vlgmr.msra.gmra.mrb[20].mxu1 %vm274_vm4, %v638_v29  ;;  %4223 = vmatprep.subr.bf16.mxu0 %v4694_v45 }
 0x4c9   :  { %4241 = vmatprep.mubr.msk.bf16.mxu1 %vm4695_vm1, %v4694_v45 }
 0x4cb   :  { %4224 = vmatpush3.bf16.msra.mxu0 %v4390_v35 }
 0x4cc   :  { %4225 = vmatprep.subr.bf16.mxu0 %v4694_v45 }
 0x4cf   :  { %4226 = vmatpush3.bf16.msra.mxu0 %v4391_v49 }
 0x4d0   :  { %4227 = vmatprep.subr.bf16.mxu0 %v4694_v45 }
 0x4d3   :  { %4228 = vmatpush3.bf16.msra.mxu0 %v4392_v50 }
 0x4d4   :  { %4245 = vmatprep.subr.bf16.mxu0 %v4694_v45 }
 0x589   :  { %v525_v36 = vpop.f32.mrb[4].mxu0 }
 0x58a   :  { %531 = vst.msk [vmem:[#allocation3] sm:$0xff] %vm227_vm3, %v525_v36  ;;  %v4201_v37 = vpop.f32.mrb[5].mxu0 }
 0x58b   :  { %v528_v38 = vpop.f32.mrb[6].mxu0  ;;  %v577_v39 = vpop.f32.mrb[16].mxu1  ;;  %v807_v37 = vrot.slane %v4965_v2, %v4825_v34 }
 0x58c   :  { %v4202_v40 = vpop.f32.mrb[7].mxu0  ;;  %584 = vrot.lane.b32.xlu1 %v577_v39, %s4696_s4  ;;  %v4207_v41 = vpop.f32.mrb[17].mxu1 }
 0x58d   :  { %v580_v44 = vpop.f32.mrb[18].mxu1 }
 0x58e   :  { %v4208_v48 = vpop.f32.mrb[19].mxu1  ;;  %v813_v44 = vrot.slane %v4965_v2, %v4844_v47 }
 0x599   :  { %v630_v51 = vpop.f32.mrb[8].mxu0 }
 0x59a   :  { %636 = vst.msk [vmem:[#allocation3 + $0x8] sm:$0xff] %vm227_vm3, %v630_v51  ;;  %v4213_v52 = vpop.f32.mrb[9].mxu0 }
 0x59b   :  { %v633_v53 = vpop.f32.mrb[10].mxu0  ;;  %v682_v54 = vpop.f32.mrb[20].mxu1  ;;  %v4397_v52 = vld [vmem:[%s5765_s8] sm:$0xff]  }
 0x59c   :  { %v4214_v55 = vpop.f32.mrb[11].mxu0  ;;  %689 = vrot.lane.b32.xlu1 %v682_v54, %s4696_s4  ;;  %v4219_v56 = vpop.f32.mrb[21].mxu1  ;;  %v4398_v53 = vld [vmem:[%s5765_s8 + $0x8] sm:$0xff]   ;;  %v4399_v54 = vld [vmem:[%s5765_s8 + $0x10] sm:$0xff]  }
 0x59d   :  { %v685_v57 = vpop.f32.mrb[22].mxu1  ;;  %v4400_v55 = vld [vmem:[%s5765_s8 + $0x18] sm:$0xff]   ;;  %v4401_v56 = vld [vmem:[%s5765_s8 + $0x20] sm:$0xff]  }
 0x59e   :  { %v4220_v58 = vpop.f32.mrb[23].mxu1  ;;  %v4402_v57 = vld [vmem:[%s5765_s8 + $0x28] sm:$0xff]  }
 0x59f   :  { %v4403_v58 = vld [vmem:[%s5765_s8 + $0x30] sm:$0xff]  }
 0x5fe   :  { %v585_v59 = vpop.permute.xlu1 %584 }
 0x5ff   :  { %588 = vst.msk [vmem:[#allocation3] sm:$0xff] %vm587_vm5, %v585_v59  ;;  %v4404_v59 = vld [vmem:[%s5765_s8 + $0x38] sm:$0xff]  }
 0x606   :  { %v693_v63 = vld [vmem:[#allocation3] sm:$0xff] }
 0x60e   :  { %v690_v62 = vpop.permute.xlu1 %689 }
 0x60f   :  { %692 = vst.msk [vmem:[#allocation3 + $0x8] sm:$0xff] %vm587_vm5, %v690_v62  ;;  %v5037_v62 = vld [vmem:[%s5764_s7] sm:$0x3] }
 0x616   :  { %v694_v0 = vld [vmem:[#allocation3 + $0x8] sm:$0xff] }
 0x617   :  { %v695_v1 = vpack.c.bf16 %v694_v0, %v693_v63  ;;  %v828_v63 = vrot.slane %v5037_v62, %v4819_v31 }
 0x619   :  { %4230 = vmatmul.mubr.msk.bf16.vlgmr.msra.gmra.mrb[12].mxu0 %vm69_vm0, %v695_v1 }
 0x61a   :  { %4261 = vmatprep.mubr.msk.bf16.mxu0 %vm4695_vm1, %v4694_v45  ;;  %4246 = vmatpush3.bf16.msra.mxu0 %v4397_v52 }
 0x61b   :  { %4247 = vmatprep.subr.bf16.mxu0 %v4694_v45 }
 0x61e   :  { %4248 = vmatpush3.bf16.msra.mxu0 %v4398_v53 }
 0x61f   :  { %4249 = vmatprep.subr.bf16.mxu0 %v4694_v45 }
 0x622   :  { %4250 = vmatpush3.bf16.msra.mxu0 %v4399_v54  ;;  %v4699_v54 = vmov -1.0  }
 0x623   :  { %4251 = vmatprep.subr.bf16.mxu0 %v4694_v45 }
 0x626   :  { %4252 = vmatpush3.bf16.msra.mxu0 %v4400_v55 }
 0x627   :  { %4253 = vmatprep.subr.bf16.mxu0 %v4694_v45 }
 0x62a   :  { %4254 = vmatpush3.bf16.msra.mxu0 %v4401_v56 }
 0x62b   :  { %4255 = vmatprep.subr.bf16.mxu0 %v4694_v45 }
 0x62e   :  { %4256 = vmatpush3.bf16.msra.mxu0 %v4402_v57 }
 0x62f   :  { %4257 = vmatprep.subr.bf16.mxu0 %v4694_v45 }
 0x632   :  { %4258 = vmatpush3.bf16.msra.mxu0 %v4403_v58 }
 0x633   :  { %4259 = vmatprep.subr.bf16.mxu0 %v4694_v45 }
 0x636   :  { %4260 = vmatpush3.bf16.msra.mxu0 %v4404_v59 }
 0x637   :  { %4277 = vmatprep.subr.bf16.mxu0 %v4694_v45 }
 0x6ec   :  { %v769_v4 = vpop.f32.mrb[12].mxu0 }
 0x6ed   :  { %v770_v5 = vadd.f32 %v769_v4, %v707_v3  ;;  %v4231_v6 = vpop.f32.mrb[13].mxu0 }
 0x6ee   :  { %v772_v7 = vpop.f32.mrb[14].mxu0 }
 0x6ef   :  { %v773_v8 = vadd.f32 %v772_v7, %v707_v3  ;;  %v4232_v9 = vpop.f32.mrb[15].mxu0  ;;  %v776_v10 = vadd.f32 %v770_v5, %v4829_v42 }
 0x6f1   :  { %v778_v11 = vsel %vm69_vm0, %v776_v10, 0.0  ;;  %v777_v12 = vadd.f32 %v773_v8, %v4831_v43  ;;  %v4393_v43 = vld [vmem:[%s5763_s6] sm:$0xff]  }
 0x6f2   :  { %779 = vadd.xlane.f32.xlu0 %v778_v11  ;;  %4234 = vmatpush3.bf16.msra.mxu1 %v4393_v43 }
 0x6f3   :  { %v781_v13 = vsel %vm69_vm0, %v777_v12, 0.0  ;;  %4235 = vmatprep.subr.bf16.mxu1 %v4694_v45 }
 0x6f4   :  { %782 = vadd.xlane.f32.xlu1 %v781_v13 }
 0x6f6   :  { %4236 = vmatpush3.bf16.msra.mxu1 %v4394_v23 }
 0x6f7   :  { %4237 = vmatprep.subr.bf16.mxu1 %v4694_v45 }
 0x6fa   :  { %4238 = vmatpush3.bf16.msra.mxu1 %v4395_v24 }
 0x6fb   :  { %4239 = vmatprep.subr.bf16.mxu1 %v4694_v45 }
 0x6fe   :  { %4240 = vmatpush3.bf16.msra.mxu1 %v4396_v25 }
 0x77f   :  { %v780_v14 = vpop.xlane.xlu0 %779 }
 0x780   :  { %v784_v16 = vmul.f32 0.015625, %v780_v14 }
 0x781   :  { %v783_v17 = vpop.xlane.xlu1 %782 }
 0x782   :  { %v786_v19 = vsub.f32 %v776_v10, %v784_v16  ;;  %v785_v20 = vmul.f32 0.015625, %v783_v17 }
 0x784   :  { %v787_v60 = vsub.f32 %v777_v12, %v785_v20  ;;  %v788_v61 = vmul.f32 %v786_v19, %v786_v19 }
 0x786   :  { %v790_v21 = vsel %vm69_vm0, %v788_v61, 0.0  ;;  %v789_v22 = vmul.f32 %v787_v60, %v787_v60 }
 0x787   :  { %791 = vadd.xlane.f32.xlu0 %v790_v21 }
 0x788   :  { %v793_v42 = vsel %vm69_vm0, %v789_v22, 0.0 }
 0x78b   :  { %794 = vadd.xlane.f32.xlu0 %v793_v42 }
 0x814   :  { %v792_v26 = vpop.xlane.xlu0 %791 }
 0x815   :  { %v796_v27 = vmul.f32 0.015625, %v792_v26 }
 0x817   :  { %v798_v28 = vadd.f32 1e-12, %v796_v27 }
 0x818   :  { %v795_v29 = vpop.xlane.xlu0 %794 }
 0x819   :  { %4493 = vrsqrt.f32 %v798_v28  ;;  %v797_v32 = vmul.f32 0.015625, %v795_v29 }
 0x81b   :  { %v799_v35 = vadd.f32 1e-12, %v797_v32 }
 0x81d   :  { %4495 = vrsqrt.f32 %v799_v35 }
 0x823   :  { %v4494_v36 = vpop.eup %4493 }
 0x824   :  { %v802_v38 = vmul.f32 %v4494_v36, %v786_v19 }
 0x826   :  { %v808_v40 = vmul.f32 %v807_v37, %v802_v38 }
 0x827   :  { %v4496_v39 = vpop.eup %4495 }
 0x828   :  { %v803_v41 = vmul.f32 %v4496_v39, %v787_v60  ;;  %v4994_v49 = vadd.f32 %v813_v44, %v808_v40 }
 0x82a   :  { %v809_v48 = vmul.f32 %v807_v37, %v803_v41 }
 0x82c   :  { %v4996_v50 = vadd.f32 %v813_v44, %v809_v48 }
 0x82e   :  { %v816_v51 = vpack.c.bf16 %v4996_v50, %v4994_v49 }
 0x830   :  { %4242 = vmatmul.mubr.msk.bf16.vlgmr.msra.gmra.mrb[24].mxu1 %vm69_vm0, %v816_v51 }
 0x831   :  { %1204 = vmatprep.mubr.bf16.mxu1 %v4693_v18 }
 0x903   :  { %v890_v0 = vpop.f32.mrb[24].mxu1 }
 0x904   :  { %v891_v1 = vadd.f32 %v890_v0, %v828_v63  ;;  %v4243_v3 = vpop.f32.mrb[25].mxu1 }
 0x905   :  { %v893_v4 = vpop.f32.mrb[26].mxu1 }
 0x906   :  { %v899_v5 = vmul.f32 0.70710677, %v891_v1  ;;  %v894_v6 = vadd.f32 %v893_v4, %v828_v63  ;;  %v4244_v7 = vpop.f32.mrb[27].mxu1  ;;  %v897_v3 = vmul.f32 0.5, %v891_v1 }
 0x908   :  { %v905_v8 = vand.u32 2147483647, %v899_v5  ;;  %v900_v9 = vmul.f32 0.70710677, %v894_v6  ;;  %vm901_vm6 = vcmp.ge.f32.partialorder %v899_v5, 0.0  ;;  %v898_v4 = vmul.f32 0.5, %v894_v6 }
 0x909   :  { %v903_v55 = vsel %vm901_vm6, 1.0, %v4699_v54  ;;  %vm2338_vm6 = vcmask 254976  }
 0x90a   :  { %v907_v10 = vmul.f32 0.3275911, %v905_v8  ;;  %v906_v11 = vand.u32 2147483647, %v900_v9  ;;  %v933_v16 = vsub.f32 0.0, %v905_v8  ;;  %vm902_vm7 = vcmp.ge.f32.partialorder %v900_v9, 0.0 }
 0x90b   :  { %v904_v59 = vsel %vm902_vm7, 1.0, %v4699_v54  ;;  %vm2343_vm7 = vcmask 519426  }
 0x90c   :  { %v909_v12 = vadd.f32 1.0, %v907_v10  ;;  %v908_v13 = vmul.f32 0.3275911, %v906_v11  ;;  %v934_v17 = vsub.f32 0.0, %v906_v11  ;;  %v935_v20 = vmul.f32 %v933_v16, %v905_v8 }
 0x90e   :  { %4497 = vrcp.f32 %v909_v12  ;;  %v910_v14 = vadd.f32 1.0, %v908_v13  ;;  %v936_v22 = vmul.f32 %v934_v17, %v906_v11  ;;  %v937_v42 = vmul.f32 1.442695, %v935_v20 }
 0x90f   :  { %v5046_v11 = vsub.s32 3, %v4816_v30 }
 0x910   :  { %4499 = vrcp.f32 %v910_v14  ;;  %v939_v26 = vmul.f32 1.442695, %v936_v22 }
 0x911   :  { %4501 = vpow2.f32 %v937_v42  ;;  %v971_v9 = vrot.slane %v4965_v2, %v5046_v11 }
 0x912   :  { %4503 = vpow2.f32 %v939_v26 }
 0x918   :  { %v4498_v19 = vpop.eup %4497 }
 0x919   :  { %v915_v60 = vmul.f32 1.0614054, %v4498_v19 }
 0x91a   :  { %v4500_v61 = vpop.eup %4499 }
 0x91b   :  { %v917_v21 = vadd.f32 -1.4531521, %v915_v60  ;;  %v916_v43 = vmul.f32 1.0614054, %v4500_v61  ;;  %v4502_v41 = vpop.eup %4501 }
 0x91c   :  { %v4504_v52 = vpop.eup %4503 }
 0x91d   :  { %v919_v23 = vmul.f32 %v4498_v19, %v917_v21  ;;  %v918_v24 = vadd.f32 -1.4531521, %v916_v43 }
 0x91f   :  { %v921_v25 = vadd.f32 1.4214138, %v919_v23  ;;  %v920_v27 = vmul.f32 %v4500_v61, %v918_v24 }
 0x921   :  { %v923_v28 = vmul.f32 %v4498_v19, %v921_v25  ;;  %v922_v29 = vadd.f32 1.4214138, %v920_v27  ;;  %v4405_v27 = vld [vmem:[%s5760_s3 + $0x40] ss:$8 sps:$4 sm:$0xff]  }
 0x923   :  { %v925_v32 = vadd.f32 -0.28449672, %v923_v28  ;;  %v924_v35 = vmul.f32 %v4500_v61, %v922_v29  ;;  %v4410_v28 = vld [vmem:[%s5760_s3 + $0x54] ss:$8 sps:$4 sm:$0xff]   ;;  %v4408_v29 = vld [vmem:[%s5760_s3 + $0x50] ss:$8 sps:$4 sm:$0xff]  }
 0x925   :  { %v927_v36 = vmul.f32 %v4498_v19, %v925_v32  ;;  %v926_v37 = vadd.f32 -0.28449672, %v924_v35  ;;  %v4413_v32 = vld [vmem:[%s5760_s3 + $0x64] ss:$8 sps:$4 sm:$0xff]   ;;  %v4411_v35 = vld [vmem:[%s5760_s3 + $0x60] ss:$8 sps:$4 sm:$0xff]  }
 0x927   :  { %v929_v38 = vadd.f32 0.2548296, %v927_v36  ;;  %v928_v39 = vmul.f32 %v4500_v61, %v926_v37  ;;  %v4414_v36 = vld [vmem:[%s5760_s3 + $0x70] ss:$8 sps:$4 sm:$0xff]   ;;  %v4416_v37 = vld [vmem:[%s5760_s3 + $0x74] ss:$8 sps:$4 sm:$0xff]  }
 0x929   :  { %v931_v40 = vmul.f32 %v4498_v19, %v929_v38  ;;  %v930_v44 = vadd.f32 0.2548296, %v928_v39 }
 0x92b   :  { %v941_v48 = vmul.f32 %v4502_v41, %v931_v40  ;;  %v932_v51 = vmul.f32 %v4500_v61, %v930_v44 }
 0x92d   :  { %v943_v53 = vsub.f32 1.0, %v941_v48  ;;  %v942_v56 = vmul.f32 %v4504_v52, %v932_v51  ;;  %v1091_v51 = vsub.s32 4, %v4816_v30 }
 0x92f   :  { %v945_v57 = vmul.f32 %v943_v53, %v903_v55  ;;  %v944_v58 = vsub.f32 1.0, %v942_v56  ;;  %v1092_v52 = vrot.slane %v4965_v2, %v1091_v51  ;;  %v1097_v53 = vsub.s32 5, %v4816_v30 }
 0x931   :  { %v947_v63 = vadd.f32 1.0, %v945_v57  ;;  %v946_v0 = vmul.f32 %v944_v58, %v904_v59 }
 0x933   :  { %v948_v7 = vadd.f32 1.0, %v946_v0  ;;  %v949_v8 = vmul.f32 %v947_v63, %v897_v3  ;;  %v1098_v63 = vrot.slane %v4965_v2, %v1097_v53  ;;  %v1118_v2 = vrot.slane %v4841_v46, %v5046_v11 }
 0x935   :  { %v950_v5 = vmul.f32 %v948_v7, %v898_v4 }
 0x937   :  { %v951_v10 = vpack.c.bf16 %v950_v5, %v949_v8  ;;  %v1114_v8 = vrot.slane %v4841_v46, %v4825_v34 }
 0x939   :  { %4262 = vmatmul.mubr.bf16.vlgmr.msra.gmra.mrb[16].mxu0 %v951_v10  ;;  %v1124_v5 = vrot.slane %v1114_v8, %v4825_v34 }
 0x93a   :  { %4279 = vmatprep.mubr.msk.bf16.mxu0 %vm4695_vm1, %v4694_v45 }
 0xa0c   :  { %v1054_v12 = vpop.f32.mrb[16].mxu0 }
 0xa0d   :  { %v1055_v13 = vadd.f32 %v1054_v12, %v971_v9  ;;  %v4263_v14 = vpop.f32.mrb[17].mxu0 }
 0xa0e   :  { %v1057_v16 = vpop.f32.mrb[18].mxu0 }
 0xa0f   :  { %v1058_v1 = vadd.f32 %v1057_v16, %v971_v9  ;;  %v4264_v6 = vpop.f32.mrb[19].mxu0  ;;  %v1061_v17 = vadd.f32 %v1055_v13, %v4994_v49  ;;  %v1128_v13 = vrot.slane %v1118_v2, %v4825_v34 }
 0xa11   :  { %v1063_v19 = vsel %vm69_vm0, %v1061_v17, 0.0  ;;  %v1062_v20 = vadd.f32 %v1058_v1, %v4996_v50  ;;  %v4407_v50 = vld [vmem:[%s5760_s3 + $0x44] ss:$8 sps:$4 sm:$0xff]  }
 0xa12   :  { %1064 = vadd.xlane.f32.xlu0 %v1063_v19  ;;  %1172 = vmatprep.subr.bf16.mxu1 %v4407_v50 }
 0xa13   :  { %v1066_v60 = vsel %vm69_vm0, %v1062_v20, 0.0  ;;  %1173 = vmatpush1.bf16.msra.mxu1 %v4405_v27 }
 0xa14   :  { %1067 = vadd.xlane.f32.xlu1 %v1066_v60  ;;  %1174 = vmatprep.subr.bf16.mxu1 %v4410_v28 }
 0xa17   :  { %1175 = vmatpush1.bf16.msra.mxu1 %v4408_v29 }
 0xa18   :  { %1176 = vmatprep.subr.bf16.mxu1 %v4413_v32 }
 0xa1b   :  { %1177 = vmatpush1.bf16.msra.mxu1 %v4411_v35 }
 0xa1c   :  { %1178 = vmatprep.subr.bf16.mxu1 %v4416_v37 }
 0xa1f   :  { %1179 = vmatpush1.bf16.msra.mxu1 %v4414_v36 }
 0xa20   :  { %4265 = vmatprep.subr.bf16.mxu1 %v4694_v45 }
 0xa9f   :  { %v1065_v61 = vpop.xlane.xlu0 %1064 }
 0xaa0   :  { %v1069_v21 = vmul.f32 0.015625, %v1065_v61 }
 0xaa1   :  { %v1068_v22 = vpop.xlane.xlu1 %1067 }
 0xaa2   :  { %v1071_v42 = vsub.f32 %v1061_v17, %v1069_v21  ;;  %v1070_v43 = vmul.f32 0.015625, %v1068_v22 }
 0xaa4   :  { %v1072_v23 = vsub.f32 %v1062_v20, %v1070_v43  ;;  %v1073_v24 = vmul.f32 %v1071_v42, %v1071_v42 }
 0xaa6   :  { %v1075_v25 = vsel %vm69_vm0, %v1073_v24, 0.0  ;;  %v1074_v26 = vmul.f32 %v1072_v23, %v1072_v23 }
 0xaa7   :  { %1076 = vadd.xlane.f32.xlu0 %v1075_v25 }
 0xaa8   :  { %v1078_v49 = vsel %vm69_vm0, %v1074_v26, 0.0 }
 0xaa9   :  { %1079 = vadd.xlane.f32.xlu1 %v1078_v49 }
 0xb34   :  { %v1077_v38 = vpop.xlane.xlu0 %1076 }
 0xb35   :  { %v1081_v39 = vmul.f32 0.015625, %v1077_v38 }
 0xb36   :  { %v1080_v40 = vpop.xlane.xlu1 %1079 }
 0xb37   :  { %v1083_v41 = vadd.f32 1e-12, %v1081_v39  ;;  %v1082_v44 = vmul.f32 0.015625, %v1080_v40 }
 0xb39   :  { %4505 = vrsqrt.f32 %v1083_v41  ;;  %v1084_v48 = vadd.f32 1e-12, %v1082_v44 }
 0xb3b   :  { %4507 = vrsqrt.f32 %v1084_v48 }
 0xb43   :  { %v4506_v55 = vpop.eup %4505 }
 0xb44   :  { %v1087_v56 = vmul.f32 %v4506_v55, %v1071_v42 }
 0xb45   :  { %v4508_v57 = vpop.eup %4507 }
 0xb46   :  { %v1093_v58 = vmul.f32 %v1092_v52, %v1087_v56  ;;  %v1088_v59 = vmul.f32 %v4508_v57, %v1072_v23 }
 0xb48   :  { %v1094_v0 = vmul.f32 %v1092_v52, %v1088_v59  ;;  %v5089_v3 = vadd.f32 %v1098_v63, %v1093_v58 }
 0xb4a   :  { %v5091_v4 = vadd.f32 %v1098_v63, %v1094_v0 }
 0xb4c   :  { %v1101_v7 = vpack.c.bf16 %v5091_v4, %v5089_v3 }
 0xb4e   :  { %3965 = vmatmul.mubr.msk.bf16.vlgmr.msra.gmra.mrb[28].mxu1 %vm69_vm0, %v1101_v7 }
 0xb4f   :  { %4267 = vmatprep.mubr.msk.bf16.mxu1 %vm4695_vm1, %v4694_v45 }
 0xc21   :  { %v1206_v10 = vpop.f32.mrb[28].mxu1 }
 0xc22   :  { %v1207_v9 = vadd.f32 %v1206_v10, %v1124_v5  ;;  %v1208_v12 = vpop.f32.mrb[29].mxu1 }
 0xc23   :  { %v1210_v14 = vpop.f32.mrb[30].mxu1  ;;  %v1209_v22 = vadd.f32 %v1208_v12, %v1128_v13 }
 0xc24   :  { %v1215_v16 = vpack.c.bf16 %v1207_v9, %v1207_v9  ;;  %v1211_v1 = vadd.f32 %v1210_v14, %v1124_v5  ;;  %v1212_v6 = vpop.f32.mrb[31].mxu1 }
 0xc25   :  { %v5104_v17 = vadd.f32 %v1212_v6, %v1128_v13  ;;  %v5121_v23 = vpack.c.bf16 %v1209_v22, %v1209_v22 }
 0xc26   :  { %1268 = vrot.lane.b32.xlu1 %v1215_v16, %s4696_s4  ;;  %1217 = vrot.lane.b32.xlu0 %v1215_v16, %s4697_s24  ;;  %v1317_v19 = vpack.c.bf16 %v1211_v1, %v1211_v1 }
 0xc27   :  { %v1478_v25 = vsel %vm487_vm2, %v5121_v23, 0 }
 0xc2a   :  { %1266 = vrot.lane.b32.xlu1 %v1215_v16, %s4698_s25  ;;  %1370 = vrot.lane.b32.xlu0 %v1317_v19, %s4696_s4 }
 0xc2e   :  { %1319 = vrot.lane.b32.xlu1 %v1317_v19, %s4697_s24 }
 0xc32   :  { %1368 = vrot.lane.b32.xlu1 %v1317_v19, %s4698_s25 }
 0xc98   :  { %v1269_v46 = vpop.permute.xlu1 %1268  ;;  %v1218_v20 = vpop.permute.xlu0 %1217 }
 0xc99   :  { %v1223_v60 = vsel %vm227_vm3, %v1218_v20, 0  ;;  %v1274_v42 = vsel %vm227_vm3, %v1269_v46, 0 }
 0xc9a   :  { %4266 = vmatpush3.bf16.xpose.msra.mxu1 %v1223_v60 }
 0xc9b   :  { %4271 = vmatprep.subr.bf16.mxu1 %v4694_v45 }
 0xc9c   :  { %v1267_v61 = vpop.permute.xlu1 %1266  ;;  %v1371_v24 = vpop.permute.xlu0 %1370 }
 0xc9d   :  { %v1376_v26 = vsel %vm227_vm3, %v1371_v24, 0 }
 0xca0   :  { %v1320_v21 = vpop.permute.xlu1 %1319 }
 0xca1   :  { %v1325_v43 = vsel %vm227_vm3, %v1320_v21, 0  ;;  %4268 = vmatmul.mubr.msk.bf16.vlgmr.msra.gmra.mrb[32].mxu1 %vm227_vm3, %v1215_v16 }
 0xca2   :  { %4272 = vmatpush3.bf16.xpose.msra.mxu1 %v1274_v42  ;;  %4278 = vmatpush3.bf16.xpose.msra.mxu0 %v1325_v43 }
 0xca3   :  { %4273 = vmatprep.mubr.msk.bf16.mxu1 %vm4695_vm1, %v4694_v45  ;;  %4283 = vmatprep.subr.bf16.mxu1 %v4694_v45 }
 0xca4   :  { %4289 = vmatprep.subr.bf16.mxu0 %v4694_v45  ;;  %v1369_v49 = vpop.permute.xlu1 %1368 }
 0xca9   :  { %4274 = vmatmul.mubr.msk.bf16.vlgmr.msra.gmra.mrb[36].mxu1 %vm227_vm3, %v1267_v61  ;;  %4280 = vmatmul.mubr.msk.bf16.vlgmr.msra.gmra.mrb[20].mxu0 %vm227_vm3, %v1317_v19 }
 0xcaa   :  { %4284 = vmatpush3.bf16.xpose.msra.mxu1 %v1376_v26  ;;  %4290 = vmatpush3.bf16.msra.mxu0 %v1478_v25 }
 0xcab   :  { %4285 = vmatprep.mubr.msk.bf16.mxu1 %vm4695_vm1, %v4694_v45  ;;  %4295 = vmatprep.subr.bf16.mxu1 %v4694_v45 }
 0xcac   :  { %4291 = vmatprep.mubr.msk.bf16.mxu0 %vm4695_vm1, %v4694_v45  ;;  %4301 = vmatprep.subr.bf16.mxu0 %v4694_v45 }
 0xcb1   :  { %4286 = vmatmul.mubr.msk.bf16.vlgmr.msra.gmra.mrb[40].mxu1 %vm227_vm3, %v1369_v49  ;;  %v1577_v49 = vpack.c.bf16 %v5104_v17, %v5104_v17 }
 0xcb2   :  { %4297 = vmatprep.mubr.msk.bf16.mxu1 %vm4695_vm1, %v4694_v45 }
 0xd74   :  { %v1259_v50 = vpop.f32.mrb[32].mxu1 }
 0xd75   :  { %1265 = vst.msk [vmem:[#allocation2] sm:$0xff] %vm274_vm4, %v1259_v50  ;;  %v4269_v27 = vpop.f32.mrb[33].mxu1 }
 0xd76   :  { %v1262_v28 = vpop.f32.mrb[34].mxu1 }
 0xd77   :  { %v4270_v29 = vpop.f32.mrb[35].mxu1 }
 0xd7c   :  { %v1310_v32 = vpop.f32.mrb[36].mxu1  ;;  %v1361_v35 = vpop.f32.mrb[20].mxu0  ;;  %v1419_v36 = vld [vmem:[#allocation2] sm:$0xff] }
 0xd7d   :  { %1316 = vst.msk [vmem:[#allocation2 + $0x8] sm:$0xff] %vm274_vm4, %v1310_v32  ;;  %1367 = vst.msk [vmem:[#allocation2 + $0x10] sm:$0xff] %vm274_vm4, %v1361_v35  ;;  %v4275_v37 = vpop.f32.mrb[37].mxu1  ;;  %v4281_v38 = vpop.f32.mrb[21].mxu0  ;;  %v1423_v39 = vadd.f32 %v1419_v36, %v4894_v15 }
 0xd7e   :  { %v1313_v40 = vpop.f32.mrb[38].mxu1  ;;  %v1364_v41 = vpop.f32.mrb[22].mxu0 }
 0xd7f   :  { %v4276_v44 = vpop.f32.mrb[39].mxu1  ;;  %v4282_v48 = vpop.f32.mrb[23].mxu0  ;;  %v1427_v52 = vsel %vm274_vm4, %v1423_v39, -inf  ;;  %v1582_v40 = vsel %vm487_vm2, %v1577_v49, 0 }
 0xd80   :  { %1428 = vmax.xlane.f32.xlu0 %v1427_v52 }
 0xd84   :  { %v1412_v55 = vpop.f32.mrb[40].mxu1  ;;  %v1421_v56 = vld [vmem:[#allocation2 + $0x10] sm:$0xff]  ;;  %v1420_v57 = vld [vmem:[#allocation2 + $0x8] sm:$0xff] }
 0xd85   :  { %1418 = vst.msk [vmem:[#allocation2 + $0x18] sm:$0xff] %vm274_vm4, %v1412_v55  ;;  %v4287_v58 = vpop.f32.mrb[41].mxu1  ;;  %v1425_v59 = vadd.f32 %v1421_v56, %v4903_v33  ;;  %v1424_v63 = vadd.f32 %v1420_v57, %v4894_v15 }
 0xd86   :  { %v1415_v0 = vpop.f32.mrb[42].mxu1 }
 0xd87   :  { %v4288_v7 = vpop.f32.mrb[43].mxu1  ;;  %v1433_v8 = vsel %vm274_vm4, %v1425_v59, -inf  ;;  %v1430_v5 = vsel %vm274_vm4, %v1424_v63, -inf  ;;  %v4419_v0 = vld [vmem:[%s5762_s5 + $0x30] sm:$0xff]  }
 0xd88   :  { %1434 = vmax.xlane.f32.xlu0 %v1433_v8  ;;  %1431 = vmax.xlane.f32.xlu1 %v1430_v5  ;;  %v4420_v8 = vld [vmem:[%s5762_s5 + $0x38] sm:$0xff]  }
 0xd8c   :  { %v1422_v2 = vld [vmem:[#allocation2 + $0x18] sm:$0xff] }
 0xd8d   :  { %v1426_v10 = vadd.f32 %v1422_v2, %v4903_v33 }
 0xd8f   :  { %v1436_v9 = vsel %vm274_vm4, %v1426_v10, -inf }
 0xd90   :  { %1437 = vmax.xlane.f32.xlu0 %v1436_v9 }
 0xe0d   :  { %v1429_v12 = vpop.xlane.xlu0 %1428 }
 0xe0e   :  { %v1439_v13 = vsub.f32 %v1423_v39, %v1429_v12 }
 0xe10   :  { %v1443_v14 = vmul.f32 1.442695, %v1439_v13 }
 0xe12   :  { %4509 = vpow2.f32 %v1443_v14 }
 0xe15   :  { %v1432_v16 = vpop.xlane.xlu1 %1431  ;;  %v1435_v15 = vpop.xlane.xlu0 %1434 }
 0xe16   :  { %v1440_v1 = vsub.f32 %v1424_v63, %v1432_v16  ;;  %v1441_v6 = vsub.f32 %v1425_v59, %v1435_v15  ;;  %v4417_v59 = vld [vmem:[%s5762_s5 + $0x20] sm:$0xff]   ;;  %v4418_v63 = vld [vmem:[%s5762_s5 + $0x28] sm:$0xff]  }
 0xe18   :  { %v1445_v19 = vmul.f32 1.442695, %v1440_v1  ;;  %v1447_v46 = vmul.f32 1.442695, %v1441_v6 }
 0xe1a   :  { %4511 = vpow2.f32 %v1445_v19 }
 0xe1b   :  { %4513 = vpow2.f32 %v1447_v46 }
 0xe1c   :  { %v4510_v20 = vpop.eup %4509 }
 0xe1d   :  { %v1438_v60 = vpop.xlane.xlu0 %1437  ;;  %v1451_v61 = vsel %vm274_vm4, %v4510_v20, 0.0 }
 0xe1e   :  { %v1442_v33 = vsub.f32 %v1426_v10, %v1438_v60  ;;  %1452 = vadd.xlane.f32.xlu0 %v1451_v61 }
 0xe20   :  { %v1449_v21 = vmul.f32 1.442695, %v1442_v33 }
 0xe22   :  { %4515 = vpow2.f32 %v1449_v21 }
 0xe24   :  { %v4512_v22 = vpop.eup %4511 }
 0xe25   :  { %v4514_v42 = vpop.eup %4513  ;;  %v1454_v43 = vsel %vm274_vm4, %v4512_v22, 0.0 }
 0xe26   :  { %1455 = vadd.xlane.f32.xlu1 %v1454_v43  ;;  %v1457_v24 = vsel %vm274_vm4, %v4514_v42, 0.0  ;;  %v5204_v43 = vld [vmem:[%s5766_s9 + $0x8] sm:$0x3f] }
 0xe27   :  { %1458 = vadd.xlane.f32.xlu0 %v1457_v24  ;;  %v1696_v24 = vrot.slane %v5204_v43, %v4819_v31 }
 0xe2c   :  { %v4516_v25 = vpop.eup %4515 }
 0xe2d   :  { %v1460_v26 = vsel %vm274_vm4, %v4516_v25, 0.0 }
 0xe2e   :  { %1461 = vadd.xlane.f32.xlu1 %v1460_v26 }
 0xe3d   :  { %1524 = vrot.lane.b32.xlu0 %v5121_v23, %s4698_s25 }
 0xe3f   :  { %1628 = vrot.lane.b32.xlu1 %v1577_v49, %s4698_s25 }
 0xeab   :  { %v1453_v50 = vpop.xlane.xlu0 %1452 }
 0xeac   :  { %4517 = vrcp.f32 %v1453_v50 }
 0xeb3   :  { %v1456_v27 = vpop.xlane.xlu1 %1455 }
 0xeb4   :  { %4519 = vrcp.f32 %v1456_v27  ;;  %v1459_v28 = vpop.xlane.xlu0 %1458 }
 0xeb5   :  { %4521 = vrcp.f32 %v1459_v28 }
 0xeb6   :  { %v4518_v36 = vpop.eup %4517 }
 0xeb7   :  { %v1467_v37 = vmul.f32 %v4518_v36, %v4510_v20 }
 0xeb8   :  { %v1525_v29 = vpop.permute.xlu0 %1524 }
 0xeb9   :  { %v1530_v32 = vsel %vm487_vm2, %v1525_v29, 0 }
 0xeba   :  { %4296 = vmatpush3.bf16.msra.mxu1 %v1530_v32 }
 0xebb   :  { %v1462_v35 = vpop.xlane.xlu1 %1461  ;;  %4307 = vmatprep.subr.bf16.mxu1 %v4694_v45 }
 0xebc   :  { %4523 = vrcp.f32 %v1462_v35 }
 0xebe   :  { %v4520_v17 = vpop.eup %4519 }
 0xebf   :  { %v1468_v23 = vmul.f32 %v4520_v17, %v4512_v22  ;;  %v1629_v39 = vpop.permute.xlu1 %1628  ;;  %v4522_v44 = vpop.eup %4521 }
 0xec0   :  { %v1634_v48 = vsel %vm487_vm2, %v1629_v39, 0  ;;  %v1469_v55 = vmul.f32 %v4522_v44, %v4514_v42  ;;  %vm2104_vm2 = vcmask 522246  }
 0xec1   :  { %v1471_v38 = vpack.c.bf16 %v1468_v23, %v1467_v37 }
 0xec3   :  { %4292 = vmatmul.mubr.msk.bf16.vlgmr.msra.gmra.mrb[24].mxu0 %vm274_vm4, %v1471_v38  ;;  %v1522_v41 = vrot.slane %v1471_v38, 4 }
 0xec4   :  { %4302 = vmatpush3.bf16.msra.mxu0 %v1582_v40  ;;  %4303 = vmatprep.mubr.msk.bf16.mxu0 %vm4695_vm1, %v4694_v45 }
 0xec5   :  { %4298 = vmatmul.mubr.msk.bf16.vlgmr.msra.gmra.mrb[44].mxu1 %vm274_vm4, %v1522_v41  ;;  %4313 = vmatprep.subr.bf16.mxu0 %v4694_v45 }
 0xec6   :  { %v4524_v52 = vpop.eup %4523  ;;  %4308 = vmatpush3.bf16.msra.mxu1 %v1634_v48  ;;  %4309 = vmatprep.mubr.msk.bf16.mxu1 %vm4695_vm1, %v4694_v45 }
 0xec7   :  { %v1470_v56 = vmul.f32 %v4524_v52, %v4516_v25  ;;  %4325 = vmatprep.subr.bf16.mxu1 %v4694_v45  ;;  %v4422_v52 = vld [vmem:[%s5763_s6 + $0x28] sm:$0xff]  }
 0xec9   :  { %v1472_v57 = vpack.c.bf16 %v1470_v56, %v1469_v55  ;;  %v4423_v55 = vld [vmem:[%s5763_s6 + $0x30] sm:$0xff]   ;;  %v4424_v56 = vld [vmem:[%s5763_s6 + $0x38] sm:$0xff]  }
 0xecb   :  { %4304 = vmatmul.mubr.msk.bf16.vlgmr.msra.gmra.mrb[28].mxu0 %vm274_vm4, %v1472_v57  ;;  %v1626_v58 = vrot.slane %v1472_v57, 4 }
 0xecc   :  { %4321 = vmatprep.mubr.msk.bf16.mxu0 %vm4695_vm1, %v4694_v45  ;;  %4314 = vmatpush3.bf16.msra.mxu0 %v4417_v59 }
 0xecd   :  { %4310 = vmatmul.mubr.msk.bf16.vlgmr.msra.gmra.mrb[48].mxu1 %vm274_vm4, %v1626_v58  ;;  %4315 = vmatprep.subr.bf16.mxu0 %v4694_v45  ;;  %vm2106_vm4 = vcmask 523271  }
 0xece   :  { %4333 = vmatprep.mubr.msk.bf16.mxu1 %vm4695_vm1, %v4694_v45 }
 0xed0   :  { %4316 = vmatpush3.bf16.msra.mxu0 %v4418_v63 }
 0xed1   :  { %4317 = vmatprep.subr.bf16.mxu0 %v4694_v45 }
 0xed4   :  { %4318 = vmatpush3.bf16.msra.mxu0 %v4419_v0 }
 0xed5   :  { %4319 = vmatprep.subr.bf16.mxu0 %v4694_v45 }
 0xed8   :  { %4320 = vmatpush3.bf16.msra.mxu0 %v4420_v8 }
 0xed9   :  { %4337 = vmatprep.subr.bf16.mxu0 %v4694_v45 }
 0xf96   :  { %v1514_v7 = vpop.f32.mrb[24].mxu0 }
 0xf97   :  { %1520 = vst.msk [vmem:[#allocation3] sm:$0xff] %vm227_vm3, %v1514_v7  ;;  %v4293_v5 = vpop.f32.mrb[25].mxu0 }
 0xf98   :  { %v1517_v2 = vpop.f32.mrb[26].mxu0  ;;  %v1566_v10 = vpop.f32.mrb[44].mxu1  ;;  %v1796_v5 = vrot.slane %v5204_v43, %v4825_v34 }
 0xf99   :  { %v4294_v9 = vpop.f32.mrb[27].mxu0  ;;  %1573 = vrot.lane.b32.xlu1 %v1566_v10, %s4696_s4  ;;  %v4299_v12 = vpop.f32.mrb[45].mxu1 }
 0xf9a   :  { %v1569_v13 = vpop.f32.mrb[46].mxu1 }
 0xf9b   :  { %v4300_v14 = vpop.f32.mrb[47].mxu1  ;;  %v1802_v13 = vrot.slane %v5204_v43, %v4844_v47 }
 0xf9e   :  { %v1618_v16 = vpop.f32.mrb[28].mxu0 }
 0xf9f   :  { %1624 = vst.msk [vmem:[#allocation3 + $0x8] sm:$0xff] %vm227_vm3, %v1618_v16  ;;  %v4305_v15 = vpop.f32.mrb[29].mxu0 }
 0xfa0   :  { %v1621_v1 = vpop.f32.mrb[30].mxu0  ;;  %v1670_v6 = vpop.f32.mrb[48].mxu1 }
 0xfa1   :  { %v4306_v19 = vpop.f32.mrb[31].mxu0  ;;  %1677 = vrot.lane.b32.xlu1 %v1670_v6, %s4696_s4  ;;  %v4311_v46 = vpop.f32.mrb[49].mxu1  ;;  %v4425_v6 = vld [vmem:[%s5765_s8 + $0x40] sm:$0xff]  }
 0xfa2   :  { %v1673_v20 = vpop.f32.mrb[50].mxu1  ;;  %v4426_v19 = vld [vmem:[%s5765_s8 + $0x48] sm:$0xff]   ;;  %v4427_v46 = vld [vmem:[%s5765_s8 + $0x50] sm:$0xff]  }
 0xfa3   :  { %v4312_v60 = vpop.f32.mrb[51].mxu1  ;;  %v4428_v20 = vld [vmem:[%s5765_s8 + $0x58] sm:$0xff]  }
 0xfa4   :  { %v4429_v60 = vld [vmem:[%s5765_s8 + $0x60] sm:$0xff]  }
0x100b   :  { %v1574_v61 = vpop.permute.xlu1 %1573 }
0x100c   :  { %1576 = vst.msk [vmem:[#allocation3] sm:$0xff] %vm587_vm5, %v1574_v61  ;;  %v4430_v61 = vld [vmem:[%s5765_s8 + $0x68] sm:$0xff]  }
0x1013   :  { %v1678_v33 = vpop.permute.xlu1 %1677  ;;  %v1681_v21 = vld [vmem:[#allocation3] sm:$0xff] }
0x1014   :  { %1680 = vst.msk [vmem:[#allocation3 + $0x8] sm:$0xff] %vm587_vm5, %v1678_v33  ;;  %v4431_v33 = vld [vmem:[%s5765_s8 + $0x70] sm:$0xff]   ;;  %vm2308_vm5 = vcmask 1041408  }
0x101b   :  { %v1682_v22 = vld [vmem:[#allocation3 + $0x8] sm:$0xff] }
0x101c   :  { %v1683_v42 = vpack.c.bf16 %v1682_v22, %v1681_v21  ;;  %v4432_v21 = vld [vmem:[%s5765_s8 + $0x78] sm:$0xff]   ;;  %v1818_v22 = vrot.slane %v5037_v62, %v4825_v34 }
0x101e   :  { %4322 = vmatmul.mubr.msk.bf16.vlgmr.msra.gmra.mrb[32].mxu0 %vm69_vm0, %v1683_v42 }
0x101f   :  { %4353 = vmatprep.mubr.msk.bf16.mxu0 %vm4695_vm1, %v4694_v45  ;;  %4338 = vmatpush3.bf16.msra.mxu0 %v4425_v6 }
0x1020   :  { %4339 = vmatprep.subr.bf16.mxu0 %v4694_v45 }
0x1023   :  { %4340 = vmatpush3.bf16.msra.mxu0 %v4426_v19 }
0x1024   :  { %4341 = vmatprep.subr.bf16.mxu0 %v4694_v45 }
0x1027   :  { %4342 = vmatpush3.bf16.msra.mxu0 %v4427_v46 }
0x1028   :  { %4343 = vmatprep.subr.bf16.mxu0 %v4694_v45 }
0x102b   :  { %4344 = vmatpush3.bf16.msra.mxu0 %v4428_v20 }
0x102c   :  { %4345 = vmatprep.subr.bf16.mxu0 %v4694_v45 }
0x102f   :  { %4346 = vmatpush3.bf16.msra.mxu0 %v4429_v60 }
0x1030   :  { %4347 = vmatprep.subr.bf16.mxu0 %v4694_v45 }
0x1033   :  { %4348 = vmatpush3.bf16.msra.mxu0 %v4430_v61 }
0x1034   :  { %4349 = vmatprep.subr.bf16.mxu0 %v4694_v45 }
0x1037   :  { %4350 = vmatpush3.bf16.msra.mxu0 %v4431_v33 }
0x1038   :  { %4351 = vmatprep.subr.bf16.mxu0 %v4694_v45 }
0x103b   :  { %4352 = vmatpush3.bf16.msra.mxu0 %v4432_v21 }
0x10f1   :  { %v1758_v25 = vpop.f32.mrb[32].mxu0 }
0x10f2   :  { %v1759_v26 = vadd.f32 %v1758_v25, %v1696_v24  ;;  %v4323_v49 = vpop.f32.mrb[33].mxu0 }
0x10f3   :  { %v1761_v50 = vpop.f32.mrb[34].mxu0 }
0x10f4   :  { %v1762_v27 = vadd.f32 %v1761_v50, %v1696_v24  ;;  %v4324_v28 = vpop.f32.mrb[35].mxu0  ;;  %v1765_v29 = vadd.f32 %v1759_v26, %v5089_v3 }
0x10f6   :  { %v1767_v32 = vsel %vm69_vm0, %v1765_v29, 0.0  ;;  %v1766_v35 = vadd.f32 %v1762_v27, %v5091_v4  ;;  %v4421_v4 = vld [vmem:[%s5763_s6 + $0x20] sm:$0xff]  }
0x10f7   :  { %1768 = vadd.xlane.f32.xlu0 %v1767_v32  ;;  %4326 = vmatpush3.bf16.msra.mxu1 %v4421_v4 }
0x10f8   :  { %v1770_v36 = vsel %vm69_vm0, %v1766_v35, 0.0  ;;  %4327 = vmatprep.subr.bf16.mxu1 %v4694_v45 }
0x10f9   :  { %1771 = vadd.xlane.f32.xlu1 %v1770_v36 }
0x10fb   :  { %4328 = vmatpush3.bf16.msra.mxu1 %v4422_v52 }
0x10fc   :  { %4329 = vmatprep.subr.bf16.mxu1 %v4694_v45 }
0x10ff   :  { %4330 = vmatpush3.bf16.msra.mxu1 %v4423_v55 }
0x1100   :  { %4331 = vmatprep.subr.bf16.mxu1 %v4694_v45 }
0x1103   :  { %4332 = vmatpush3.bf16.msra.mxu1 %v4424_v56 }
0x1184   :  { %v1769_v17 = vpop.xlane.xlu0 %1768 }
0x1185   :  { %v1773_v37 = vmul.f32 0.015625, %v1769_v17 }
0x1186   :  { %v1772_v23 = vpop.xlane.xlu1 %1771 }
0x1187   :  { %v1775_v38 = vsub.f32 %v1765_v29, %v1773_v37  ;;  %v1774_v39 = vmul.f32 0.015625, %v1772_v23 }
0x1189   :  { %v1776_v40 = vsub.f32 %v1766_v35, %v1774_v39  ;;  %v1777_v41 = vmul.f32 %v1775_v38, %v1775_v38 }
0x118b   :  { %v1779_v44 = vsel %vm69_vm0, %v1777_v41, 0.0  ;;  %v1778_v48 = vmul.f32 %v1776_v40, %v1776_v40 }
0x118c   :  { %1780 = vadd.xlane.f32.xlu0 %v1779_v44 }
0x118d   :  { %v1782_v3 = vsel %vm69_vm0, %v1778_v48, 0.0 }
0x1190   :  { %1783 = vadd.xlane.f32.xlu0 %v1782_v3 }
0x1219   :  { %v1781_v57 = vpop.xlane.xlu0 %1780 }
0x121a   :  { %v1785_v58 = vmul.f32 0.015625, %v1781_v57 }
0x121c   :  { %v1787_v59 = vadd.f32 1e-12, %v1785_v58 }
0x121d   :  { %v1784_v63 = vpop.xlane.xlu0 %1783 }
0x121e   :  { %4525 = vrsqrt.f32 %v1787_v59  ;;  %v1786_v0 = vmul.f32 0.015625, %v1784_v63 }
0x1220   :  { %v1788_v7 = vadd.f32 1e-12, %v1786_v0 }
0x1222   :  { %4527 = vrsqrt.f32 %v1788_v7 }
0x1228   :  { %v4526_v8 = vpop.eup %4525 }
0x1229   :  { %v1791_v2 = vmul.f32 %v4526_v8, %v1775_v38 }
0x122b   :  { %v1797_v9 = vmul.f32 %v1796_v5, %v1791_v2 }
0x122c   :  { %v4528_v10 = vpop.eup %4527 }
0x122d   :  { %v1792_v12 = vmul.f32 %v4528_v10, %v1776_v40  ;;  %v5233_v16 = vadd.f32 %v1802_v13, %v1797_v9 }
0x122f   :  { %v1798_v14 = vmul.f32 %v1796_v5, %v1792_v12 }
0x1231   :  { %v5235_v15 = vadd.f32 %v1802_v13, %v1798_v14 }
0x1233   :  { %v1805_v1 = vpack.c.bf16 %v5235_v15, %v5233_v16 }
0x1235   :  { %4334 = vmatmul.mubr.msk.bf16.vlgmr.msra.gmra.mrb[52].mxu1 %vm69_vm0, %v1805_v1 }
0x1236   :  { %2221 = vmatprep.mubr.bf16.mxu1 %v4693_v18 }
0x1308   :  { %v1880_v42 = vpop.f32.mrb[52].mxu1 }
0x1309   :  { %v1881_v24 = vadd.f32 %v1880_v42, %v1818_v22  ;;  %v4335_v25 = vpop.f32.mrb[53].mxu1 }
0x130a   :  { %v1883_v26 = vpop.f32.mrb[54].mxu1 }
0x130b   :  { %v1889_v49 = vmul.f32 0.70710677, %v1881_v24  ;;  %v1884_v50 = vadd.f32 %v1883_v26, %v1818_v22  ;;  %v4336_v27 = vpop.f32.mrb[55].mxu1  ;;  %v1887_v42 = vmul.f32 0.5, %v1881_v24 }
0x130d   :  { %v1895_v28 = vand.u32 2147483647, %v1889_v49  ;;  %v1890_v29 = vmul.f32 0.70710677, %v1884_v50  ;;  %vm1891_vm8 = vcmp.ge.f32.partialorder %v1889_v49, 0.0  ;;  %v1888_v25 = vmul.f32 0.5, %v1884_v50 }
0x130e   :  { %v1893_v46 = vsel %vm1891_vm8, 1.0, %v4699_v54 }
0x130f   :  { %v1897_v32 = vmul.f32 0.3275911, %v1895_v28  ;;  %v1896_v35 = vand.u32 2147483647, %v1890_v29  ;;  %v1923_v23 = vsub.f32 0.0, %v1895_v28  ;;  %vm1892_vm9 = vcmp.ge.f32.partialorder %v1890_v29, 0.0 }
0x1310   :  { %v1894_v33 = vsel %vm1892_vm9, 1.0, %v4699_v54 }
0x1311   :  { %v1899_v36 = vadd.f32 1.0, %v1897_v32  ;;  %v1898_v17 = vmul.f32 0.3275911, %v1896_v35  ;;  %v1924_v38 = vsub.f32 0.0, %v1896_v35  ;;  %v1925_v62 = vmul.f32 %v1923_v23, %v1895_v28 }
0x1312   :  { %v1962_v32 = vrot.slane %v5204_v43, %v5046_v11 }
0x1313   :  { %4529 = vrcp.f32 %v1899_v36  ;;  %v1900_v37 = vadd.f32 1.0, %v1898_v17  ;;  %v1926_v48 = vmul.f32 %v1924_v38, %v1896_v35  ;;  %v1927_v3 = vmul.f32 1.442695, %v1925_v62 }
0x1315   :  { %4531 = vrcp.f32 %v1900_v37  ;;  %v1929_v57 = vmul.f32 1.442695, %v1926_v48 }
0x1316   :  { %4533 = vpow2.f32 %v1927_v3 }
0x1317   :  { %4535 = vpow2.f32 %v1929_v57  ;;  %v4436_v57 = vld [vmem:[%s5767_s10 + $0x10] ss:$8 sps:$4 sm:$0xff]  }
0x131d   :  { %v4530_v39 = vpop.eup %4529 }
0x131e   :  { %v1905_v40 = vmul.f32 1.0614054, %v4530_v39 }
0x131f   :  { %v4532_v41 = vpop.eup %4531 }
0x1320   :  { %v1907_v44 = vadd.f32 -1.4531521, %v1905_v40  ;;  %v1906_v4 = vmul.f32 1.0614054, %v4532_v41  ;;  %v4534_v12 = vpop.eup %4533 }
0x1321   :  { %v4536_v6 = vpop.eup %4535 }
0x1322   :  { %v1909_v52 = vmul.f32 %v4530_v39, %v1907_v44  ;;  %v1908_v55 = vadd.f32 -1.4531521, %v1906_v4 }
0x1324   :  { %v1911_v56 = vadd.f32 1.4214138, %v1909_v52  ;;  %v1910_v58 = vmul.f32 %v4532_v41, %v1908_v55  ;;  %v4433_v55 = vld [vmem:[%s5767_s10] ss:$8 sps:$4 sm:$0xff]  }
0x1326   :  { %v1913_v59 = vmul.f32 %v4530_v39, %v1911_v56  ;;  %v1912_v63 = vadd.f32 1.4214138, %v1910_v58  ;;  %v4438_v56 = vld [vmem:[%s5767_s10 + $0x14] ss:$8 sps:$4 sm:$0xff]   ;;  %v4441_v58 = vld [vmem:[%s5767_s10 + $0x24] ss:$8 sps:$4 sm:$0xff]  }
0x1328   :  { %v1915_v0 = vadd.f32 -0.28449672, %v1913_v59  ;;  %v1914_v7 = vmul.f32 %v4532_v41, %v1912_v63  ;;  %v4439_v59 = vld [vmem:[%s5767_s10 + $0x20] ss:$8 sps:$4 sm:$0xff]   ;;  %v4444_v63 = vld [vmem:[%s5767_s10 + $0x34] ss:$8 sps:$4 sm:$0xff]  }
0x132a   :  { %v1917_v8 = vmul.f32 %v4530_v39, %v1915_v0  ;;  %v1916_v5 = vadd.f32 -0.28449672, %v1914_v7  ;;  %v4442_v0 = vld [vmem:[%s5767_s10 + $0x30] ss:$8 sps:$4 sm:$0xff]   ;;  %v5312_v7 = vld [vmem:[%s5769_s12 + $0x4] ss:$8 sps:$4 sm:$0xff]  }
0x132b   :  { %2448 = vmatprep.subr.bf16.mxu0 %v5312_v7 }
0x132c   :  { %v1919_v2 = vadd.f32 0.2548296, %v1917_v8  ;;  %v1918_v10 = vmul.f32 %v4532_v41, %v1916_v5  ;;  %v5317_v8 = vld [vmem:[%s5769_s12] ss:$8 sps:$4 sm:$0xff]   ;;  %v5324_v5 = vld [vmem:[%s5769_s12 + $0x14] ss:$8 sps:$4 sm:$0xff]  }
0x132e   :  { %v1921_v9 = vmul.f32 %v4530_v39, %v1919_v2  ;;  %v1920_v13 = vadd.f32 0.2548296, %v1918_v10  ;;  %v5330_v2 = vld [vmem:[%s5769_s12 + $0x10] ss:$8 sps:$4 sm:$0xff]  }
0x1330   :  { %v1931_v14 = vmul.f32 %v4534_v12, %v1921_v9  ;;  %v1922_v1 = vmul.f32 %v4532_v41, %v1920_v13 }
0x1332   :  { %v1933_v19 = vsub.f32 1.0, %v1931_v14  ;;  %v1932_v20 = vmul.f32 %v4536_v6, %v1922_v1  ;;  %v2083_v6 = vrot.slane %v5204_v43, %v1091_v51 }
0x1334   :  { %v1935_v60 = vmul.f32 %v1933_v19, %v1893_v46  ;;  %v1934_v61 = vsub.f32 1.0, %v1932_v20  ;;  %v2089_v46 = vrot.slane %v5204_v43, %v1097_v53 }
0x1336   :  { %v1937_v21 = vadd.f32 1.0, %v1935_v60  ;;  %v1936_v22 = vmul.f32 %v1934_v61, %v1894_v33 }
0x1338   :  { %v1938_v26 = vadd.f32 1.0, %v1936_v22  ;;  %v1939_v27 = vmul.f32 %v1937_v21, %v1887_v42  ;;  %v5372_v42 = vld [vmem:[%s5768_s11] sm:$0xf] }
0x133a   :  { %v1940_v28 = vmul.f32 %v1938_v26, %v1888_v25  ;;  %v2135_v25 = vrot.slane %v5372_v42, %v4844_v47  ;;  %v2131_v26 = vrot.slane %v5372_v42, %v4819_v31 }
0x133c   :  { %v1941_v49 = vpack.c.bf16 %v1940_v28, %v1939_v27  ;;  %v2145_v27 = vrot.slane %v2135_v25, %v4819_v31 }
0x133e   :  { %4354 = vmatmul.mubr.bf16.vlgmr.msra.gmra.mrb[36].mxu0 %v1941_v49  ;;  %v2141_v49 = vrot.slane %v2131_v26, %v4819_v31 }
0x133f   :  { %2480 = vmatprep.mubr.bf16.mxu0 %v4693_v18  ;;  %2449 = vmatpush1.bf16.msra.mxu0 %v5317_v8 }
0x1340   :  { %2450 = vmatprep.subr.bf16.mxu0 %v5324_v5 }
0x1343   :  { %2451 = vmatpush1.bf16.msra.mxu0 %v5330_v2 }
0x1344   :  { %2634 = vmatprep.subr.bf16.mxu0 %v5312_v7 }
0x1411   :  { %v2045_v29 = vpop.f32.mrb[36].mxu0 }
0x1412   :  { %v2046_v35 = vadd.f32 %v2045_v29, %v1962_v32  ;;  %v4355_v36 = vpop.f32.mrb[37].mxu0 }
0x1413   :  { %v2048_v17 = vpop.f32.mrb[38].mxu0 }
0x1414   :  { %v2049_v37 = vadd.f32 %v2048_v17, %v1962_v32  ;;  %v4356_v54 = vpop.f32.mrb[39].mxu0  ;;  %v2052_v23 = vadd.f32 %v2046_v35, %v5233_v16 }
0x1416   :  { %v2054_v24 = vsel %vm69_vm0, %v2052_v23, 0.0  ;;  %v2053_v50 = vadd.f32 %v2049_v37, %v5235_v15  ;;  %v4435_v15 = vld [vmem:[%s5767_s10 + $0x4] ss:$8 sps:$4 sm:$0xff]  }
0x1417   :  { %2055 = vadd.xlane.f32.xlu0 %v2054_v24  ;;  %2189 = vmatprep.subr.bf16.mxu1 %v4435_v15 }
0x1418   :  { %v2057_v38 = vsel %vm69_vm0, %v2053_v50, 0.0  ;;  %2190 = vmatpush1.bf16.msra.mxu1 %v4433_v55 }
0x1419   :  { %2058 = vadd.xlane.f32.xlu1 %v2057_v38  ;;  %2191 = vmatprep.subr.bf16.mxu1 %v4438_v56 }
0x141c   :  { %2192 = vmatpush1.bf16.msra.mxu1 %v4436_v57 }
0x141d   :  { %2193 = vmatprep.subr.bf16.mxu1 %v4441_v58 }
0x1420   :  { %2194 = vmatpush1.bf16.msra.mxu1 %v4439_v59 }
0x1421   :  { %2195 = vmatprep.subr.bf16.mxu1 %v4444_v63 }
0x1424   :  { %2196 = vmatpush1.bf16.msra.mxu1 %v4442_v0 }
0x1425   :  { %2259 = vmatprep.subr.bf16.mxu1 %v5312_v7 }
0x14a4   :  { %v2056_v39 = vpop.xlane.xlu0 %2055 }
0x14a5   :  { %v2060_v62 = vmul.f32 0.015625, %v2056_v39 }
0x14a6   :  { %v2059_v40 = vpop.xlane.xlu1 %2058 }
0x14a7   :  { %v2062_v41 = vsub.f32 %v2052_v23, %v2060_v62  ;;  %v2061_v44 = vmul.f32 0.015625, %v2059_v40 }
0x14a9   :  { %v2063_v48 = vsub.f32 %v2053_v50, %v2061_v44  ;;  %v2064_v3 = vmul.f32 %v2062_v41, %v2062_v41 }
0x14ab   :  { %v2066_v4 = vsel %vm69_vm0, %v2064_v3, 0.0  ;;  %v2065_v52 = vmul.f32 %v2063_v48, %v2063_v48 }
0x14ac   :  { %2067 = vadd.xlane.f32.xlu0 %v2066_v4 }
0x14ad   :  { %v2069_v16 = vsel %vm69_vm0, %v2065_v52, 0.0 }
0x14ae   :  { %2070 = vadd.xlane.f32.xlu1 %v2069_v16 }
0x1539   :  { %v2068_v10 = vpop.xlane.xlu0 %2067 }
0x153a   :  { %v2072_v9 = vmul.f32 0.015625, %v2068_v10 }
0x153b   :  { %v2071_v12 = vpop.xlane.xlu1 %2070 }
0x153c   :  { %v2074_v13 = vadd.f32 1e-12, %v2072_v9  ;;  %v2073_v14 = vmul.f32 0.015625, %v2071_v12 }
0x153e   :  { %4537 = vrsqrt.f32 %v2074_v13  ;;  %v2075_v1 = vadd.f32 1e-12, %v2073_v14 }
0x1540   :  { %4539 = vrsqrt.f32 %v2075_v1 }
0x1548   :  { %v4538_v19 = vpop.eup %4537 }
0x1549   :  { %v2078_v20 = vmul.f32 %v4538_v19, %v2062_v41 }
0x154a   :  { %v4540_v60 = vpop.eup %4539 }
0x154b   :  { %v2084_v61 = vmul.f32 %v2083_v6, %v2078_v20  ;;  %v2079_v33 = vmul.f32 %v4540_v60, %v2063_v48 }
0x154d   :  { %v2090_v21 = vadd.f32 %v2089_v46, %v2084_v61  ;;  %v2085_v22 = vmul.f32 %v2083_v6, %v2079_v33 }
0x154f   :  { %v2091_v51 = vadd.f32 %v2089_v46, %v2085_v22  ;;  %2093 = vst.msk [vmem:[#allocation4] sm:$0x1] %vm2092_vm10, %v2090_v21 }
0x1550   :  { %2095 = vst.msk [vmem:[#allocation4 + $0x1] sm:$0x2] %vm2094_vm11, %v2090_v21 }
0x1551   :  { %2097 = vst.msk [vmem:[#allocation4 + $0x2] sm:$0x4] %vm2096_vm12, %v2090_v21  ;;  %2110 = vst.msk [vmem:[#allocation4 + $0x3] sm:$0x4] %vm2096_vm12, %v2091_v51 }
0x1552   :  { %2099 = vst.msk [vmem:[#allocation4 + $0x3] sm:$0x8] %vm2098_vm13, %v2090_v21  ;;  %2111 = vst.msk [vmem:[#allocation4 + $0x4] sm:$0x8] %vm2098_vm13, %v2091_v51 }
0x1553   :  { %2101 = vst.msk [vmem:[#allocation4 + $0x4] sm:$0x10] %vm2100_vm14, %v2090_v21  ;;  %2112 = vst.msk [vmem:[#allocation4 + $0x5] sm:$0x10] %vm2100_vm14, %v2091_v51 }
0x1554   :  { %2103 = vst.msk [vmem:[#allocation4 + $0x5] sm:$0x20] %vm2102_vm15, %v2090_v21  ;;  %2113 = vst.msk [vmem:[#allocation4 + $0x6] sm:$0x20] %vm2102_vm15, %v2091_v51 }
0x1555   :  { %2105 = vst.msk [vmem:[#allocation4 + $0x6] sm:$0x40] %vm2104_vm2, %v2090_v21  ;;  %2114 = vst.msk [vmem:[#allocation4 + $0x7] sm:$0x40] %vm2104_vm2, %v2091_v51 }
0x1556   :  { %2107 = vst.msk [vmem:[#allocation4 + $0x7] sm:$0x80] %vm2106_vm4, %v2090_v21  ;;  %2115 = vst.msk [vmem:[#allocation4 + $0x8] sm:$0x80] %vm2106_vm4, %v2091_v51 }
0x1557   :  { %2108 = vst.msk [vmem:[#allocation4 + $0x1] sm:$0x1] %vm2092_vm10, %v2091_v51 }
0x1558   :  { %2109 = vst.msk [vmem:[#allocation4 + $0x2] sm:$0x2] %vm2094_vm11, %v2091_v51 }
0x155d   :  { %v2117_v53 = vld [vmem:[#allocation4 + $0x8] sm:$0xff] }
0x155f   :  { %v2116_v30 = vld [vmem:[#allocation4] sm:$0xff] }
0x1560   :  { %v2118_v43 = vpack.c.bf16 %v2117_v53, %v2116_v30 }
0x1562   :  { %4032 = vmatmul.mubr.msk.bf16.vlgmr.msra.gmra.mrb[56].mxu1 %vm69_vm0, %v2118_v43 }
0x1563   :  { %2260 = vmatpush1.bf16.msra.mxu1 %v5317_v8  ;;  %2291 = vmatprep.mubr.bf16.mxu1 %v4693_v18 }
0x1564   :  { %2261 = vmatprep.subr.bf16.mxu1 %v5324_v5 }
0x1567   :  { %2262 = vmatpush1.bf16.msra.mxu1 %v5330_v2 }
0x1568   :  { %2352 = vmatprep.subr.bf16.mxu1 %v5312_v7 }
0x156a   :  { %2292 = vmatmul.mubr.bf16.vlgmr.msra.gmra.mrb[60].mxu1 %v4693_v18 }
0x156b   :  { %2353 = vmatpush1.bf16.msra.mxu1 %v5317_v8  ;;  %2384 = vmatprep.mubr.bf16.mxu1 %v4693_v18 }
0x156c   :  { %2354 = vmatprep.subr.bf16.mxu1 %v5324_v5 }
0x156f   :  { %2355 = vmatpush1.bf16.msra.mxu1 %v5330_v2 }
0x1570   :  { %2538 = vmatprep.subr.bf16.mxu1 %v5312_v7 }
0x1635   :  { %v2223_v28 = vpop.f32.mrb[56].mxu1 }
0x1636   :  { %v2225_v32 = vpop.f32.mrb[57].mxu1  ;;  %v5386_v38 = vadd.f32 %v2223_v28, %v2141_v49 }
0x1637   :  { %v5380_v29 = vadd.f32 %v2225_v32, %v2145_v27  ;;  %v2227_v35 = vpop.f32.mrb[58].mxu1 }
0x1638   :  { %v5382_v36 = vadd.f32 %v2227_v35, %v2141_v49  ;;  %v2229_v17 = vpop.f32.mrb[59].mxu1 }
0x1639   :  { %v5384_v23 = vadd.f32 %v2229_v17, %v2145_v27 }
0x163d   :  { %v2293_v37 = vpop.f32.mrb[60].mxu1 }
0x163e   :  { %v2295_v54 = vpop.f32.mrb[61].mxu1  ;;  %v2300_v31 = vadd.f32 %v2293_v37, %v5386_v38 }
0x163f   :  { %v2302_v47 = vrot.slane %v2295_v54, 4  ;;  %v2297_v24 = vpop.f32.mrb[62].mxu1 }
0x1640   :  { %v2298_v50 = vpop.f32.mrb[63].mxu1 }
0x1641   :  { %v2304_v39 = vadd.f32 %v2302_v47, %v5384_v23 }
0x1643   :  { %v2306_v62 = vrot.slane %v2304_v39, 4 }
0x1645   :  { %v2309_v40 = vsel %vm2308_vm5, %v2300_v31, %v2306_v62 }
0x1646   :  { %4541 = vtanh.f32 %v2309_v40  ;;  %v4037_v44 = vmul.f32 -1.442695, %v2309_v40 }
0x1648   :  { %4543 = vpow2.f32 %v4037_v44 }
0x1650   :  { %v4542_v41 = vpop.eup %4541 }
0x1651   :  { %2319 = vrot.lane.b32.xlu0 %v4542_v41, %s4697_s24 }
0x1652   :  { %v4544_v48 = vpop.eup %4543 }
0x1653   :  { %v2313_v3 = vadd.f32 1.0, %v4544_v48 }
0x1655   :  { %4545 = vrcp.f32 %v2313_v3 }
0x165f   :  { %v4546_v4 = vpop.eup %4545 }
0x1660   :  { %v2317_v15 = vmul.f32 0.0, %v4546_v4 }
0x16c3   :  { %v2320_v52 = vpop.permute.xlu0 %2319 }
0x16c4   :  { %v2322_v16 = vmul.f32 %v4546_v4, %v2320_v52 }
0x16c6   :  { %2324 = vrot.lane.b32.xlu1 %v2322_v16, %s4696_s4 }
0x1738   :  { %v2325_v55 = vpop.permute.xlu1 %2324 }
0x1739   :  { %v2327_v56 = vadd.f32 %v2325_v55, %v2317_v15 }
0x173b   :  { %4547 = vtanh.f32 %v2327_v56 }
0x1745   :  { %v4548_v57 = vpop.eup %4547 }
0x1746   :  { %2330 = vrot.lane.b32.xlu1 %v4548_v57, %s4697_s24 }
0x17b8   :  { %v2331_v58 = vpop.permute.xlu1 %2330 }
0x17b9   :  { %v5394_v59 = vmul.f32 %v4546_v4, %v2331_v58 }
0x17bb   :  { %v2345_v63 = vpack.c.bf16 %v5394_v59, %v5394_v59 }
0x17bd   :  { %2347 = vrot.lane.b32.xlu1 %v2345_v63, %s4696_s4 }
0x182f   :  { %v2348_v0 = vpop.permute.xlu1 %2347 }
0x1830   :  { %4038 = vmatmul.mubr.msk.bf16.vlgmr.msra.gmra.mrb[64].mxu1 %vm227_vm3, %v2348_v0 }
0x1831   :  { %2539 = vmatpush1.bf16.msra.mxu1 %v5317_v8  ;;  %2570 = vmatprep.mubr.bf16.mxu1 %v4693_v18 }
0x1832   :  { %2540 = vmatprep.subr.bf16.mxu1 %v5324_v5 }
0x1835   :  { %2541 = vmatpush1.bf16.msra.mxu1 %v5330_v2 }
0x1836   :  { %2724 = vmatprep.subr.bf16.mxu1 %v5312_v7 }
0x1903   :  { %v2386_v10 = vpop.f32.mrb[64].mxu1 }
0x1904   :  { %v2394_v9 = vrot.slane %v2386_v10, 6  ;;  %v2388_v12 = vpop.f32.mrb[65].mxu1 }
0x1905   :  { %v2398_v13 = vrot.slane %v2388_v12, 6  ;;  %v2390_v14 = vpop.f32.mrb[66].mxu1 }
0x1906   :  { %v2396_v1 = vadd.f32 %v2394_v9, %v5386_v38  ;;  %v2391_v6 = vpop.f32.mrb[67].mxu1 }
0x1907   :  { %v2400_v19 = vadd.f32 %v2398_v13, %v5384_v23 }
0x1908   :  { %v2402_v46 = vrot.slane %v2396_v1, 2 }
0x1909   :  { %v2405_v20 = vrot.slane %v2400_v19, 2 }
0x190b   :  { %v2407_v60 = vsel %vm2308_vm5, %v2402_v46, %v2405_v20 }
0x190c   :  { %4549 = vtanh.f32 %v2407_v60  ;;  %v4039_v33 = vmul.f32 -1.442695, %v2407_v60 }
0x190e   :  { %4551 = vpow2.f32 %v4039_v33 }
0x1916   :  { %v4550_v61 = vpop.eup %4549 }
0x1917   :  { %2417 = vrot.lane.b32.xlu0 %v4550_v61, %s4697_s24 }
0x1918   :  { %v4552_v21 = vpop.eup %4551 }
0x1919   :  { %v2411_v22 = vadd.f32 1.0, %v4552_v21 }
0x191b   :  { %4553 = vrcp.f32 %v2411_v22 }
0x1925   :  { %v4554_v51 = vpop.eup %4553 }
0x1926   :  { %v2415_v43 = vmul.f32 %v4554_v51, %v2327_v56 }
0x1989   :  { %v2418_v30 = vpop.permute.xlu0 %2417 }
0x198a   :  { %v2420_v53 = vmul.f32 %v4554_v51, %v2418_v30 }
0x198c   :  { %2422 = vrot.lane.b32.xlu1 %v2420_v53, %s4696_s4 }
0x19fe   :  { %v2423_v25 = vpop.permute.xlu1 %2422 }
0x19ff   :  { %v2425_v26 = vadd.f32 %v2423_v25, %v2415_v43 }
0x1a01   :  { %4555 = vtanh.f32 %v2425_v26 }
0x1a0b   :  { %v4556_v27 = vpop.eup %4555 }
0x1a0c   :  { %2428 = vrot.lane.b32.xlu0 %v4556_v27, %s4697_s24 }
0x1a7e   :  { %v2429_v28 = vpop.permute.xlu0 %2428 }
0x1a7f   :  { %v5411_v49 = vmul.f32 %v4554_v51, %v2429_v28 }
0x1a81   :  { %v2441_v32 = vpack.c.bf16 %v5411_v49, %v5411_v49 }
0x1a83   :  { %2443 = vrot.lane.b32.xlu1 %v2441_v32, %s4696_s4 }
0x1af5   :  { %v2444_v35 = vpop.permute.xlu1 %2443 }
0x1af6   :  { %4040 = vmatmul.mubr.msk.bf16.vlgmr.msra.gmra.mrb[40].mxu0 %vm227_vm3, %v2444_v35 }
0x1af7   :  { %2635 = vmatpush1.bf16.msra.mxu0 %v5317_v8  ;;  %2666 = vmatprep.mubr.bf16.mxu0 %v4693_v18 }
0x1af8   :  { %2636 = vmatprep.subr.bf16.mxu0 %v5324_v5 }
0x1afb   :  { %2637 = vmatpush1.bf16.msra.mxu0 %v5330_v2 }
0x1afc   :  { %2820 = vmatprep.subr.bf16.mxu0 %v5312_v7 }
0x1bc9   :  { %v2482_v17 = vpop.f32.mrb[40].mxu0 }
0x1bca   :  { %v2490_v37 = vrot.slane %v2482_v17, 4  ;;  %v2484_v54 = vpop.f32.mrb[41].mxu0 }
0x1bcb   :  { %v2486_v47 = vpop.f32.mrb[42].mxu0  ;;  %v2493_v31 = vadd.f32 %v2484_v54, %v5384_v23 }
0x1bcc   :  { %v2492_v24 = vadd.f32 %v2490_v37, %v5386_v38  ;;  %v2487_v50 = vpop.f32.mrb[43].mxu0 }
0x1bce   :  { %v2495_v39 = vrot.slane %v2492_v24, 4 }
0x1bd0   :  { %v2497_v62 = vsel %vm2308_vm5, %v2495_v39, %v2493_v31 }
0x1bd1   :  { %4557 = vtanh.f32 %v2497_v62  ;;  %v4041_v41 = vmul.f32 -1.442695, %v2497_v62 }
0x1bd3   :  { %4559 = vpow2.f32 %v4041_v41 }
0x1bdb   :  { %v4558_v40 = vpop.eup %4557 }
0x1bdc   :  { %2507 = vrot.lane.b32.xlu0 %v4558_v40, %s4697_s24 }
0x1bdd   :  { %v4560_v44 = vpop.eup %4559 }
0x1bde   :  { %v2501_v48 = vadd.f32 1.0, %v4560_v44 }
0x1be0   :  { %4561 = vrcp.f32 %v2501_v48 }
0x1bea   :  { %v4562_v3 = vpop.eup %4561 }
0x1beb   :  { %v2505_v16 = vmul.f32 %v4562_v3, %v2425_v26 }
0x1c4e   :  { %v2508_v4 = vpop.permute.xlu0 %2507 }
0x1c4f   :  { %v2510_v52 = vmul.f32 %v4562_v3, %v2508_v4 }
0x1c51   :  { %2512 = vrot.lane.b32.xlu1 %v2510_v52, %s4696_s4 }
0x1cc3   :  { %v2513_v15 = vpop.permute.xlu1 %2512 }
0x1cc4   :  { %v2515_v55 = vadd.f32 %v2513_v15, %v2505_v16 }
0x1cc6   :  { %4563 = vtanh.f32 %v2515_v55 }
0x1cd0   :  { %v4564_v56 = vpop.eup %4563 }
0x1cd1   :  { %2518 = vrot.lane.b32.xlu0 %v4564_v56, %s4697_s24 }
0x1d43   :  { %v2519_v57 = vpop.permute.xlu0 %2518 }
0x1d44   :  { %v5428_v58 = vmul.f32 %v4562_v3, %v2519_v57 }
0x1d46   :  { %v2531_v63 = vpack.c.bf16 %v5428_v58, %v5428_v58 }
0x1d48   :  { %2533 = vrot.lane.b32.xlu1 %v2531_v63, %s4696_s4 }
0x1dba   :  { %v2534_v0 = vpop.permute.xlu1 %2533 }
0x1dbb   :  { %4042 = vmatmul.mubr.msk.bf16.vlgmr.msra.gmra.mrb[68].mxu1 %vm227_vm3, %v2534_v0 }
0x1dbc   :  { %2725 = vmatpush1.bf16.msra.mxu1 %v5317_v8  ;;  %2756 = vmatprep.mubr.bf16.mxu1 %v4693_v18 }
0x1dbd   :  { %2726 = vmatprep.subr.bf16.mxu1 %v5324_v5 }
0x1dc0   :  { %2727 = vmatpush1.bf16.msra.mxu1 %v5330_v2 }
0x1dc1   :  { %2910 = vmatprep.subr.bf16.mxu1 %v5312_v7 }
0x1e8e   :  { %v2572_v10 = vpop.f32.mrb[68].mxu1 }
0x1e8f   :  { %v2580_v9 = vrot.slane %v2572_v10, 2  ;;  %v2574_v12 = vpop.f32.mrb[69].mxu1 }
0x1e90   :  { %v2584_v13 = vrot.slane %v2574_v12, 2  ;;  %v2576_v14 = vpop.f32.mrb[70].mxu1 }
0x1e91   :  { %v2582_v1 = vadd.f32 %v2580_v9, %v5386_v38  ;;  %v2577_v6 = vpop.f32.mrb[71].mxu1 }
0x1e92   :  { %v2586_v19 = vadd.f32 %v2584_v13, %v5384_v23 }
0x1e93   :  { %v2588_v46 = vrot.slane %v2582_v1, 6 }
0x1e94   :  { %v2591_v20 = vrot.slane %v2586_v19, 6 }
0x1e96   :  { %v2593_v60 = vsel %vm2308_vm5, %v2588_v46, %v2591_v20 }
0x1e97   :  { %4565 = vtanh.f32 %v2593_v60  ;;  %v4043_v33 = vmul.f32 -1.442695, %v2593_v60 }
0x1e99   :  { %4567 = vpow2.f32 %v4043_v33 }
0x1ea1   :  { %v4566_v61 = vpop.eup %4565 }
0x1ea2   :  { %2603 = vrot.lane.b32.xlu0 %v4566_v61, %s4697_s24 }
0x1ea3   :  { %v4568_v7 = vpop.eup %4567 }
0x1ea4   :  { %v2597_v21 = vadd.f32 1.0, %v4568_v7 }
0x1ea6   :  { %4569 = vrcp.f32 %v2597_v21 }
0x1eb0   :  { %v4570_v22 = vpop.eup %4569 }
0x1eb1   :  { %v2601_v38 = vmul.f32 %v4570_v22, %v2515_v55 }
0x1f14   :  { %v2604_v51 = vpop.permute.xlu0 %2603 }
0x1f15   :  { %v2606_v30 = vmul.f32 %v4570_v22, %v2604_v51 }
0x1f17   :  { %2608 = vrot.lane.b32.xlu1 %v2606_v30, %s4696_s4 }
0x1f89   :  { %v2609_v23 = vpop.permute.xlu1 %2608 }
0x1f8a   :  { %v2611_v53 = vadd.f32 %v2609_v23, %v2601_v38 }
0x1f8c   :  { %4571 = vtanh.f32 %v2611_v53 }
0x1f96   :  { %v4572_v43 = vpop.eup %4571 }
0x1f97   :  { %2614 = vrot.lane.b32.xlu0 %v4572_v43, %s4697_s24 }
0x2009   :  { %v2615_v25 = vpop.permute.xlu0 %2614 }
0x200a   :  { %v5445_v26 = vmul.f32 %v4570_v22, %v2615_v25 }
0x200c   :  { %v2627_v27 = vpack.c.bf16 %v5445_v26, %v5445_v26 }
0x200e   :  { %2629 = vrot.lane.b32.xlu1 %v2627_v27, %s4696_s4 }
0x2080   :  { %v2630_v28 = vpop.permute.xlu1 %2629 }
0x2081   :  { %4044 = vmatmul.mubr.msk.bf16.vlgmr.msra.gmra.mrb[44].mxu0 %vm227_vm3, %v2630_v28 }
0x2082   :  { %2821 = vmatpush1.bf16.msra.mxu0 %v5317_v8  ;;  %2852 = vmatprep.mubr.bf16.mxu0 %v4693_v18 }
0x2083   :  { %2822 = vmatprep.subr.bf16.mxu0 %v5324_v5 }
0x2086   :  { %2823 = vmatpush1.bf16.msra.mxu0 %v5330_v2 }
0x2154   :  { %v2668_v32 = vpop.f32.mrb[44].mxu0 }
0x2155   :  { %v2670_v35 = vpop.f32.mrb[45].mxu0  ;;  %v2675_v24 = vadd.f32 %v2668_v32, %v5382_v36 }
0x2156   :  { %v2677_v17 = vrot.slane %v2670_v35, 4  ;;  %v2672_v37 = vpop.f32.mrb[46].mxu0 }
0x2157   :  { %v2673_v54 = vpop.f32.mrb[47].mxu0 }
0x2158   :  { %v2679_v47 = vadd.f32 %v2677_v17, %v5380_v29 }
0x215a   :  { %v2681_v50 = vrot.slane %v2679_v47, 4 }
0x215c   :  { %v2683_v39 = vsel %vm2308_vm5, %v2675_v24, %v2681_v50 }
0x215d   :  { %4573 = vtanh.f32 %v2683_v39  ;;  %v4045_v62 = vmul.f32 -1.442695, %v2683_v39 }
0x215f   :  { %4575 = vpow2.f32 %v4045_v62 }
0x2167   :  { %v4574_v31 = vpop.eup %4573 }
0x2168   :  { %2693 = vrot.lane.b32.xlu0 %v4574_v31, %s4697_s24 }
0x2169   :  { %v4576_v40 = vpop.eup %4575 }
0x216a   :  { %v2687_v41 = vadd.f32 1.0, %v4576_v40 }
0x216c   :  { %4577 = vrcp.f32 %v2687_v41 }
0x2176   :  { %v4578_v44 = vpop.eup %4577 }
0x2177   :  { %v2691_v4 = vmul.f32 %v4578_v44, %v2611_v53 }
0x21da   :  { %v2694_v48 = vpop.permute.xlu0 %2693 }
0x21db   :  { %v2696_v3 = vmul.f32 %v4578_v44, %v2694_v48 }
0x21dd   :  { %2698 = vrot.lane.b32.xlu1 %v2696_v3, %s4696_s4 }
0x224f   :  { %v2699_v52 = vpop.permute.xlu1 %2698 }
0x2250   :  { %v2701_v16 = vadd.f32 %v2699_v52, %v2691_v4 }
0x2252   :  { %4579 = vtanh.f32 %v2701_v16 }
0x225c   :  { %v4580_v15 = vpop.eup %4579 }
0x225d   :  { %2704 = vrot.lane.b32.xlu0 %v4580_v15, %s4697_s24 }
0x22cf   :  { %v2705_v55 = vpop.permute.xlu0 %2704 }
0x22d0   :  { %v5461_v56 = vmul.f32 %v4578_v44, %v2705_v55 }
0x22d2   :  { %v2717_v57 = vpack.c.bf16 %v5461_v56, %v5461_v56 }
0x22d4   :  { %2719 = vrot.lane.b32.xlu1 %v2717_v57, %s4696_s4 }
0x2346   :  { %v2720_v63 = vpop.permute.xlu1 %2719 }
0x2347   :  { %4046 = vmatmul.mubr.msk.bf16.vlgmr.msra.gmra.mrb[72].mxu1 %vm227_vm3, %v2720_v63 }
0x2348   :  { %2911 = vmatpush1.bf16.msra.mxu1 %v5317_v8  ;;  %2942 = vmatprep.mubr.bf16.mxu1 %v4693_v18 }
0x2349   :  { %2912 = vmatprep.subr.bf16.mxu1 %v5324_v5 }
0x234c   :  { %2913 = vmatpush1.bf16.msra.mxu1 %v5330_v2 }
0x241a   :  { %v2758_v0 = vpop.f32.mrb[72].mxu1 }
0x241b   :  { %v2766_v10 = vrot.slane %v2758_v0, 6  ;;  %v2760_v9 = vpop.f32.mrb[73].mxu1 }
0x241c   :  { %v2770_v12 = vrot.slane %v2760_v9, 6  ;;  %v2762_v13 = vpop.f32.mrb[74].mxu1 }
0x241d   :  { %v2768_v14 = vadd.f32 %v2766_v10, %v5382_v36  ;;  %v2763_v1 = vpop.f32.mrb[75].mxu1 }
0x241e   :  { %v2772_v6 = vadd.f32 %v2770_v12, %v5380_v29 }
0x241f   :  { %v2774_v19 = vrot.slane %v2768_v14, 2 }
0x2420   :  { %v2777_v46 = vrot.slane %v2772_v6, 2 }
0x2422   :  { %v2779_v8 = vsel %vm2308_vm5, %v2774_v19, %v2777_v46 }
0x2423   :  { %4581 = vtanh.f32 %v2779_v8  ;;  %v4047_v5 = vmul.f32 -1.442695, %v2779_v8 }
0x2425   :  { %4583 = vpow2.f32 %v4047_v5 }
0x242d   :  { %v4582_v20 = vpop.eup %4581 }
0x242e   :  { %2789 = vrot.lane.b32.xlu0 %v4582_v20, %s4697_s24 }
0x242f   :  { %v4584_v2 = vpop.eup %4583 }
0x2430   :  { %v2783_v60 = vadd.f32 1.0, %v4584_v2 }
0x2432   :  { %4585 = vrcp.f32 %v2783_v60 }
0x243c   :  { %v4586_v61 = vpop.eup %4585 }
0x243d   :  { %v2787_v21 = vmul.f32 %v4586_v61, %v2701_v16 }
0x24a0   :  { %v2790_v33 = vpop.permute.xlu0 %2789 }
0x24a1   :  { %v2792_v7 = vmul.f32 %v4586_v61, %v2790_v33 }
0x24a3   :  { %2794 = vrot.lane.b32.xlu1 %v2792_v7, %s4696_s4 }
0x2515   :  { %v2795_v22 = vpop.permute.xlu1 %2794 }
0x2516   :  { %v2797_v51 = vadd.f32 %v2795_v22, %v2787_v21 }
0x2518   :  { %4587 = vtanh.f32 %v2797_v51 }
0x2522   :  { %v4588_v30 = vpop.eup %4587 }
0x2523   :  { %2800 = vrot.lane.b32.xlu0 %v4588_v30, %s4697_s24 }
0x2595   :  { %v2801_v38 = vpop.permute.xlu0 %2800 }
0x2596   :  { %v5477_v23 = vmul.f32 %v4586_v61, %v2801_v38  ;;  %v4451_v38 = vld [vmem:[%s5767_s10 + $0x40] ss:$8 sps:$4 sm:$0xff]  }
0x2598   :  { %v2813_v53 = vpack.c.bf16 %v5477_v23, %v5477_v23 }
0x259a   :  { %2815 = vrot.lane.b32.xlu1 %v2813_v53, %s4696_s4  ;;  %v4453_v53 = vld [vmem:[%s5767_s10 + $0x44] ss:$8 sps:$4 sm:$0xff]  }
0x259b   :  { %3072 = vmatprep.subr.bf16.mxu0 %v4453_v53 }
0x260c   :  { %v2816_v43 = vpop.permute.xlu1 %2815 }
0x260d   :  { %4048 = vmatmul.mubr.msk.bf16.vlgmr.msra.gmra.mrb[48].mxu0 %vm227_vm3, %v2816_v43  ;;  %v4465_v43 = vld [vmem:[%s5767_s10 + $0x74] ss:$8 sps:$4 sm:$0xff]  }
0x260e   :  { %3104 = vmatprep.mubr.bf16.mxu0 %v4693_v18  ;;  %3073 = vmatpush1.bf16.msra.mxu0 %v4451_v38 }
0x26e0   :  { %v2854_v25 = vpop.f32.mrb[48].mxu0 }
0x26e1   :  { %v2862_v27 = vrot.slane %v2854_v25, 4  ;;  %v2856_v28 = vpop.f32.mrb[49].mxu0  ;;  %v5574_v25 = vld [vmem:[%s5769_s12 + $0x34] ss:$8 sps:$4 sm:$0xff]  }
0x26e2   :  { %v2858_v32 = vpop.f32.mrb[50].mxu0  ;;  %v2865_v54 = vadd.f32 %v2856_v28, %v5380_v29  ;;  %v4463_v28 = vld [vmem:[%s5767_s10 + $0x70] ss:$8 sps:$4 sm:$0xff]  }
0x26e3   :  { %v2864_v35 = vadd.f32 %v2862_v27, %v5382_v36  ;;  %v2859_v17 = vpop.f32.mrb[51].mxu0  ;;  %v5580_v27 = vld [vmem:[%s5769_s12 + $0x30] ss:$8 sps:$4 sm:$0xff]  }
0x26e5   :  { %v2867_v37 = vrot.slane %v2864_v35, 4 }
0x26e7   :  { %v2869_v47 = vsel %vm2308_vm5, %v2867_v37, %v2865_v54 }
0x26e8   :  { %4589 = vtanh.f32 %v2869_v47  ;;  %v4049_v50 = vmul.f32 -1.442695, %v2869_v47 }
0x26ea   :  { %4591 = vpow2.f32 %v4049_v50 }
0x26f2   :  { %v4590_v24 = vpop.eup %4589 }
0x26f3   :  { %2879 = vrot.lane.b32.xlu0 %v4590_v24, %s4697_s24 }
0x26f4   :  { %v4592_v39 = vpop.eup %4591 }
0x26f5   :  { %v2873_v31 = vadd.f32 1.0, %v4592_v39 }
0x26f7   :  { %4593 = vrcp.f32 %v2873_v31 }
0x2701   :  { %v4594_v62 = vpop.eup %4593 }
0x2702   :  { %v2877_v44 = vmul.f32 %v4594_v62, %v2797_v51 }
0x2765   :  { %v2880_v40 = vpop.permute.xlu0 %2879 }
0x2766   :  { %v2882_v41 = vmul.f32 %v4594_v62, %v2880_v40 }
0x2768   :  { %2884 = vrot.lane.b32.xlu1 %v2882_v41, %s4696_s4 }
0x27da   :  { %v2885_v48 = vpop.permute.xlu1 %2884 }
0x27db   :  { %v2887_v3 = vadd.f32 %v2885_v48, %v2877_v44 }
0x27dd   :  { %4595 = vtanh.f32 %v2887_v3 }
0x27e7   :  { %v4596_v4 = vpop.eup %4595 }
0x27e8   :  { %2890 = vrot.lane.b32.xlu0 %v4596_v4, %s4697_s24 }
0x285a   :  { %v2891_v52 = vpop.permute.xlu0 %2890 }
0x285b   :  { %v5490_v16 = vmul.f32 %v4594_v62, %v2891_v52 }
0x285d   :  { %v2903_v15 = vpack.c.bf16 %v5490_v16, %v5490_v16 }
0x285f   :  { %2905 = vrot.lane.b32.xlu1 %v2903_v15, %s4696_s4 }
0x28d1   :  { %v2906_v55 = vpop.permute.xlu1 %2905 }
0x28d2   :  { %4050 = vmatmul.mubr.msk.bf16.vlgmr.msra.gmra.mrb[76].mxu1 %vm227_vm3, %v2906_v55 }
0x28d3   :  { %3172 = vmatprep.mubr.bf16.mxu1 %v4693_v18 }
0x29a5   :  { %v2944_v57 = vpop.f32.mrb[76].mxu1 }
0x29a6   :  { %v2952_v63 = vrot.slane %v2944_v57, 2  ;;  %v2946_v0 = vpop.f32.mrb[77].mxu1  ;;  %v3018_v57 = vrot.slane %v5372_v42, %v5046_v11 }
0x29a7   :  { %v2956_v10 = vrot.slane %v2946_v0, 2  ;;  %v2948_v9 = vpop.f32.mrb[78].mxu1 }
0x29a8   :  { %v2954_v12 = vadd.f32 %v2952_v63, %v5382_v36  ;;  %v2949_v13 = vpop.f32.mrb[79].mxu1  ;;  %v3014_v63 = vrot.slane %v5372_v42, %v4825_v34  ;;  %v3028_v0 = vrot.slane %v3018_v57, %v4825_v34 }
0x29a9   :  { %v2958_v14 = vadd.f32 %v2956_v10, %v5380_v29 }
0x29aa   :  { %v2960_v1 = vrot.slane %v2954_v12, 6  ;;  %v3024_v10 = vrot.slane %v3014_v63, %v4825_v34 }
0x29ab   :  { %v2963_v6 = vrot.slane %v2958_v14, 6 }
0x29ad   :  { %v2965_v19 = vsel %vm2308_vm5, %v2960_v1, %v2963_v6 }
0x29ae   :  { %4597 = vtanh.f32 %v2965_v19  ;;  %v4051_v8 = vmul.f32 -1.442695, %v2965_v19 }
0x29b0   :  { %4599 = vpow2.f32 %v4051_v8 }
0x29b8   :  { %v4598_v46 = vpop.eup %4597 }
0x29b9   :  { %2975 = vrot.lane.b32.xlu0 %v4598_v46, %s4697_s24 }
0x29ba   :  { %v4600_v20 = vpop.eup %4599 }
0x29bb   :  { %v2969_v5 = vadd.f32 1.0, %v4600_v20 }
0x29bd   :  { %4601 = vrcp.f32 %v2969_v5 }
0x29c7   :  { %v5501_v2 = vpop.eup %4601 }
0x29c8   :  { %v2973_v29 = vmul.f32 %v5501_v2, %v2887_v3 }
0x2a2b   :  { %v2976_v60 = vpop.permute.xlu0 %2975 }
0x2a2c   :  { %v2978_v36 = vmul.f32 %v5501_v2, %v2976_v60 }
0x2a2e   :  { %2980 = vrot.lane.b32.xlu1 %v2978_v36, %s4696_s4 }
0x2a32   :  { %2335 = vrot.lane.b32.xlu1 %v5394_v59, %s4696_s4 }
0x2a36   :  { %2433 = vrot.lane.b32.xlu1 %v5411_v49, %s4696_s4 }
0x2a3a   :  { %2523 = vrot.lane.b32.xlu1 %v5428_v58, %s4696_s4 }
0x2a3e   :  { %2619 = vrot.lane.b32.xlu1 %v5445_v26, %s4696_s4 }
0x2a42   :  { %2709 = vrot.lane.b32.xlu1 %v5461_v56, %s4696_s4 }
0x2a46   :  { %2805 = vrot.lane.b32.xlu1 %v5477_v23, %s4696_s4 }
0x2a4a   :  { %2895 = vrot.lane.b32.xlu1 %v5490_v16, %s4696_s4 }
0x2aa0   :  { %v2981_v61 = vpop.permute.xlu1 %2980 }
0x2aa1   :  { %v2983_v33 = vadd.f32 %v2981_v61, %v2973_v29 }
0x2aa3   :  { %4603 = vtanh.f32 %v2983_v33 }
0x2aa4   :  { %v2336_v7 = vpop.permute.xlu1 %2335 }
0x2aa5   :  { %2339 = vst.msk [vmem:[#allocation5] sm:$0x3] %vm2338_vm6, %v2336_v7 }
0x2aa8   :  { %v2434_v21 = vpop.permute.xlu1 %2433 }
0x2aa9   :  { %2436 = vst.msk [vmem:[#allocation5 + $0x2] sm:$0x3] %vm2338_vm6, %v2434_v21 }
0x2aac   :  { %v2524_v22 = vpop.permute.xlu1 %2523 }
0x2aad   :  { %v4604_v51 = vpop.eup %4603  ;;  %2526 = vst.msk [vmem:[#allocation5 + $0x4] sm:$0x3] %vm2338_vm6, %v2524_v22 }
0x2aae   :  { %2986 = vrot.lane.b32.xlu0 %v4604_v51, %s4697_s24 }
0x2ab0   :  { %v2620_v30 = vpop.permute.xlu1 %2619 }
0x2ab1   :  { %2622 = vst.msk [vmem:[#allocation5 + $0x6] sm:$0x3] %vm2338_vm6, %v2620_v30 }
0x2ab2   :  { %2340 = vrot.lane.b32.xlu0 %v5394_v59, %s4697_s24  ;;  %v4456_v59 = vld [vmem:[%s5767_s10 + $0x54] ss:$8 sps:$4 sm:$0xff]  }
0x2ab3   :  { %3074 = vmatprep.subr.bf16.mxu0 %v4456_v59 }
0x2ab4   :  { %v2710_v32 = vpop.permute.xlu1 %2709 }
0x2ab6   :  { %2437 = vrot.lane.b32.xlu0 %v5411_v49, %s4697_s24  ;;  %v4454_v49 = vld [vmem:[%s5767_s10 + $0x50] ss:$8 sps:$4 sm:$0xff]  }
0x2ab7   :  { %3075 = vmatpush1.bf16.msra.mxu0 %v4454_v49 }
0x2ab8   :  { %v2806_v37 = vpop.permute.xlu1 %2805 }
0x2aba   :  { %2527 = vrot.lane.b32.xlu0 %v5428_v58, %s4697_s24  ;;  %v5554_v58 = vld [vmem:[%s5769_s12 + $0x24] ss:$8 sps:$4 sm:$0xff]  }
0x2abb   :  { %3140 = vmatprep.subr.bf16.mxu1 %v5554_v58 }
0x2abc   :  { %v2896_v24 = vpop.permute.xlu1 %2895 }
0x2abe   :  { %2623 = vrot.lane.b32.xlu0 %v5445_v26, %s4697_s24  ;;  %v4457_v26 = vld [vmem:[%s5767_s10 + $0x60] ss:$8 sps:$4 sm:$0xff]  }
0x2ac2   :  { %2713 = vrot.lane.b32.xlu0 %v5461_v56, %s4697_s24  ;;  %v4459_v56 = vld [vmem:[%s5767_s10 + $0x64] ss:$8 sps:$4 sm:$0xff]  }
0x2ac3   :  { %3076 = vmatprep.subr.bf16.mxu0 %v4459_v56 }
0x2ac4   :  { %3077 = vmatpush1.bf16.msra.mxu0 %v4457_v26 }
0x2ac5   :  { %3078 = vmatprep.subr.bf16.mxu0 %v4465_v43 }
0x2ac6   :  { %2809 = vrot.lane.b32.xlu0 %v5477_v23, %s4697_s24  ;;  %v5565_v23 = vld [vmem:[%s5769_s12 + $0x20] ss:$8 sps:$4 sm:$0xff]  }
0x2ac7   :  { %3141 = vmatpush1.bf16.msra.mxu1 %v5565_v23 }
0x2ac8   :  { %3142 = vmatprep.subr.bf16.mxu1 %v5574_v25  ;;  %3079 = vmatpush1.bf16.msra.mxu0 %v4463_v28 }
0x2ac9   :  { %3308 = vmatprep.subr.bf16.mxu0 %v5554_v58 }
0x2aca   :  { %2899 = vrot.lane.b32.xlu0 %v5490_v16, %s4697_s24 }
0x2acb   :  { %3143 = vmatpush1.bf16.msra.mxu1 %v5580_v27 }
0x2acc   :  { %3221 = vmatprep.subr.bf16.mxu1 %v5554_v58 }
0x2ace   :  { %3173 = vmatmul.mubr.bf16.vlgmr.msra.gmra.mrb[80].mxu1 %v4693_v18 }
0x2acf   :  { %3222 = vmatpush1.bf16.msra.mxu1 %v5565_v23  ;;  %3253 = vmatprep.mubr.bf16.mxu1 %v4693_v18 }
0x2ad0   :  { %3223 = vmatprep.subr.bf16.mxu1 %v5574_v25 }
0x2ad3   :  { %3224 = vmatpush1.bf16.msra.mxu1 %v5580_v27 }
0x2ad4   :  { %3389 = vmatprep.subr.bf16.mxu1 %v5554_v58 }
0x2b20   :  { %v2987_v35 = vpop.permute.xlu0 %2986 }
0x2b21   :  { %v2989_v17 = vmul.f32 %v5501_v2, %v2987_v35 }
0x2b23   :  { %2995 = vrot.lane.b32.xlu0 %v2989_v17, %s4697_s24  ;;  %2991 = vrot.lane.b32.xlu1 %v2989_v17, %s4696_s4 }
0x2b24   :  { %v2341_v54 = vpop.permute.xlu0 %2340 }
0x2b25   :  { %2344 = vst.msk [vmem:[#allocation5 + $0xc] sm:$0xc] %vm2343_vm7, %v2341_v54 }
0x2b28   :  { %v2438_v47 = vpop.permute.xlu0 %2437 }
0x2b29   :  { %2440 = vst.msk [vmem:[#allocation5 + $0xa] sm:$0xc] %vm2343_vm7, %v2438_v47 }
0x2b2a   :  { %2898 = vst.msk [vmem:[#allocation5 + $0xc] sm:$0x3] %vm2338_vm6, %v2896_v24 }
0x2b2c   :  { %v2528_v50 = vpop.permute.xlu0 %2527 }
0x2b2d   :  { %2530 = vst.msk [vmem:[#allocation5 + $0x8] sm:$0xc] %vm2343_vm7, %v2528_v50 }
0x2b2e   :  { %2808 = vst.msk [vmem:[#allocation5 + $0xa] sm:$0x3] %vm2338_vm6, %v2806_v37 }
0x2b30   :  { %v2624_v39 = vpop.permute.xlu0 %2623 }
0x2b31   :  { %2626 = vst.msk [vmem:[#allocation5 + $0x6] sm:$0xc] %vm2343_vm7, %v2624_v39 }
0x2b32   :  { %2712 = vst.msk [vmem:[#allocation5 + $0x8] sm:$0x3] %vm2338_vm6, %v2710_v32 }
0x2b34   :  { %v2714_v31 = vpop.permute.xlu0 %2713 }
0x2b35   :  { %2716 = vst.msk [vmem:[#allocation5 + $0x4] sm:$0xc] %vm2343_vm7, %v2714_v31 }
0x2b38   :  { %v2810_v62 = vpop.permute.xlu0 %2809 }
0x2b39   :  { %2812 = vst.msk [vmem:[#allocation5 + $0x2] sm:$0xc] %vm2343_vm7, %v2810_v62 }
0x2b3c   :  { %v2900_v40 = vpop.permute.xlu0 %2899 }
0x2b3d   :  { %2902 = vst.msk [vmem:[#allocation5] sm:$0xc] %vm2343_vm7, %v2900_v40 }
0x2b95   :  { %v2992_v41 = vpop.permute.xlu1 %2991  ;;  %v2996_v44 = vpop.permute.xlu0 %2995 }
0x2b96   :  { %2994 = vst.msk [vmem:[#allocation5 + $0xe] sm:$0x3] %vm2338_vm6, %v2992_v41 }
0x2b97   :  { %2998 = vst.msk [vmem:[#allocation5 - $0x2] sm:$0xc] %vm2343_vm7, %v2996_v44 }
0x2b9d   :  { %v3000_v3 = vld [vmem:[#allocation5 + $0x8] sm:$0xff] }
0x2b9e   :  { %v2999_v48 = vld [vmem:[#allocation5] sm:$0xff] }
0x2b9f   :  { %v3001_v4 = vpack.c.bf16 %v3000_v3, %v2999_v48 }
0x2ba1   :  { %4068 = vmatmul.mubr.msk.bf16.vlgmr.msra.gmra.mrb[52].mxu0 %vm69_vm0, %v3001_v4  ;;  %v3174_v52 = vpop.f32.mrb[80].mxu1 }
0x2ba2   :  { %3309 = vmatpush1.bf16.msra.mxu0 %v5565_v23  ;;  %3340 = vmatprep.mubr.bf16.mxu0 %v4693_v18  ;;  %v3176_v16 = vpop.f32.mrb[81].mxu1 }
0x2ba3   :  { %3310 = vmatprep.subr.bf16.mxu0 %v5574_v25  ;;  %v3178_v15 = vpop.f32.mrb[82].mxu1  ;;  %v3183_v14 = vrot.slane %v3176_v16, 4 }
0x2ba4   :  { %v3179_v55 = vpop.f32.mrb[83].mxu1 }
0x2ba6   :  { %3311 = vmatpush1.bf16.msra.mxu0 %v5580_v27 }
0x2ba7   :  { %3476 = vmatprep.subr.bf16.mxu0 %v5554_v58 }
0x2c74   :  { %v3106_v9 = vpop.f32.mrb[52].mxu0 }
0x2c75   :  { %v3108_v12 = vpop.f32.mrb[53].mxu0  ;;  %v5626_v46 = vadd.f32 %v3106_v9, %v3024_v10 }
0x2c76   :  { %v5622_v13 = vadd.f32 %v3108_v12, %v3028_v0  ;;  %v3110_v1 = vpop.f32.mrb[54].mxu0 }
0x2c77   :  { %v5624_v6 = vadd.f32 %v3110_v1, %v3024_v10  ;;  %v3112_v19 = vpop.f32.mrb[55].mxu0  ;;  %v3181_v42 = vadd.f32 %v3174_v52, %v5626_v46 }
0x2c78   :  { %v5628_v8 = vadd.f32 %v3112_v19, %v3028_v0 }
0x2c7a   :  { %v3185_v11 = vadd.f32 %v3183_v14, %v5628_v8 }
0x2c7c   :  { %v3187_v20 = vrot.slane %v3185_v11, 4 }
0x2c7e   :  { %v3189_v34 = vsel %vm2308_vm5, %v3181_v42, %v3187_v20 }
0x2c7f   :  { %4605 = vtanh.f32 %v3189_v34  ;;  %v4077_v2 = vmul.f32 -1.442695, %v3189_v34 }
0x2c81   :  { %4607 = vpow2.f32 %v4077_v2 }
0x2c89   :  { %v4606_v5 = vpop.eup %4605 }
0x2c8a   :  { %3199 = vrot.lane.b32.xlu1 %v4606_v5, %s4697_s24 }
0x2c8b   :  { %v4608_v60 = vpop.eup %4607 }
0x2c8c   :  { %v3193_v36 = vadd.f32 1.0, %v4608_v60 }
0x2c8e   :  { %4609 = vrcp.f32 %v3193_v36 }
0x2c98   :  { %v4610_v29 = vpop.eup %4609 }
0x2c99   :  { %v3197_v7 = vmul.f32 0.0, %v4610_v29 }
0x2cfc   :  { %v3200_v61 = vpop.permute.xlu1 %3199 }
0x2cfd   :  { %v3202_v33 = vmul.f32 %v4610_v29, %v3200_v61 }
0x2cff   :  { %3204 = vrot.lane.b32.xlu0 %v3202_v33, %s4696_s4 }
0x2d71   :  { %v3205_v21 = vpop.permute.xlu0 %3204 }
0x2d72   :  { %v3207_v22 = vadd.f32 %v3205_v21, %v3197_v7 }
0x2d74   :  { %4611 = vtanh.f32 %v3207_v22 }
0x2d7e   :  { %v4612_v51 = vpop.eup %4611 }
0x2d7f   :  { %3210 = vrot.lane.b32.xlu1 %v4612_v51, %s4697_s24 }
0x2df1   :  { %v3211_v30 = vpop.permute.xlu1 %3210 }
0x2df2   :  { %v5636_v38 = vmul.f32 %v4610_v29, %v3211_v30 }
0x2df4   :  { %v3214_v53 = vpack.c.bf16 %v5636_v38, %v5636_v38 }
0x2df6   :  { %3216 = vrot.lane.b32.xlu0 %v3214_v53, %s4696_s4 }
0x2e68   :  { %v3217_v59 = vpop.permute.xlu0 %3216 }
0x2e69   :  { %4078 = vmatmul.mubr.msk.bf16.vlgmr.msra.gmra.mrb[84].mxu1 %vm227_vm3, %v3217_v59 }
0x2e6a   :  { %3390 = vmatpush1.bf16.msra.mxu1 %v5565_v23  ;;  %3421 = vmatprep.mubr.bf16.mxu1 %v4693_v18 }
0x2e6b   :  { %3391 = vmatprep.subr.bf16.mxu1 %v5574_v25 }
0x2e6e   :  { %3392 = vmatpush1.bf16.msra.mxu1 %v5580_v27 }
0x2e6f   :  { %3557 = vmatprep.subr.bf16.mxu1 %v5554_v58 }
0x2f3c   :  { %v3255_v49 = vpop.f32.mrb[84].mxu1 }
0x2f3d   :  { %v3263_v26 = vrot.slane %v3255_v49, 6  ;;  %v3257_v56 = vpop.f32.mrb[85].mxu1 }
0x2f3e   :  { %v3267_v43 = vrot.slane %v3257_v56, 6  ;;  %v3259_v28 = vpop.f32.mrb[86].mxu1 }
0x2f3f   :  { %v3265_v32 = vadd.f32 %v3263_v26, %v5626_v46  ;;  %v3260_v35 = vpop.f32.mrb[87].mxu1 }
0x2f40   :  { %v3269_v17 = vadd.f32 %v3267_v43, %v5628_v8 }
0x2f41   :  { %v3271_v37 = vrot.slane %v3265_v32, 2 }
0x2f42   :  { %v3274_v54 = vrot.slane %v3269_v17, 2 }
0x2f44   :  { %v3276_v47 = vsel %vm2308_vm5, %v3271_v37, %v3274_v54 }
0x2f45   :  { %4613 = vtanh.f32 %v3276_v47  ;;  %v4079_v50 = vmul.f32 -1.442695, %v3276_v47 }
0x2f47   :  { %4615 = vpow2.f32 %v4079_v50 }
0x2f4f   :  { %v4614_v24 = vpop.eup %4613 }
0x2f50   :  { %3286 = vrot.lane.b32.xlu1 %v4614_v24, %s4697_s24 }
0x2f51   :  { %v4616_v39 = vpop.eup %4615 }
0x2f52   :  { %v3280_v31 = vadd.f32 1.0, %v4616_v39 }
0x2f54   :  { %4617 = vrcp.f32 %v3280_v31 }
0x2f5e   :  { %v4618_v62 = vpop.eup %4617 }
0x2f5f   :  { %v3284_v44 = vmul.f32 %v4618_v62, %v3207_v22 }
0x2fc2   :  { %v3287_v40 = vpop.permute.xlu1 %3286 }
0x2fc3   :  { %v3289_v41 = vmul.f32 %v4618_v62, %v3287_v40 }
0x2fc5   :  { %3291 = vrot.lane.b32.xlu0 %v3289_v41, %s4696_s4 }
0x3037   :  { %v3292_v48 = vpop.permute.xlu0 %3291 }
0x3038   :  { %v3294_v3 = vadd.f32 %v3292_v48, %v3284_v44 }
0x303a   :  { %4619 = vtanh.f32 %v3294_v3 }
0x3044   :  { %v4620_v4 = vpop.eup %4619 }
0x3045   :  { %3297 = vrot.lane.b32.xlu1 %v4620_v4, %s4697_s24 }
0x30b7   :  { %v3298_v52 = vpop.permute.xlu1 %3297 }
0x30b8   :  { %v3300_v16 = vmul.f32 %v4618_v62, %v3298_v52 }
0x30ba   :  { %v3301_v15 = vpack.c.bf16 %v3300_v16, %v3300_v16 }
0x30bc   :  { %3303 = vrot.lane.b32.xlu0 %v3301_v15, %s4696_s4 }
0x312e   :  { %v3304_v55 = vpop.permute.xlu0 %3303 }
0x312f   :  { %4080 = vmatmul.mubr.msk.bf16.vlgmr.msra.gmra.mrb[56].mxu0 %vm227_vm3, %v3304_v55 }
0x3130   :  { %3477 = vmatpush1.bf16.msra.mxu0 %v5565_v23  ;;  %3508 = vmatprep.mubr.bf16.mxu0 %v4693_v18 }
0x3131   :  { %3478 = vmatprep.subr.bf16.mxu0 %v5574_v25 }
0x3134   :  { %3479 = vmatpush1.bf16.msra.mxu0 %v5580_v27 }
0x3135   :  { %3644 = vmatprep.subr.bf16.mxu0 %v5554_v58 }
0x3202   :  { %v3342_v57 = vpop.f32.mrb[56].mxu0 }
0x3203   :  { %v3350_v63 = vrot.slane %v3342_v57, 4  ;;  %v3344_v0 = vpop.f32.mrb[57].mxu0 }
0x3204   :  { %v3346_v10 = vpop.f32.mrb[58].mxu0  ;;  %v3353_v1 = vadd.f32 %v3344_v0, %v5628_v8 }
0x3205   :  { %v3352_v9 = vadd.f32 %v3350_v63, %v5626_v46  ;;  %v3347_v12 = vpop.f32.mrb[59].mxu0 }
0x3207   :  { %v3355_v14 = vrot.slane %v3352_v9, 4 }
0x3209   :  { %v3357_v19 = vsel %vm2308_vm5, %v3355_v14, %v3353_v1 }
0x320a   :  { %4621 = vtanh.f32 %v3357_v19  ;;  %v4081_v42 = vmul.f32 -1.442695, %v3357_v19 }
0x320c   :  { %4623 = vpow2.f32 %v4081_v42 }
0x3214   :  { %v4622_v11 = vpop.eup %4621 }
0x3215   :  { %3367 = vrot.lane.b32.xlu1 %v4622_v11, %s4697_s24 }
0x3216   :  { %v4624_v20 = vpop.eup %4623 }
0x3217   :  { %v3361_v34 = vadd.f32 1.0, %v4624_v20 }
0x3219   :  { %4625 = vrcp.f32 %v3361_v34 }
0x3223   :  { %v4626_v5 = vpop.eup %4625 }
0x3224   :  { %v3365_v36 = vmul.f32 %v4626_v5, %v3294_v3 }
0x3287   :  { %v3368_v2 = vpop.permute.xlu1 %3367 }
0x3288   :  { %v3370_v60 = vmul.f32 %v4626_v5, %v3368_v2 }
0x328a   :  { %3372 = vrot.lane.b32.xlu0 %v3370_v60, %s4696_s4 }
0x32fc   :  { %v3373_v29 = vpop.permute.xlu0 %3372 }
0x32fd   :  { %v3375_v61 = vadd.f32 %v3373_v29, %v3365_v36 }
0x32ff   :  { %4627 = vtanh.f32 %v3375_v61 }
0x3309   :  { %v4628_v33 = vpop.eup %4627 }
0x330a   :  { %3378 = vrot.lane.b32.xlu1 %v4628_v33, %s4697_s24 }
0x337c   :  { %v3379_v7 = vpop.permute.xlu1 %3378 }
0x337d   :  { %v3381_v21 = vmul.f32 %v4626_v5, %v3379_v7 }
0x337f   :  { %v3382_v22 = vpack.c.bf16 %v3381_v21, %v3381_v21 }
0x3381   :  { %3384 = vrot.lane.b32.xlu0 %v3382_v22, %s4696_s4 }
0x33f3   :  { %v3385_v51 = vpop.permute.xlu0 %3384 }
0x33f4   :  { %4082 = vmatmul.mubr.msk.bf16.vlgmr.msra.gmra.mrb[88].mxu1 %vm227_vm3, %v3385_v51 }
0x33f5   :  { %3558 = vmatpush1.bf16.msra.mxu1 %v5565_v23  ;;  %3589 = vmatprep.mubr.bf16.mxu1 %v4693_v18 }
0x33f6   :  { %3559 = vmatprep.subr.bf16.mxu1 %v5574_v25 }
0x33f9   :  { %3560 = vmatpush1.bf16.msra.mxu1 %v5580_v27 }
0x33fa   :  { %3725 = vmatprep.subr.bf16.mxu1 %v5554_v58 }
0x34c7   :  { %v3423_v30 = vpop.f32.mrb[88].mxu1 }
0x34c8   :  { %v3431_v53 = vrot.slane %v3423_v30, 2  ;;  %v3425_v59 = vpop.f32.mrb[89].mxu1 }
0x34c9   :  { %v3435_v49 = vrot.slane %v3425_v59, 2  ;;  %v3427_v26 = vpop.f32.mrb[90].mxu1 }
0x34ca   :  { %v3433_v56 = vadd.f32 %v3431_v53, %v5626_v46  ;;  %v3428_v43 = vpop.f32.mrb[91].mxu1 }
0x34cb   :  { %v3437_v28 = vadd.f32 %v3435_v49, %v5628_v8 }
0x34cc   :  { %v3439_v32 = vrot.slane %v3433_v56, 6 }
0x34cd   :  { %v3442_v35 = vrot.slane %v3437_v28, 6 }
0x34cf   :  { %v3444_v17 = vsel %vm2308_vm5, %v3439_v32, %v3442_v35 }
0x34d0   :  { %4629 = vtanh.f32 %v3444_v17  ;;  %v4083_v54 = vmul.f32 -1.442695, %v3444_v17 }
0x34d2   :  { %4631 = vpow2.f32 %v4083_v54 }
0x34da   :  { %v4630_v37 = vpop.eup %4629 }
0x34db   :  { %3454 = vrot.lane.b32.xlu1 %v4630_v37, %s4697_s24 }
0x34dc   :  { %v4632_v58 = vpop.eup %4631 }
0x34dd   :  { %v3448_v47 = vadd.f32 1.0, %v4632_v58 }
0x34df   :  { %4633 = vrcp.f32 %v3448_v47 }
0x34e9   :  { %v4634_v24 = vpop.eup %4633 }
0x34ea   :  { %v3452_v46 = vmul.f32 %v4634_v24, %v3375_v61 }
0x354d   :  { %v3455_v50 = vpop.permute.xlu1 %3454 }
0x354e   :  { %v3457_v39 = vmul.f32 %v4634_v24, %v3455_v50 }
0x3550   :  { %3459 = vrot.lane.b32.xlu0 %v3457_v39, %s4696_s4 }
0x35c2   :  { %v3460_v8 = vpop.permute.xlu0 %3459 }
0x35c3   :  { %v3462_v31 = vadd.f32 %v3460_v8, %v3452_v46 }
0x35c5   :  { %4635 = vtanh.f32 %v3462_v31 }
0x35cf   :  { %v4636_v62 = vpop.eup %4635 }
0x35d0   :  { %3465 = vrot.lane.b32.xlu1 %v4636_v62, %s4697_s24 }
0x3642   :  { %v3466_v40 = vpop.permute.xlu1 %3465 }
0x3643   :  { %v3468_v41 = vmul.f32 %v4634_v24, %v3466_v40 }
0x3645   :  { %v3469_v44 = vpack.c.bf16 %v3468_v41, %v3468_v41 }
0x3647   :  { %3471 = vrot.lane.b32.xlu0 %v3469_v44, %s4696_s4 }
0x36b9   :  { %v3472_v48 = vpop.permute.xlu0 %3471 }
0x36ba   :  { %4084 = vmatmul.mubr.msk.bf16.vlgmr.msra.gmra.mrb[60].mxu0 %vm227_vm3, %v3472_v48 }
0x36bb   :  { %3645 = vmatpush1.bf16.msra.mxu0 %v5565_v23  ;;  %3676 = vmatprep.mubr.bf16.mxu0 %v4693_v18 }
0x36bc   :  { %3646 = vmatprep.subr.bf16.mxu0 %v5574_v25 }
0x36bf   :  { %3647 = vmatpush1.bf16.msra.mxu0 %v5580_v27 }
0x36c0   :  { %4357 = vmatprep.subr.bf16.mxu0 %v4694_v45 }
0x378d   :  { %v3510_v3 = vpop.f32.mrb[60].mxu0 }
0x378e   :  { %v3512_v4 = vpop.f32.mrb[61].mxu0  ;;  %v3517_v57 = vadd.f32 %v3510_v3, %v5624_v6 }
0x378f   :  { %v3519_v52 = vrot.slane %v3512_v4, 4  ;;  %v3514_v16 = vpop.f32.mrb[62].mxu0 }
0x3790   :  { %v3515_v15 = vpop.f32.mrb[63].mxu0 }
0x3791   :  { %v3521_v55 = vadd.f32 %v3519_v52, %v5622_v13 }
0x3793   :  { %v3523_v63 = vrot.slane %v3521_v55, 4 }
0x3795   :  { %v3525_v0 = vsel %vm2308_vm5, %v3517_v57, %v3523_v63 }
0x3796   :  { %4637 = vtanh.f32 %v3525_v0  ;;  %v4085_v9 = vmul.f32 -1.442695, %v3525_v0 }
0x3798   :  { %4639 = vpow2.f32 %v4085_v9 }
0x37a0   :  { %v4638_v10 = vpop.eup %4637 }
0x37a1   :  { %3535 = vrot.lane.b32.xlu1 %v4638_v10, %s4697_s24 }
0x37a2   :  { %v4640_v12 = vpop.eup %4639 }
0x37a3   :  { %v3529_v14 = vadd.f32 1.0, %v4640_v12 }
0x37a5   :  { %4641 = vrcp.f32 %v3529_v14 }
0x37af   :  { %v4642_v1 = vpop.eup %4641 }
0x37b0   :  { %v3533_v42 = vmul.f32 %v4642_v1, %v3462_v31 }
0x3813   :  { %v3536_v19 = vpop.permute.xlu1 %3535 }
0x3814   :  { %v3538_v11 = vmul.f32 %v4642_v1, %v3536_v19 }
0x3816   :  { %3540 = vrot.lane.b32.xlu0 %v3538_v11, %s4696_s4 }
0x3888   :  { %v3541_v20 = vpop.permute.xlu0 %3540 }
0x3889   :  { %v3543_v34 = vadd.f32 %v3541_v20, %v3533_v42 }
0x388b   :  { %4643 = vtanh.f32 %v3543_v34 }
0x3895   :  { %v4644_v5 = vpop.eup %4643 }
0x3896   :  { %3546 = vrot.lane.b32.xlu1 %v4644_v5, %s4697_s24 }
0x3908   :  { %v3547_v2 = vpop.permute.xlu1 %3546 }
0x3909   :  { %v3549_v60 = vmul.f32 %v4642_v1, %v3547_v2 }
0x390b   :  { %v3550_v36 = vpack.c.bf16 %v3549_v60, %v3549_v60 }
0x390d   :  { %3552 = vrot.lane.b32.xlu0 %v3550_v36, %s4696_s4 }
0x397f   :  { %v3553_v29 = vpop.permute.xlu0 %3552 }
0x3980   :  { %4086 = vmatmul.mubr.msk.bf16.vlgmr.msra.gmra.mrb[92].mxu1 %vm227_vm3, %v3553_v29 }
0x3981   :  { %3726 = vmatpush1.bf16.msra.mxu1 %v5565_v23  ;;  %3757 = vmatprep.mubr.bf16.mxu1 %v4693_v18 }
0x3982   :  { %3727 = vmatprep.subr.bf16.mxu1 %v5574_v25 }
0x3985   :  { %3728 = vmatpush1.bf16.msra.mxu1 %v5580_v27 }
0x3a53   :  { %v3591_v61 = vpop.f32.mrb[92].mxu1 }
0x3a54   :  { %v3599_v33 = vrot.slane %v3591_v61, 6  ;;  %v3593_v7 = vpop.f32.mrb[93].mxu1 }
0x3a55   :  { %v3603_v21 = vrot.slane %v3593_v7, 6  ;;  %v3595_v22 = vpop.f32.mrb[94].mxu1 }
0x3a56   :  { %v3601_v51 = vadd.f32 %v3599_v33, %v5624_v6  ;;  %v3596_v30 = vpop.f32.mrb[95].mxu1 }
0x3a57   :  { %v3605_v53 = vadd.f32 %v3603_v21, %v5622_v13 }
0x3a58   :  { %v3607_v59 = vrot.slane %v3601_v51, 2 }
0x3a59   :  { %v3610_v49 = vrot.slane %v3605_v53, 2 }
0x3a5b   :  { %v3612_v23 = vsel %vm2308_vm5, %v3607_v59, %v3610_v49  ;;  %v4469_v49 = vld [vmem:[%s5770_s13] sm:$0xff]  }
0x3a5c   :  { %4645 = vtanh.f32 %v3612_v23  ;;  %v4087_v25 = vmul.f32 -1.442695, %v3612_v23  ;;  %v4470_v23 = vld [vmem:[%s5770_s13 + $0x8] sm:$0xff]  }
0x3a5e   :  { %4647 = vpow2.f32 %v4087_v25 }
0x3a66   :  { %v4646_v18 = vpop.eup %4645 }
0x3a67   :  { %3622 = vrot.lane.b32.xlu1 %v4646_v18, %s4697_s24  ;;  %v4471_v18 = vld [vmem:[%s5770_s13 + $0x10] sm:$0xff]  }
0x3a68   :  { %v4648_v27 = vpop.eup %4647 }
0x3a69   :  { %v3616_v26 = vadd.f32 1.0, %v4648_v27  ;;  %v3810_v27 = vrot.slane %v5636_v38, 2 }
0x3a6b   :  { %4649 = vrcp.f32 %v3616_v26  ;;  %v4472_v26 = vld [vmem:[%s5770_s13 + $0x18] sm:$0xff]  }
0x3a75   :  { %v4650_v56 = vpop.eup %4649 }
0x3a76   :  { %v3620_v32 = vmul.f32 %v4650_v56, %v3543_v34 }
0x3ad9   :  { %v3623_v43 = vpop.permute.xlu1 %3622 }
0x3ada   :  { %v3625_v28 = vmul.f32 %v4650_v56, %v3623_v43 }
0x3adc   :  { %3627 = vrot.lane.b32.xlu0 %v3625_v28, %s4696_s4 }
0x3b4e   :  { %v3628_v35 = vpop.permute.xlu0 %3627 }
0x3b4f   :  { %v3630_v17 = vadd.f32 %v3628_v35, %v3620_v32 }
0x3b51   :  { %4651 = vtanh.f32 %v3630_v17 }
0x3b5b   :  { %v4652_v37 = vpop.eup %4651 }
0x3b5c   :  { %3633 = vrot.lane.b32.xlu1 %v4652_v37, %s4697_s24 }
0x3bce   :  { %v3634_v54 = vpop.permute.xlu1 %3633 }
0x3bcf   :  { %v3636_v58 = vmul.f32 %v4650_v56, %v3634_v54 }
0x3bd1   :  { %v3637_v47 = vpack.c.bf16 %v3636_v58, %v3636_v58 }
0x3bd3   :  { %3639 = vrot.lane.b32.xlu0 %v3637_v47, %s4696_s4 }
0x3c45   :  { %v3640_v24 = vpop.permute.xlu0 %3639 }
0x3c46   :  { %4088 = vmatmul.mubr.msk.bf16.vlgmr.msra.gmra.mrb[64].mxu0 %vm227_vm3, %v3640_v24 }
0x3c47   :  { %4365 = vmatprep.mubr.msk.bf16.mxu0 %vm4695_vm1, %v4694_v45  ;;  %4358 = vmatpush3.bf16.msra.mxu0 %v4469_v49  ;;  %vm3898_vm1 = vcmask 9216  }
0x3c48   :  { %4359 = vmatprep.subr.bf16.mxu0 %v4694_v45 }
0x3c4b   :  { %4360 = vmatpush3.bf16.msra.mxu0 %v4470_v23 }
0x3c4c   :  { %4361 = vmatprep.subr.bf16.mxu0 %v4694_v45 }
0x3c4f   :  { %4362 = vmatpush3.bf16.msra.mxu0 %v4471_v18 }
0x3c50   :  { %4363 = vmatprep.subr.bf16.mxu0 %v4694_v45  ;;  %v4092_v45 = vld [vmem:[%s5771_s14] ss:$0 sm:$0xff] }
0x3c53   :  { %4364 = vmatpush3.bf16.msra.mxu0 %v4472_v26 }
0x3d19   :  { %v3678_v50 = vpop.f32.mrb[64].mxu0 }
0x3d1a   :  { %v3686_v39 = vrot.slane %v3678_v50, 4  ;;  %v3680_v46 = vpop.f32.mrb[65].mxu0 }
0x3d1b   :  { %v3682_v8 = vpop.f32.mrb[66].mxu0  ;;  %v3689_v41 = vadd.f32 %v3680_v46, %v5622_v13 }
0x3d1c   :  { %v3688_v31 = vadd.f32 %v3686_v39, %v5624_v6  ;;  %v3683_v62 = vpop.f32.mrb[67].mxu0 }
0x3d1e   :  { %v3691_v40 = vrot.slane %v3688_v31, 4 }
0x3d20   :  { %v3693_v44 = vsel %vm2308_vm5, %v3691_v40, %v3689_v41 }
0x3d21   :  { %4653 = vtanh.f32 %v3693_v44  ;;  %v4089_v3 = vmul.f32 -1.442695, %v3693_v44 }
0x3d23   :  { %4655 = vpow2.f32 %v4089_v3 }
0x3d2b   :  { %v4654_v48 = vpop.eup %4653 }
0x3d2c   :  { %3703 = vrot.lane.b32.xlu1 %v4654_v48, %s4697_s24 }
0x3d2d   :  { %v4656_v4 = vpop.eup %4655 }
0x3d2e   :  { %v3697_v52 = vadd.f32 1.0, %v4656_v4 }
0x3d30   :  { %4657 = vrcp.f32 %v3697_v52 }
0x3d3a   :  { %v4658_v16 = vpop.eup %4657 }
0x3d3b   :  { %v3701_v57 = vmul.f32 %v4658_v16, %v3630_v17 }
0x3d9e   :  { %v3704_v15 = vpop.permute.xlu1 %3703 }
0x3d9f   :  { %v3706_v55 = vmul.f32 %v4658_v16, %v3704_v15 }
0x3da1   :  { %3708 = vrot.lane.b32.xlu0 %v3706_v55, %s4696_s4 }
0x3e13   :  { %v3709_v63 = vpop.permute.xlu0 %3708 }
0x3e14   :  { %v3711_v0 = vadd.f32 %v3709_v63, %v3701_v57 }
0x3e16   :  { %4659 = vtanh.f32 %v3711_v0 }
0x3e20   :  { %v4660_v10 = vpop.eup %4659 }
0x3e21   :  { %3714 = vrot.lane.b32.xlu1 %v4660_v10, %s4697_s24 }
0x3e93   :  { %v3715_v9 = vpop.permute.xlu1 %3714 }
0x3e94   :  { %v3717_v12 = vmul.f32 %v4658_v16, %v3715_v9 }
0x3e96   :  { %v3718_v14 = vpack.c.bf16 %v3717_v12, %v3717_v12 }
0x3e98   :  { %3720 = vrot.lane.b32.xlu0 %v3718_v14, %s4696_s4 }
0x3f0a   :  { %v3721_v1 = vpop.permute.xlu0 %3720 }
0x3f0b   :  { %4090 = vmatmul.mubr.msk.bf16.vlgmr.msra.gmra.mrb[96].mxu1 %vm227_vm3, %v3721_v1 }
0x3fde   :  { %v3759_v19 = vpop.f32.mrb[96].mxu1 }
0x3fdf   :  { %v3767_v11 = vrot.slane %v3759_v19, 2  ;;  %v3761_v42 = vpop.f32.mrb[97].mxu1 }
0x3fe0   :  { %v3771_v20 = vrot.slane %v3761_v42, 2  ;;  %v3763_v34 = vpop.f32.mrb[98].mxu1 }
0x3fe1   :  { %v3769_v5 = vadd.f32 %v3767_v11, %v5624_v6  ;;  %v3764_v2 = vpop.f32.mrb[99].mxu1 }
0x3fe2   :  { %v3773_v60 = vadd.f32 %v3771_v20, %v5622_v13 }
0x3fe3   :  { %v3775_v36 = vrot.slane %v3769_v5, 6 }
0x3fe4   :  { %v3778_v29 = vrot.slane %v3773_v60, 6 }
0x3fe6   :  { %v3780_v61 = vsel %vm2308_vm5, %v3775_v36, %v3778_v29 }
0x3fe7   :  { %4661 = vtanh.f32 %v3780_v61  ;;  %v4091_v7 = vmul.f32 -1.442695, %v3780_v61 }
0x3fe9   :  { %4663 = vpow2.f32 %v4091_v7 }
0x3ff1   :  { %v4662_v33 = vpop.eup %4661 }
0x3ff2   :  { %3790 = vrot.lane.b32.xlu1 %v4662_v33, %s4697_s24 }
0x3ff3   :  { %v4664_v21 = vpop.eup %4663 }
0x3ff4   :  { %v3784_v22 = vadd.f32 1.0, %v4664_v21 }
0x3ff6   :  { %4665 = vrcp.f32 %v3784_v22 }
0x4000   :  { %v4666_v51 = vpop.eup %4665 }
0x4001   :  { %v3788_v6 = vmul.f32 %v4666_v51, %v3711_v0 }
0x4064   :  { %v3791_v30 = vpop.permute.xlu1 %3790 }
0x4065   :  { %v3793_v53 = vmul.f32 %v4666_v51, %v3791_v30 }
0x4067   :  { %3795 = vrot.lane.b32.xlu0 %v3793_v53, %s4696_s4 }
0x40d9   :  { %v3796_v13 = vpop.permute.xlu0 %3795 }
0x40da   :  { %v3798_v59 = vadd.f32 %v3796_v13, %v3788_v6 }
0x40dc   :  { %4667 = vtanh.f32 %v3798_v59 }
0x40e6   :  { %v4668_v25 = vpop.eup %4667 }
0x40e7   :  { %3801 = vrot.lane.b32.xlu1 %v4668_v25, %s4697_s24 }
0x40eb   :  { %3811 = vrot.lane.b32.xlu1 %v3810_v27, %s4697_s24  ;;  %s4700_s24 = smov [#allocation6]  }
0x40ec   :  { %s3906_s29 = sshll.u32 %s4700_s24, 4  ;;  %s3907_s29 = int_to_ptr.vmem [resolvable:$true] %s3906_s29 }
0x40ed   :  { %s4669_s13 = scalar_lea.vmem %s3907_s29, 32  ;;  %p4674_p1 = scmp.lt.s32.totalorder %s3907_s29, %s3907_s29 }
0x40ee   :  { %p4670_p0 = scmp.ne.s32.totalorder %s3907_s29, %s4669_s13  ;;  %p4675_p2 = scmp.lt.s32.totalorder %s4669_s13, %s4669_s13 }
0x40f0   :  { %p4676_p3 = por %p4675_p2, %p4674_p1 }
0x40f2   :  { %p4677_p4 = pnand %p4676_p3, %p4670_p0 }
0x4159   :  { %v3802_v56 = vpop.permute.xlu1 %3801 }
0x415a   :  { %v3804_v43 = vmul.f32 %v4666_v51, %v3802_v56 }
0x415c   :  { %3806 = vrot.lane.b32.xlu0 %v3804_v43, %s4696_s4 }
0x415d   :  { %v3812_v28 = vpop.permute.xlu1 %3811 }
0x41ce   :  { %v3807_v32 = vpop.permute.xlu0 %3806 }
0x41cf   :  { %v3814_v35 = vsel %vm227_vm3, %v3807_v32, %v3812_v28 }
0x41d0   :  { %v3815_v17 = vpack.c.bf16 %v3814_v35, %v3814_v35 }
0x41d2   :  { %4366 = vmatmul.mubr.msk.bf16.vlgmr.msra.gmra.mrb[68].mxu0 %vm69_vm0, %v3815_v17 }
0x42a5   :  { %v3892_v38 = vpop.f32.mrb[68].mxu0 }
0x42a6   :  { %v3893_v37 = vadd.f32 %v4092_v45, %v3892_v38  ;;  %v4367_v54 = vpop.f32.mrb[69].mxu0 }
0x42a7   :  { %v3895_v58 = vpop.f32.mrb[70].mxu0 }
0x42a8   :  { %v4368_v47 = vpop.f32.mrb[71].mxu0  ;;  %3899 = vst.msk [vmem:[#allocation6] sm:$0x3] %vm3898_vm1, %v3893_v37 }
0x42a9   :  { %4680 = shalt.err (!%p4677_p4)
}
0x42aa   :  { %s4681_s14 = scalar_lea.hbm %s5772_s15, 32 }
0x42ab   :  { %p4682_p5 = scmp.ne.s32.totalorder %s5772_s15, %s4681_s14  ;;  %p4685_p6 = scmp.lt.u32.totalorder %s4681_s14, %s5772_s15 }
0x42ad   :  { %p4687_p7 = pnand %p4685_p6, %p4682_p5 }
0x42af   :  { %4690 = shalt.err (!%p4687_p7)
}
0x42b0   :  { %3909 = dma.vmem_to_hbm [thread:$0]  %s3907_s29, 32, %s5772_s15, [#allocation7]  }
0x42b1   :  { %4691 = dma.done.wait [#allocation7], 32  }
0x42b2   :  { %4692 = vsyncadd [#allocation7], 4294967264 }
0x42b3   :  { %3913 = vsyncpa [#allocation7], 1 }

</bundles_post_ra>
